<compile_context>
chip_gen: v7x
topology: tpu7x:2x2x1
jax: 0.10.0
libtpu: 0.0.40
codegen_flags: <defaults>
</compile_context>

<pallas_src>
import functools

import jax
import jax.numpy as jnp
from jax.experimental import pallas as pl
from jax.experimental.pallas import tpu as pltpu

HP = 128  # lane width: one 128-lane block holds all four packed gates


# -----------------------------------------------------------------------------
# Pallas kernel: 3 LSTM layers (layer-outer, time-inner) + final Linear.
# -----------------------------------------------------------------------------
def mllstm_kernel(
    x_ref,                                # (T*B, HP) time-major, padded input
    wih0_ref, whh0_ref, b0_ref,           # layer 0: (HP,HP), (HP,HP), (1,HP)
    wih1_ref, whh1_ref, b1_ref,           # layer 1
    wih2_ref, whh2_ref, b2_ref,           # layer 2
    wfc_ref, bfc_ref,                     # fc: (HP,HP), (1,HP)  (lane-dense out)
    out_ref,                              # (B, HP)
    seq_ref,                              # VMEM scratch (T*B, HP): hidden seq
    *, hidden_size,
):
    H = hidden_size
    TB = x_ref.shape[0]
    B = out_ref.shape[0]
    T = TB // B

    def recurrence(xp, whh, store_seq):
        # PyTorch initHidden(): h0 = c0 = ones. Padded lanes are harmless
        # because all padded weight rows are zero.
        h = jnp.ones((B, HP), jnp.float32)
        c = jnp.ones((B, HP), jnp.float32)
        for t in range(T):
            # Only h @ W_hh is on the serial chain: one (B,128)@(128,128) push.
            gates = xp[t * B:(t + 1) * B, :] + jnp.dot(
                h, whh, preferred_element_type=jnp.float32)
            tg = jnp.tanh(gates)          # single EUP pass over the packed gates
            sg = 0.5 * tg + 0.5           # sigmoid(a) = 0.5*tanh(a/2) + 0.5 (VPU)
            i_s = sg                                     # sigma(i) already at lanes [0,H)
            f_s = pltpu.roll(sg, HP - H, axis=1)         # sigma(f) -> lanes [0,H)
            g_t = pltpu.roll(tg, HP - 2 * H, axis=1)     # tanh(g)  -> lanes [0,H)
            o_s = pltpu.roll(sg, HP - 3 * H, axis=1)     # sigma(o) -> lanes [0,H)
            c = f_s * c + i_s * g_t
            h = o_s * jnp.tanh(c)
            if store_seq:
                seq_ref[t * B:(t + 1) * B, :] = h
        return h

    # Layer 0: hoisted input projection = ONE dense batched MXU matmul.
    xp0 = jnp.dot(x_ref[...], wih0_ref[...],
                  preferred_element_type=jnp.float32) + b0_ref[...]
    recurrence(xp0, whh0_ref[...], store_seq=True)

    # Layer 1 (reads layer-0 hidden sequence from scratch, then overwrites it).
    xp1 = jnp.dot(seq_ref[...], wih1_ref[...],
                  preferred_element_type=jnp.float32) + b1_ref[...]
    recurrence(xp1, whh1_ref[...], store_seq=True)

    # Layer 2: only the last hidden state is needed.
    xp2 = jnp.dot(seq_ref[...], wih2_ref[...],
                  preferred_element_type=jnp.float32) + b2_ref[...]
    h_last = recurrence(xp2, whh2_ref[...], store_seq=False)

    # fc on the last timestep's top-layer hidden state (dropout = identity).
    # Lane-dense (B, 128) store; valid logits live in lanes [0, output_size).
    out = jnp.dot(h_last, wfc_ref[...],
                  preferred_element_type=jnp.float32) + bfc_ref[...]
    out_ref[...] = out.astype(out_ref.dtype)


# -----------------------------------------------------------------------------
# Wrapper
# -----------------------------------------------------------------------------
@functools.partial(jax.jit, static_argnames=("hidden_size", "output_size"))
def mllstm_forward(x, packed, *, hidden_size, output_size):
    B, T, I = x.shape
    B_pad = max(8, -(-B // 8) * 8)   # fill all 8 sublanes / MXU rows

    # Time-major, batch- and lane-padded input, flattened to (T*B_pad, HP).
    x_tm = jnp.transpose(x.astype(jnp.float32), (1, 0, 2))        # (T, B, I)
    x_tm = jnp.pad(x_tm, ((0, 0), (0, B_pad - B), (0, HP - I)))   # (T, B_pad, HP)
    x_flat = x_tm.reshape(T * B_pad, HP)

    flat = [
        x_flat,
        packed["wih0"], packed["whh0"], packed["b0"],
        packed["wih1"], packed["whh1"], packed["b1"],
        packed["wih2"], packed["whh2"], packed["b2"],
        packed["wfc"], packed["bfc"],
    ]
    vmem = pl.BlockSpec(memory_space=pltpu.MemorySpace.VMEM)
    out_padded = pl.pallas_call(
        functools.partial(mllstm_kernel, hidden_size=hidden_size),
        out_shape=jax.ShapeDtypeStruct((B_pad, HP), jnp.float32),
        in_specs=[vmem] * len(flat),
        out_specs=vmem,
        scratch_shapes=[pltpu.VMEM((T * B_pad, HP), jnp.float32)],
    )(*flat)
    return out_padded[:B, :output_size]


# -----------------------------------------------------------------------------
# Parameter construction (PyTorch-shaped raw params) + packing for the kernel
# -----------------------------------------------------------------------------
def make_raw_params(key, input_size, hidden_size, output_size):
    ks = jax.random.split(key, 14)
    scale = 1.0 / jnp.sqrt(hidden_size)

    def u(k, shape):
        return jax.random.uniform(k, shape, jnp.float32, -scale, scale)

    raw = {}
    in_dims = [input_size, hidden_size, hidden_size]
    for l in range(3):
        raw[f"w_ih{l}"] = u(ks[4 * l + 0], (4 * hidden_size, in_dims[l]))   # (4H, D)
        raw[f"w_hh{l}"] = u(ks[4 * l + 1], (4 * hidden_size, hidden_size))  # (4H, H)
        raw[f"b_ih{l}"] = u(ks[4 * l + 2], (4 * hidden_size,))
        raw[f"b_hh{l}"] = u(ks[4 * l + 3], (4 * hidden_size,))
    raw["w_fc"] = u(ks[12], (output_size, hidden_size))  # (O, H)
    raw["b_fc"] = u(ks[13], (output_size,))              # (O,)
    return raw


def pack_params(raw, input_size, hidden_size):
    """Gate-blocked (i|f|g|o at lane offsets 0/H/2H/3H), lane-padded weights.

    The 0.5 pre-scale for the single-tanh sigmoid trick is folded into the
    i/f/o columns of W_ih, W_hh and the bias (g keeps scale 1.0).
    """
    H = hidden_size
    col_scale = jnp.concatenate([
        jnp.full((H,), 0.5, jnp.float32),   # i
        jnp.full((H,), 0.5, jnp.float32),   # f
        jnp.ones((H,), jnp.float32),        # g
        jnp.full((H,), 0.5, jnp.float32),   # o
    ])                                      # (4H,), PyTorch gate order

    packed = {}
    in_dims = [input_size, hidden_size, hidden_size]
    for l in range(3):
        D = in_dims[l]
        wih_t = raw[f"w_ih{l}"].T * col_scale[None, :]            # (D, 4H)
        whh_t = raw[f"w_hh{l}"].T * col_scale[None, :]            # (H, 4H)
        bias = (raw[f"b_ih{l}"] + raw[f"b_hh{l}"]) * col_scale    # (4H,)
        packed[f"wih{l}"] = (
            jnp.zeros((HP, HP), jnp.float32).at[:D, :4 * H].set(wih_t))
        packed[f"whh{l}"] = (
            jnp.zeros((HP, HP), jnp.float32).at[:H, :4 * H].set(whh_t))
        packed[f"b{l}"] = (
            jnp.zeros((1, HP), jnp.float32).at[0, :4 * H].set(bias))

    O = raw["w_fc"].shape[0]
    packed["wfc"] = jnp.zeros((HP, HP), jnp.float32).at[:H, :O].set(raw["w_fc"].T)
    packed["bfc"] = jnp.zeros((1, HP), jnp.float32).at[0, :O].set(raw["b_fc"])
    return packed


# -----------------------------------------------------------------------------
# Pure-JAX reference (unpadded, PyTorch-shaped params) for the sanity check
# -----------------------------------------------------------------------------
def mllstm_reference(x, raw, hidden_size):
    B, T, _ = x.shape
    H = hidden_size
    seq = x
    for l in range(3):
        wih = raw[f"w_ih{l}"].T            # (D, 4H)
        whh = raw[f"w_hh{l}"].T            # (H, 4H)
        b = (raw[f"b_ih{l}"] + raw[f"b_hh{l}"])[None, :]
        h = jnp.ones((B, H), jnp.float32)
        c = jnp.ones((B, H), jnp.float32)
        outs = []
        for t in range(T):
            g = seq[:, t, :] @ wih + h @ whh + b
            i_g = jax.nn.sigmoid(g[:, 0 * H:1 * H])
            f_g = jax.nn.sigmoid(g[:, 1 * H:2 * H])
            g_g = jnp.tanh(g[:, 2 * H:3 * H])
            o_g = jax.nn.sigmoid(g[:, 3 * H:4 * H])
            c = f_g * c + i_g * g_g
            h = o_g * jnp.tanh(c)
            outs.append(h)
        seq = jnp.stack(outs, axis=1)
    return seq[:, -1, :] @ raw["w_fc"].T + raw["b_fc"][None, :]


if __name__ == "__main__":
    batch_size = 2
    seq_len = 8
    input_size = 8      # np.shape(X_train)[2]
    hidden_size = 16
    output_size = 4     # len(Labels)

    key = jax.random.PRNGKey(0)
    k_x, k_p = jax.random.split(key)
    x = jax.random.normal(k_x, (batch_size, seq_len, input_size), jnp.float32)
    raw = make_raw_params(k_p, input_size, hidden_size, output_size)
    packed = pack_params(raw, input_size, hidden_size)

    out = mllstm_forward(x, packed, hidden_size=hidden_size,
                         output_size=output_size)
    out = jax.block_until_ready(out)

    ref = mllstm_reference(x, raw, hidden_size)
    assert out.shape == (batch_size, output_size)
    assert jnp.allclose(out, ref, rtol=1e-4, atol=1e-4), "mismatch vs reference"

    print("KERNEL_OK")
</pallas_src>

<mosaic_0001>
module attributes {stable_mosaic.version = 11 : i64} {
  func.func @mllstm_kernel(%arg0: memref<64x128xf32, #tpu.memory_space<vmem>>, %arg1: memref<128x128xf32, #tpu.memory_space<vmem>>, %arg2: memref<128x128xf32, #tpu.memory_space<vmem>>, %arg3: memref<1x128xf32, #tpu.memory_space<vmem>>, %arg4: memref<128x128xf32, #tpu.memory_space<vmem>>, %arg5: memref<128x128xf32, #tpu.memory_space<vmem>>, %arg6: memref<1x128xf32, #tpu.memory_space<vmem>>, %arg7: memref<128x128xf32, #tpu.memory_space<vmem>>, %arg8: memref<128x128xf32, #tpu.memory_space<vmem>>, %arg9: memref<1x128xf32, #tpu.memory_space<vmem>>, %arg10: memref<128x128xf32, #tpu.memory_space<vmem>>, %arg11: memref<1x128xf32, #tpu.memory_space<vmem>>, %arg12: memref<8x128xf32, #tpu.memory_space<vmem>>, %arg13: memref<64x128xf32, #tpu.memory_space<vmem>>) attributes {dimension_semantics = [], scalar_prefetch = 0 : i64, scratch_operands = 1 : i64, tpu.core_type = #tpu.core_type<tc>} {
    %c0 = arith.constant 0 : index
    %c0_0 = arith.constant 0 : index
    %0 = vector.load %arg0[%c0, %c0_0] : memref<64x128xf32, #tpu.memory_space<vmem>>, vector<64x128xf32>
    %c0_1 = arith.constant 0 : index
    %c0_2 = arith.constant 0 : index
    %1 = vector.load %arg1[%c0_1, %c0_2] : memref<128x128xf32, #tpu.memory_space<vmem>>, vector<128x128xf32>
    %cst = arith.constant dense<0.000000e+00> : vector<64x128xf32>
    %2 = tpu.matmul %0, %1, %cst {dimension_numbers = #tpu.dot_dimension_numbers<[1], [0], [0], [1], [0, 0, 1, 1], [], []>} : vector<64x128xf32>, vector<128x128xf32>, vector<64x128xf32> -> vector<64x128xf32>
    %c0_3 = arith.constant 0 : index
    %c0_4 = arith.constant 0 : index
    %3 = vector.load %arg3[%c0_3, %c0_4] : memref<1x128xf32, #tpu.memory_space<vmem>>, vector<1x128xf32>
    %4 = vector.broadcast %3 : vector<1x128xf32> to vector<64x128xf32>
    %5 = arith.addf %2, %4 : vector<64x128xf32>
    %c0_5 = arith.constant 0 : index
    %c0_6 = arith.constant 0 : index
    %6 = vector.load %arg2[%c0_5, %c0_6] : memref<128x128xf32, #tpu.memory_space<vmem>>, vector<128x128xf32>
    %cst_7 = arith.constant 1.000000e+00 : f32
    %7 = vector.broadcast %cst_7 : f32 to vector<8x128xf32>
    %cst_8 = arith.constant 1.000000e+00 : f32
    %8 = vector.broadcast %cst_8 : f32 to vector<8x128xf32>
    %9 = vector.extract_strided_slice %5 {offsets = [0, 0], sizes = [8, 128], strides = [1, 1]} : vector<64x128xf32> to vector<8x128xf32>
    %cst_9 = arith.constant dense<0.000000e+00> : vector<8x128xf32>
    %10 = tpu.matmul %7, %6, %cst_9 {dimension_numbers = #tpu.dot_dimension_numbers<[1], [0], [0], [1], [0, 0, 1, 1], [], []>} : vector<8x128xf32>, vector<128x128xf32>, vector<8x128xf32> -> vector<8x128xf32>
    %11 = arith.addf %9, %10 : vector<8x128xf32>
    %12 = math.tanh %11 : vector<8x128xf32>
    %cst_10 = arith.constant 5.000000e-01 : f32
    %13 = vector.broadcast %cst_10 : f32 to vector<8x128xf32>
    %14 = arith.mulf %13, %12 : vector<8x128xf32>
    %cst_11 = arith.constant 5.000000e-01 : f32
    %15 = vector.broadcast %cst_11 : f32 to vector<8x128xf32>
    %16 = arith.addf %14, %15 : vector<8x128xf32>
    %c112_i32 = arith.constant 112 : i32
    %17 = tpu.dynamic_rotate %16 by %c112_i32 dim 1 : vector<8x128xf32>, i32 -> vector<8x128xf32>
    %c96_i32 = arith.constant 96 : i32
    %18 = tpu.dynamic_rotate %12 by %c96_i32 dim 1 : vector<8x128xf32>, i32 -> vector<8x128xf32>
    %c80_i32 = arith.constant 80 : i32
    %19 = tpu.dynamic_rotate %16 by %c80_i32 dim 1 : vector<8x128xf32>, i32 -> vector<8x128xf32>
    %20 = arith.mulf %17, %8 : vector<8x128xf32>
    %21 = arith.mulf %16, %18 : vector<8x128xf32>
    %22 = arith.addf %20, %21 : vector<8x128xf32>
    %23 = math.tanh %22 : vector<8x128xf32>
    %24 = arith.mulf %19, %23 : vector<8x128xf32>
    %c0_12 = arith.constant 0 : index
    %c0_13 = arith.constant 0 : index
    %25 = vector.load %arg13[%c0_12, %c0_13] : memref<64x128xf32, #tpu.memory_space<vmem>>, vector<8x128xf32>
    tpu.vector_store %arg13[%c0_12, %c0_13], %24 {strides = array<i32>} : memref<64x128xf32, #tpu.memory_space<vmem>>, vector<8x128xf32>,
    %26 = vector.extract_strided_slice %5 {offsets = [8, 0], sizes = [8, 128], strides = [1, 1]} : vector<64x128xf32> to vector<8x128xf32>
    %cst_14 = arith.constant dense<0.000000e+00> : vector<8x128xf32>
    %27 = tpu.matmul %24, %6, %cst_14 {dimension_numbers = #tpu.dot_dimension_numbers<[1], [0], [0], [1], [0, 0, 1, 1], [], []>} : vector<8x128xf32>, vector<128x128xf32>, vector<8x128xf32> -> vector<8x128xf32>
    %28 = arith.addf %26, %27 : vector<8x128xf32>
    %29 = math.tanh %28 : vector<8x128xf32>
    %cst_15 = arith.constant 5.000000e-01 : f32
    %30 = vector.broadcast %cst_15 : f32 to vector<8x128xf32>
    %31 = arith.mulf %30, %29 : vector<8x128xf32>
    %cst_16 = arith.constant 5.000000e-01 : f32
    %32 = vector.broadcast %cst_16 : f32 to vector<8x128xf32>
    %33 = arith.addf %31, %32 : vector<8x128xf32>
    %c112_i32_17 = arith.constant 112 : i32
    %34 = tpu.dynamic_rotate %33 by %c112_i32_17 dim 1 : vector<8x128xf32>, i32 -> vector<8x128xf32>
    %c96_i32_18 = arith.constant 96 : i32
    %35 = tpu.dynamic_rotate %29 by %c96_i32_18 dim 1 : vector<8x128xf32>, i32 -> vector<8x128xf32>
    %c80_i32_19 = arith.constant 80 : i32
    %36 = tpu.dynamic_rotate %33 by %c80_i32_19 dim 1 : vector<8x128xf32>, i32 -> vector<8x128xf32>
    %37 = arith.mulf %34, %22 : vector<8x128xf32>
    %38 = arith.mulf %33, %35 : vector<8x128xf32>
    %39 = arith.addf %37, %38 : vector<8x128xf32>
    %40 = math.tanh %39 : vector<8x128xf32>
    %41 = arith.mulf %36, %40 : vector<8x128xf32>
    %c8 = arith.constant 8 : index
    %c0_20 = arith.constant 0 : index
    %42 = vector.load %arg13[%c8, %c0_20] : memref<64x128xf32, #tpu.memory_space<vmem>>, vector<8x128xf32>
    tpu.vector_store %arg13[%c8, %c0_20], %41 {strides = array<i32>} : memref<64x128xf32, #tpu.memory_space<vmem>>, vector<8x128xf32>,
    %43 = vector.extract_strided_slice %5 {offsets = [16, 0], sizes = [8, 128], strides = [1, 1]} : vector<64x128xf32> to vector<8x128xf32>
    %cst_21 = arith.constant dense<0.000000e+00> : vector<8x128xf32>
    %44 = tpu.matmul %41, %6, %cst_21 {dimension_numbers = #tpu.dot_dimension_numbers<[1], [0], [0], [1], [0, 0, 1, 1], [], []>} : vector<8x128xf32>, vector<128x128xf32>, vector<8x128xf32> -> vector<8x128xf32>
    %45 = arith.addf %43, %44 : vector<8x128xf32>
    %46 = math.tanh %45 : vector<8x128xf32>
    %cst_22 = arith.constant 5.000000e-01 : f32
    %47 = vector.broadcast %cst_22 : f32 to vector<8x128xf32>
    %48 = arith.mulf %47, %46 : vector<8x128xf32>
    %cst_23 = arith.constant 5.000000e-01 : f32
    %49 = vector.broadcast %cst_23 : f32 to vector<8x128xf32>
    %50 = arith.addf %48, %49 : vector<8x128xf32>
    %c112_i32_24 = arith.constant 112 : i32
    %51 = tpu.dynamic_rotate %50 by %c112_i32_24 dim 1 : vector<8x128xf32>, i32 -> vector<8x128xf32>
    %c96_i32_25 = arith.constant 96 : i32
    %52 = tpu.dynamic_rotate %46 by %c96_i32_25 dim 1 : vector<8x128xf32>, i32 -> vector<8x128xf32>
    %c80_i32_26 = arith.constant 80 : i32
    %53 = tpu.dynamic_rotate %50 by %c80_i32_26 dim 1 : vector<8x128xf32>, i32 -> vector<8x128xf32>
    %54 = arith.mulf %51, %39 : vector<8x128xf32>
    %55 = arith.mulf %50, %52 : vector<8x128xf32>
    %56 = arith.addf %54, %55 : vector<8x128xf32>
    %57 = math.tanh %56 : vector<8x128xf32>
    %58 = arith.mulf %53, %57 : vector<8x128xf32>
    %c16 = arith.constant 16 : index
    %c0_27 = arith.constant 0 : index
    %59 = vector.load %arg13[%c16, %c0_27] : memref<64x128xf32, #tpu.memory_space<vmem>>, vector<8x128xf32>
    tpu.vector_store %arg13[%c16, %c0_27], %58 {strides = array<i32>} : memref<64x128xf32, #tpu.memory_space<vmem>>, vector<8x128xf32>,
    %60 = vector.extract_strided_slice %5 {offsets = [24, 0], sizes = [8, 128], strides = [1, 1]} : vector<64x128xf32> to vector<8x128xf32>
    %cst_28 = arith.constant dense<0.000000e+00> : vector<8x128xf32>
    %61 = tpu.matmul %58, %6, %cst_28 {dimension_numbers = #tpu.dot_dimension_numbers<[1], [0], [0], [1], [0, 0, 1, 1], [], []>} : vector<8x128xf32>, vector<128x128xf32>, vector<8x128xf32> -> vector<8x128xf32>
    %62 = arith.addf %60, %61 : vector<8x128xf32>
    %63 = math.tanh %62 : vector<8x128xf32>
    %cst_29 = arith.constant 5.000000e-01 : f32
    %64 = vector.broadcast %cst_29 : f32 to vector<8x128xf32>
    %65 = arith.mulf %64, %63 : vector<8x128xf32>
    %cst_30 = arith.constant 5.000000e-01 : f32
    %66 = vector.broadcast %cst_30 : f32 to vector<8x128xf32>
    %67 = arith.addf %65, %66 : vector<8x128xf32>
    %c112_i32_31 = arith.constant 112 : i32
    %68 = tpu.dynamic_rotate %67 by %c112_i32_31 dim 1 : vector<8x128xf32>, i32 -> vector<8x128xf32>
    %c96_i32_32 = arith.constant 96 : i32
    %69 = tpu.dynamic_rotate %63 by %c96_i32_32 dim 1 : vector<8x128xf32>, i32 -> vector<8x128xf32>
    %c80_i32_33 = arith.constant 80 : i32
    %70 = tpu.dynamic_rotate %67 by %c80_i32_33 dim 1 : vector<8x128xf32>, i32 -> vector<8x128xf32>
    %71 = arith.mulf %68, %56 : vector<8x128xf32>
    %72 = arith.mulf %67, %69 : vector<8x128xf32>
    %73 = arith.addf %71, %72 : vector<8x128xf32>
    %74 = math.tanh %73 : vector<8x128xf32>
    %75 = arith.mulf %70, %74 : vector<8x128xf32>
    %c24 = arith.constant 24 : index
    %c0_34 = arith.constant 0 : index
    %76 = vector.load %arg13[%c24, %c0_34] : memref<64x128xf32, #tpu.memory_space<vmem>>, vector<8x128xf32>
    tpu.vector_store %arg13[%c24, %c0_34], %75 {strides = array<i32>} : memref<64x128xf32, #tpu.memory_space<vmem>>, vector<8x128xf32>,
    %77 = vector.extract_strided_slice %5 {offsets = [32, 0], sizes = [8, 128], strides = [1, 1]} : vector<64x128xf32> to vector<8x128xf32>
    %cst_35 = arith.constant dense<0.000000e+00> : vector<8x128xf32>
    %78 = tpu.matmul %75, %6, %cst_35 {dimension_numbers = #tpu.dot_dimension_numbers<[1], [0], [0], [1], [0, 0, 1, 1], [], []>} : vector<8x128xf32>, vector<128x128xf32>, vector<8x128xf32> -> vector<8x128xf32>
    %79 = arith.addf %77, %78 : vector<8x128xf32>
    %80 = math.tanh %79 : vector<8x128xf32>
    %cst_36 = arith.constant 5.000000e-01 : f32
    %81 = vector.broadcast %cst_36 : f32 to vector<8x128xf32>
    %82 = arith.mulf %81, %80 : vector<8x128xf32>
    %cst_37 = arith.constant 5.000000e-01 : f32
    %83 = vector.broadcast %cst_37 : f32 to vector<8x128xf32>
    %84 = arith.addf %82, %83 : vector<8x128xf32>
    %c112_i32_38 = arith.constant 112 : i32
    %85 = tpu.dynamic_rotate %84 by %c112_i32_38 dim 1 : vector<8x128xf32>, i32 -> vector<8x128xf32>
    %c96_i32_39 = arith.constant 96 : i32
    %86 = tpu.dynamic_rotate %80 by %c96_i32_39 dim 1 : vector<8x128xf32>, i32 -> vector<8x128xf32>
    %c80_i32_40 = arith.constant 80 : i32
    %87 = tpu.dynamic_rotate %84 by %c80_i32_40 dim 1 : vector<8x128xf32>, i32 -> vector<8x128xf32>
    %88 = arith.mulf %85, %73 : vector<8x128xf32>
    %89 = arith.mulf %84, %86 : vector<8x128xf32>
    %90 = arith.addf %88, %89 : vector<8x128xf32>
    %91 = math.tanh %90 : vector<8x128xf32>
    %92 = arith.mulf %87, %91 : vector<8x128xf32>
    %c32 = arith.constant 32 : index
    %c0_41 = arith.constant 0 : index
    %93 = vector.load %arg13[%c32, %c0_41] : memref<64x128xf32, #tpu.memory_space<vmem>>, vector<8x128xf32>
    tpu.vector_store %arg13[%c32, %c0_41], %92 {strides = array<i32>} : memref<64x128xf32, #tpu.memory_space<vmem>>, vector<8x128xf32>,
    %94 = vector.extract_strided_slice %5 {offsets = [40, 0], sizes = [8, 128], strides = [1, 1]} : vector<64x128xf32> to vector<8x128xf32>
    %cst_42 = arith.constant dense<0.000000e+00> : vector<8x128xf32>
    %95 = tpu.matmul %92, %6, %cst_42 {dimension_numbers = #tpu.dot_dimension_numbers<[1], [0], [0], [1], [0, 0, 1, 1], [], []>} : vector<8x128xf32>, vector<128x128xf32>, vector<8x128xf32> -> vector<8x128xf32>
    %96 = arith.addf %94, %95 : vector<8x128xf32>
    %97 = math.tanh %96 : vector<8x128xf32>
    %cst_43 = arith.constant 5.000000e-01 : f32
    %98 = vector.broadcast %cst_43 : f32 to vector<8x128xf32>
    %99 = arith.mulf %98, %97 : vector<8x128xf32>
    %cst_44 = arith.constant 5.000000e-01 : f32
    %100 = vector.broadcast %cst_44 : f32 to vector<8x128xf32>
    %101 = arith.addf %99, %100 : vector<8x128xf32>
    %c112_i32_45 = arith.constant 112 : i32
    %102 = tpu.dynamic_rotate %101 by %c112_i32_45 dim 1 : vector<8x128xf32>, i32 -> vector<8x128xf32>
    %c96_i32_46 = arith.constant 96 : i32
    %103 = tpu.dynamic_rotate %97 by %c96_i32_46 dim 1 : vector<8x128xf32>, i32 -> vector<8x128xf32>
    %c80_i32_47 = arith.constant 80 : i32
    %104 = tpu.dynamic_rotate %101 by %c80_i32_47 dim 1 : vector<8x128xf32>, i32 -> vector<8x128xf32>
    %105 = arith.mulf %102, %90 : vector<8x128xf32>
    %106 = arith.mulf %101, %103 : vector<8x128xf32>
    %107 = arith.addf %105, %106 : vector<8x128xf32>
    %108 = math.tanh %107 : vector<8x128xf32>
    %109 = arith.mulf %104, %108 : vector<8x128xf32>
    %c40 = arith.constant 40 : index
    %c0_48 = arith.constant 0 : index
    %110 = vector.load %arg13[%c40, %c0_48] : memref<64x128xf32, #tpu.memory_space<vmem>>, vector<8x128xf32>
    tpu.vector_store %arg13[%c40, %c0_48], %109 {strides = array<i32>} : memref<64x128xf32, #tpu.memory_space<vmem>>, vector<8x128xf32>,
    %111 = vector.extract_strided_slice %5 {offsets = [48, 0], sizes = [8, 128], strides = [1, 1]} : vector<64x128xf32> to vector<8x128xf32>
    %cst_49 = arith.constant dense<0.000000e+00> : vector<8x128xf32>
    %112 = tpu.matmul %109, %6, %cst_49 {dimension_numbers = #tpu.dot_dimension_numbers<[1], [0], [0], [1], [0, 0, 1, 1], [], []>} : vector<8x128xf32>, vector<128x128xf32>, vector<8x128xf32> -> vector<8x128xf32>
    %113 = arith.addf %111, %112 : vector<8x128xf32>
    %114 = math.tanh %113 : vector<8x128xf32>
    %cst_50 = arith.constant 5.000000e-01 : f32
    %115 = vector.broadcast %cst_50 : f32 to vector<8x128xf32>
    %116 = arith.mulf %115, %114 : vector<8x128xf32>
    %cst_51 = arith.constant 5.000000e-01 : f32
    %117 = vector.broadcast %cst_51 : f32 to vector<8x128xf32>
    %118 = arith.addf %116, %117 : vector<8x128xf32>
    %c112_i32_52 = arith.constant 112 : i32
    %119 = tpu.dynamic_rotate %118 by %c112_i32_52 dim 1 : vector<8x128xf32>, i32 -> vector<8x128xf32>
    %c96_i32_53 = arith.constant 96 : i32
    %120 = tpu.dynamic_rotate %114 by %c96_i32_53 dim 1 : vector<8x128xf32>, i32 -> vector<8x128xf32>
    %c80_i32_54 = arith.constant 80 : i32
    %121 = tpu.dynamic_rotate %118 by %c80_i32_54 dim 1 : vector<8x128xf32>, i32 -> vector<8x128xf32>
    %122 = arith.mulf %119, %107 : vector<8x128xf32>
    %123 = arith.mulf %118, %120 : vector<8x128xf32>
    %124 = arith.addf %122, %123 : vector<8x128xf32>
    %125 = math.tanh %124 : vector<8x128xf32>
    %126 = arith.mulf %121, %125 : vector<8x128xf32>
    %c48 = arith.constant 48 : index
    %c0_55 = arith.constant 0 : index
    %127 = vector.load %arg13[%c48, %c0_55] : memref<64x128xf32, #tpu.memory_space<vmem>>, vector<8x128xf32>
    tpu.vector_store %arg13[%c48, %c0_55], %126 {strides = array<i32>} : memref<64x128xf32, #tpu.memory_space<vmem>>, vector<8x128xf32>,
    %128 = vector.extract_strided_slice %5 {offsets = [56, 0], sizes = [8, 128], strides = [1, 1]} : vector<64x128xf32> to vector<8x128xf32>
    %cst_56 = arith.constant dense<0.000000e+00> : vector<8x128xf32>
    %129 = tpu.matmul %126, %6, %cst_56 {dimension_numbers = #tpu.dot_dimension_numbers<[1], [0], [0], [1], [0, 0, 1, 1], [], []>} : vector<8x128xf32>, vector<128x128xf32>, vector<8x128xf32> -> vector<8x128xf32>
    %130 = arith.addf %128, %129 : vector<8x128xf32>
    %131 = math.tanh %130 : vector<8x128xf32>
    %cst_57 = arith.constant 5.000000e-01 : f32
    %132 = vector.broadcast %cst_57 : f32 to vector<8x128xf32>
    %133 = arith.mulf %132, %131 : vector<8x128xf32>
    %cst_58 = arith.constant 5.000000e-01 : f32
    %134 = vector.broadcast %cst_58 : f32 to vector<8x128xf32>
    %135 = arith.addf %133, %134 : vector<8x128xf32>
    %c112_i32_59 = arith.constant 112 : i32
    %136 = tpu.dynamic_rotate %135 by %c112_i32_59 dim 1 : vector<8x128xf32>, i32 -> vector<8x128xf32>
    %c96_i32_60 = arith.constant 96 : i32
    %137 = tpu.dynamic_rotate %131 by %c96_i32_60 dim 1 : vector<8x128xf32>, i32 -> vector<8x128xf32>
    %c80_i32_61 = arith.constant 80 : i32
    %138 = tpu.dynamic_rotate %135 by %c80_i32_61 dim 1 : vector<8x128xf32>, i32 -> vector<8x128xf32>
    %139 = arith.mulf %136, %124 : vector<8x128xf32>
    %140 = arith.mulf %135, %137 : vector<8x128xf32>
    %141 = arith.addf %139, %140 : vector<8x128xf32>
    %142 = math.tanh %141 : vector<8x128xf32>
    %143 = arith.mulf %138, %142 : vector<8x128xf32>
    %c56 = arith.constant 56 : index
    %c0_62 = arith.constant 0 : index
    %144 = vector.load %arg13[%c56, %c0_62] : memref<64x128xf32, #tpu.memory_space<vmem>>, vector<8x128xf32>
    tpu.vector_store %arg13[%c56, %c0_62], %143 {strides = array<i32>} : memref<64x128xf32, #tpu.memory_space<vmem>>, vector<8x128xf32>,
    %c0_63 = arith.constant 0 : index
    %c0_64 = arith.constant 0 : index
    %145 = vector.load %arg13[%c0_63, %c0_64] : memref<64x128xf32, #tpu.memory_space<vmem>>, vector<64x128xf32>
    %c0_65 = arith.constant 0 : index
    %c0_66 = arith.constant 0 : index
    %146 = vector.load %arg4[%c0_65, %c0_66] : memref<128x128xf32, #tpu.memory_space<vmem>>, vector<128x128xf32>
    %cst_67 = arith.constant dense<0.000000e+00> : vector<64x128xf32>
    %147 = tpu.matmul %145, %146, %cst_67 {dimension_numbers = #tpu.dot_dimension_numbers<[1], [0], [0], [1], [0, 0, 1, 1], [], []>} : vector<64x128xf32>, vector<128x128xf32>, vector<64x128xf32> -> vector<64x128xf32>
    %c0_68 = arith.constant 0 : index
    %c0_69 = arith.constant 0 : index
    %148 = vector.load %arg6[%c0_68, %c0_69] : memref<1x128xf32, #tpu.memory_space<vmem>>, vector<1x128xf32>
    %149 = vector.broadcast %148 : vector<1x128xf32> to vector<64x128xf32>
    %150 = arith.addf %147, %149 : vector<64x128xf32>
    %c0_70 = arith.constant 0 : index
    %c0_71 = arith.constant 0 : index
    %151 = vector.load %arg5[%c0_70, %c0_71] : memref<128x128xf32, #tpu.memory_space<vmem>>, vector<128x128xf32>
    %cst_72 = arith.constant 1.000000e+00 : f32
    %152 = vector.broadcast %cst_72 : f32 to vector<8x128xf32>
    %cst_73 = arith.constant 1.000000e+00 : f32
    %153 = vector.broadcast %cst_73 : f32 to vector<8x128xf32>
    %154 = vector.extract_strided_slice %150 {offsets = [0, 0], sizes = [8, 128], strides = [1, 1]} : vector<64x128xf32> to vector<8x128xf32>
    %cst_74 = arith.constant dense<0.000000e+00> : vector<8x128xf32>
    %155 = tpu.matmul %152, %151, %cst_74 {dimension_numbers = #tpu.dot_dimension_numbers<[1], [0], [0], [1], [0, 0, 1, 1], [], []>} : vector<8x128xf32>, vector<128x128xf32>, vector<8x128xf32> -> vector<8x128xf32>
    %156 = arith.addf %154, %155 : vector<8x128xf32>
    %157 = math.tanh %156 : vector<8x128xf32>
    %cst_75 = arith.constant 5.000000e-01 : f32
    %158 = vector.broadcast %cst_75 : f32 to vector<8x128xf32>
    %159 = arith.mulf %158, %157 : vector<8x128xf32>
    %cst_76 = arith.constant 5.000000e-01 : f32
    %160 = vector.broadcast %cst_76 : f32 to vector<8x128xf32>
    %161 = arith.addf %159, %160 : vector<8x128xf32>
    %c112_i32_77 = arith.constant 112 : i32
    %162 = tpu.dynamic_rotate %161 by %c112_i32_77 dim 1 : vector<8x128xf32>, i32 -> vector<8x128xf32>
    %c96_i32_78 = arith.constant 96 : i32
    %163 = tpu.dynamic_rotate %157 by %c96_i32_78 dim 1 : vector<8x128xf32>, i32 -> vector<8x128xf32>
    %c80_i32_79 = arith.constant 80 : i32
    %164 = tpu.dynamic_rotate %161 by %c80_i32_79 dim 1 : vector<8x128xf32>, i32 -> vector<8x128xf32>
    %165 = arith.mulf %162, %153 : vector<8x128xf32>
    %166 = arith.mulf %161, %163 : vector<8x128xf32>
    %167 = arith.addf %165, %166 : vector<8x128xf32>
    %168 = math.tanh %167 : vector<8x128xf32>
    %169 = arith.mulf %164, %168 : vector<8x128xf32>
    %c0_80 = arith.constant 0 : index
    %c0_81 = arith.constant 0 : index
    %170 = vector.load %arg13[%c0_80, %c0_81] : memref<64x128xf32, #tpu.memory_space<vmem>>, vector<8x128xf32>
    tpu.vector_store %arg13[%c0_80, %c0_81], %169 {strides = array<i32>} : memref<64x128xf32, #tpu.memory_space<vmem>>, vector<8x128xf32>,
    %171 = vector.extract_strided_slice %150 {offsets = [8, 0], sizes = [8, 128], strides = [1, 1]} : vector<64x128xf32> to vector<8x128xf32>
    %cst_82 = arith.constant dense<0.000000e+00> : vector<8x128xf32>
    %172 = tpu.matmul %169, %151, %cst_82 {dimension_numbers = #tpu.dot_dimension_numbers<[1], [0], [0], [1], [0, 0, 1, 1], [], []>} : vector<8x128xf32>, vector<128x128xf32>, vector<8x128xf32> -> vector<8x128xf32>
    %173 = arith.addf %171, %172 : vector<8x128xf32>
    %174 = math.tanh %173 : vector<8x128xf32>
    %cst_83 = arith.constant 5.000000e-01 : f32
    %175 = vector.broadcast %cst_83 : f32 to vector<8x128xf32>
    %176 = arith.mulf %175, %174 : vector<8x128xf32>
    %cst_84 = arith.constant 5.000000e-01 : f32
    %177 = vector.broadcast %cst_84 : f32 to vector<8x128xf32>
    %178 = arith.addf %176, %177 : vector<8x128xf32>
    %c112_i32_85 = arith.constant 112 : i32
    %179 = tpu.dynamic_rotate %178 by %c112_i32_85 dim 1 : vector<8x128xf32>, i32 -> vector<8x128xf32>
    %c96_i32_86 = arith.constant 96 : i32
    %180 = tpu.dynamic_rotate %174 by %c96_i32_86 dim 1 : vector<8x128xf32>, i32 -> vector<8x128xf32>
    %c80_i32_87 = arith.constant 80 : i32
    %181 = tpu.dynamic_rotate %178 by %c80_i32_87 dim 1 : vector<8x128xf32>, i32 -> vector<8x128xf32>
    %182 = arith.mulf %179, %167 : vector<8x128xf32>
    %183 = arith.mulf %178, %180 : vector<8x128xf32>
    %184 = arith.addf %182, %183 : vector<8x128xf32>
    %185 = math.tanh %184 : vector<8x128xf32>
    %186 = arith.mulf %181, %185 : vector<8x128xf32>
    %c8_88 = arith.constant 8 : index
    %c0_89 = arith.constant 0 : index
    %187 = vector.load %arg13[%c8_88, %c0_89] : memref<64x128xf32, #tpu.memory_space<vmem>>, vector<8x128xf32>
    tpu.vector_store %arg13[%c8_88, %c0_89], %186 {strides = array<i32>} : memref<64x128xf32, #tpu.memory_space<vmem>>, vector<8x128xf32>,
    %188 = vector.extract_strided_slice %150 {offsets = [16, 0], sizes = [8, 128], strides = [1, 1]} : vector<64x128xf32> to vector<8x128xf32>
    %cst_90 = arith.constant dense<0.000000e+00> : vector<8x128xf32>
    %189 = tpu.matmul %186, %151, %cst_90 {dimension_numbers = #tpu.dot_dimension_numbers<[1], [0], [0], [1], [0, 0, 1, 1], [], []>} : vector<8x128xf32>, vector<128x128xf32>, vector<8x128xf32> -> vector<8x128xf32>
    %190 = arith.addf %188, %189 : vector<8x128xf32>
    %191 = math.tanh %190 : vector<8x128xf32>
    %cst_91 = arith.constant 5.000000e-01 : f32
    %192 = vector.broadcast %cst_91 : f32 to vector<8x128xf32>
    %193 = arith.mulf %192, %191 : vector<8x128xf32>
    %cst_92 = arith.constant 5.000000e-01 : f32
    %194 = vector.broadcast %cst_92 : f32 to vector<8x128xf32>
    %195 = arith.addf %193, %194 : vector<8x128xf32>
    %c112_i32_93 = arith.constant 112 : i32
    %196 = tpu.dynamic_rotate %195 by %c112_i32_93 dim 1 : vector<8x128xf32>, i32 -> vector<8x128xf32>
    %c96_i32_94 = arith.constant 96 : i32
    %197 = tpu.dynamic_rotate %191 by %c96_i32_94 dim 1 : vector<8x128xf32>, i32 -> vector<8x128xf32>
    %c80_i32_95 = arith.constant 80 : i32
    %198 = tpu.dynamic_rotate %195 by %c80_i32_95 dim 1 : vector<8x128xf32>, i32 -> vector<8x128xf32>
    %199 = arith.mulf %196, %184 : vector<8x128xf32>
    %200 = arith.mulf %195, %197 : vector<8x128xf32>
    %201 = arith.addf %199, %200 : vector<8x128xf32>
    %202 = math.tanh %201 : vector<8x128xf32>
    %203 = arith.mulf %198, %202 : vector<8x128xf32>
    %c16_96 = arith.constant 16 : index
    %c0_97 = arith.constant 0 : index
    %204 = vector.load %arg13[%c16_96, %c0_97] : memref<64x128xf32, #tpu.memory_space<vmem>>, vector<8x128xf32>
    tpu.vector_store %arg13[%c16_96, %c0_97], %203 {strides = array<i32>} : memref<64x128xf32, #tpu.memory_space<vmem>>, vector<8x128xf32>,
    %205 = vector.extract_strided_slice %150 {offsets = [24, 0], sizes = [8, 128], strides = [1, 1]} : vector<64x128xf32> to vector<8x128xf32>
    %cst_98 = arith.constant dense<0.000000e+00> : vector<8x128xf32>
    %206 = tpu.matmul %203, %151, %cst_98 {dimension_numbers = #tpu.dot_dimension_numbers<[1], [0], [0], [1], [0, 0, 1, 1], [], []>} : vector<8x128xf32>, vector<128x128xf32>, vector<8x128xf32> -> vector<8x128xf32>
    %207 = arith.addf %205, %206 : vector<8x128xf32>
    %208 = math.tanh %207 : vector<8x128xf32>
    %cst_99 = arith.constant 5.000000e-01 : f32
    %209 = vector.broadcast %cst_99 : f32 to vector<8x128xf32>
    %210 = arith.mulf %209, %208 : vector<8x128xf32>
    %cst_100 = arith.constant 5.000000e-01 : f32
    %211 = vector.broadcast %cst_100 : f32 to vector<8x128xf32>
    %212 = arith.addf %210, %211 : vector<8x128xf32>
    %c112_i32_101 = arith.constant 112 : i32
    %213 = tpu.dynamic_rotate %212 by %c112_i32_101 dim 1 : vector<8x128xf32>, i32 -> vector<8x128xf32>
    %c96_i32_102 = arith.constant 96 : i32
    %214 = tpu.dynamic_rotate %208 by %c96_i32_102 dim 1 : vector<8x128xf32>, i32 -> vector<8x128xf32>
    %c80_i32_103 = arith.constant 80 : i32
    %215 = tpu.dynamic_rotate %212 by %c80_i32_103 dim 1 : vector<8x128xf32>, i32 -> vector<8x128xf32>
    %216 = arith.mulf %213, %201 : vector<8x128xf32>
    %217 = arith.mulf %212, %214 : vector<8x128xf32>
    %218 = arith.addf %216, %217 : vector<8x128xf32>
    %219 = math.tanh %218 : vector<8x128xf32>
    %220 = arith.mulf %215, %219 : vector<8x128xf32>
    %c24_104 = arith.constant 24 : index
    %c0_105 = arith.constant 0 : index
    %221 = vector.load %arg13[%c24_104, %c0_105] : memref<64x128xf32, #tpu.memory_space<vmem>>, vector<8x128xf32>
    tpu.vector_store %arg13[%c24_104, %c0_105], %220 {strides = array<i32>} : memref<64x128xf32, #tpu.memory_space<vmem>>, vector<8x128xf32>,
    %222 = vector.extract_strided_slice %150 {offsets = [32, 0], sizes = [8, 128], strides = [1, 1]} : vector<64x128xf32> to vector<8x128xf32>
    %cst_106 = arith.constant dense<0.000000e+00> : vector<8x128xf32>
    %223 = tpu.matmul %220, %151, %cst_106 {dimension_numbers = #tpu.dot_dimension_numbers<[1], [0], [0], [1], [0, 0, 1, 1], [], []>} : vector<8x128xf32>, vector<128x128xf32>, vector<8x128xf32> -> vector<8x128xf32>
    %224 = arith.addf %222, %223 : vector<8x128xf32>
    %225 = math.tanh %224 : vector<8x128xf32>
    %cst_107 = arith.constant 5.000000e-01 : f32
    %226 = vector.broadcast %cst_107 : f32 to vector<8x128xf32>
    %227 = arith.mulf %226, %225 : vector<8x128xf32>
    %cst_108 = arith.constant 5.000000e-01 : f32
    %228 = vector.broadcast %cst_108 : f32 to vector<8x128xf32>
    %229 = arith.addf %227, %228 : vector<8x128xf32>
    %c112_i32_109 = arith.constant 112 : i32
    %230 = tpu.dynamic_rotate %229 by %c112_i32_109 dim 1 : vector<8x128xf32>, i32 -> vector<8x128xf32>
    %c96_i32_110 = arith.constant 96 : i32
    %231 = tpu.dynamic_rotate %225 by %c96_i32_110 dim 1 : vector<8x128xf32>, i32 -> vector<8x128xf32>
    %c80_i32_111 = arith.constant 80 : i32
    %232 = tpu.dynamic_rotate %229 by %c80_i32_111 dim 1 : vector<8x128xf32>, i32 -> vector<8x128xf32>
    %233 = arith.mulf %230, %218 : vector<8x128xf32>
    %234 = arith.mulf %229, %231 : vector<8x128xf32>
    %235 = arith.addf %233, %234 : vector<8x128xf32>
    %236 = math.tanh %235 : vector<8x128xf32>
    %237 = arith.mulf %232, %236 : vector<8x128xf32>
    %c32_112 = arith.constant 32 : index
    %c0_113 = arith.constant 0 : index
    %238 = vector.load %arg13[%c32_112, %c0_113] : memref<64x128xf32, #tpu.memory_space<vmem>>, vector<8x128xf32>
    tpu.vector_store %arg13[%c32_112, %c0_113], %237 {strides = array<i32>} : memref<64x128xf32, #tpu.memory_space<vmem>>, vector<8x128xf32>,
    %239 = vector.extract_strided_slice %150 {offsets = [40, 0], sizes = [8, 128], strides = [1, 1]} : vector<64x128xf32> to vector<8x128xf32>
    %cst_114 = arith.constant dense<0.000000e+00> : vector<8x128xf32>
    %240 = tpu.matmul %237, %151, %cst_114 {dimension_numbers = #tpu.dot_dimension_numbers<[1], [0], [0], [1], [0, 0, 1, 1], [], []>} : vector<8x128xf32>, vector<128x128xf32>, vector<8x128xf32> -> vector<8x128xf32>
    %241 = arith.addf %239, %240 : vector<8x128xf32>
    %242 = math.tanh %241 : vector<8x128xf32>
    %cst_115 = arith.constant 5.000000e-01 : f32
    %243 = vector.broadcast %cst_115 : f32 to vector<8x128xf32>
    %244 = arith.mulf %243, %242 : vector<8x128xf32>
    %cst_116 = arith.constant 5.000000e-01 : f32
    %245 = vector.broadcast %cst_116 : f32 to vector<8x128xf32>
    %246 = arith.addf %244, %245 : vector<8x128xf32>
    %c112_i32_117 = arith.constant 112 : i32
    %247 = tpu.dynamic_rotate %246 by %c112_i32_117 dim 1 : vector<8x128xf32>, i32 -> vector<8x128xf32>
    %c96_i32_118 = arith.constant 96 : i32
    %248 = tpu.dynamic_rotate %242 by %c96_i32_118 dim 1 : vector<8x128xf32>, i32 -> vector<8x128xf32>
    %c80_i32_119 = arith.constant 80 : i32
    %249 = tpu.dynamic_rotate %246 by %c80_i32_119 dim 1 : vector<8x128xf32>, i32 -> vector<8x128xf32>
    %250 = arith.mulf %247, %235 : vector<8x128xf32>
    %251 = arith.mulf %246, %248 : vector<8x128xf32>
    %252 = arith.addf %250, %251 : vector<8x128xf32>
    %253 = math.tanh %252 : vector<8x128xf32>
    %254 = arith.mulf %249, %253 : vector<8x128xf32>
    %c40_120 = arith.constant 40 : index
    %c0_121 = arith.constant 0 : index
    %255 = vector.load %arg13[%c40_120, %c0_121] : memref<64x128xf32, #tpu.memory_space<vmem>>, vector<8x128xf32>
    tpu.vector_store %arg13[%c40_120, %c0_121], %254 {strides = array<i32>} : memref<64x128xf32, #tpu.memory_space<vmem>>, vector<8x128xf32>,
    %256 = vector.extract_strided_slice %150 {offsets = [48, 0], sizes = [8, 128], strides = [1, 1]} : vector<64x128xf32> to vector<8x128xf32>
    %cst_122 = arith.constant dense<0.000000e+00> : vector<8x128xf32>
    %257 = tpu.matmul %254, %151, %cst_122 {dimension_numbers = #tpu.dot_dimension_numbers<[1], [0], [0], [1], [0, 0, 1, 1], [], []>} : vector<8x128xf32>, vector<128x128xf32>, vector<8x128xf32> -> vector<8x128xf32>
    %258 = arith.addf %256, %257 : vector<8x128xf32>
    %259 = math.tanh %258 : vector<8x128xf32>
    %cst_123 = arith.constant 5.000000e-01 : f32
    %260 = vector.broadcast %cst_123 : f32 to vector<8x128xf32>
    %261 = arith.mulf %260, %259 : vector<8x128xf32>
    %cst_124 = arith.constant 5.000000e-01 : f32
    %262 = vector.broadcast %cst_124 : f32 to vector<8x128xf32>
    %263 = arith.addf %261, %262 : vector<8x128xf32>
    %c112_i32_125 = arith.constant 112 : i32
    %264 = tpu.dynamic_rotate %263 by %c112_i32_125 dim 1 : vector<8x128xf32>, i32 -> vector<8x128xf32>
    %c96_i32_126 = arith.constant 96 : i32
    %265 = tpu.dynamic_rotate %259 by %c96_i32_126 dim 1 : vector<8x128xf32>, i32 -> vector<8x128xf32>
    %c80_i32_127 = arith.constant 80 : i32
    %266 = tpu.dynamic_rotate %263 by %c80_i32_127 dim 1 : vector<8x128xf32>, i32 -> vector<8x128xf32>
    %267 = arith.mulf %264, %252 : vector<8x128xf32>
    %268 = arith.mulf %263, %265 : vector<8x128xf32>
    %269 = arith.addf %267, %268 : vector<8x128xf32>
    %270 = math.tanh %269 : vector<8x128xf32>
    %271 = arith.mulf %266, %270 : vector<8x128xf32>
    %c48_128 = arith.constant 48 : index
    %c0_129 = arith.constant 0 : index
    %272 = vector.load %arg13[%c48_128, %c0_129] : memref<64x128xf32, #tpu.memory_space<vmem>>, vector<8x128xf32>
    tpu.vector_store %arg13[%c48_128, %c0_129], %271 {strides = array<i32>} : memref<64x128xf32, #tpu.memory_space<vmem>>, vector<8x128xf32>,
    %273 = vector.extract_strided_slice %150 {offsets = [56, 0], sizes = [8, 128], strides = [1, 1]} : vector<64x128xf32> to vector<8x128xf32>
    %cst_130 = arith.constant dense<0.000000e+00> : vector<8x128xf32>
    %274 = tpu.matmul %271, %151, %cst_130 {dimension_numbers = #tpu.dot_dimension_numbers<[1], [0], [0], [1], [0, 0, 1, 1], [], []>} : vector<8x128xf32>, vector<128x128xf32>, vector<8x128xf32> -> vector<8x128xf32>
    %275 = arith.addf %273, %274 : vector<8x128xf32>
    %276 = math.tanh %275 : vector<8x128xf32>
    %cst_131 = arith.constant 5.000000e-01 : f32
    %277 = vector.broadcast %cst_131 : f32 to vector<8x128xf32>
    %278 = arith.mulf %277, %276 : vector<8x128xf32>
    %cst_132 = arith.constant 5.000000e-01 : f32
    %279 = vector.broadcast %cst_132 : f32 to vector<8x128xf32>
    %280 = arith.addf %278, %279 : vector<8x128xf32>
    %c112_i32_133 = arith.constant 112 : i32
    %281 = tpu.dynamic_rotate %280 by %c112_i32_133 dim 1 : vector<8x128xf32>, i32 -> vector<8x128xf32>
    %c96_i32_134 = arith.constant 96 : i32
    %282 = tpu.dynamic_rotate %276 by %c96_i32_134 dim 1 : vector<8x128xf32>, i32 -> vector<8x128xf32>
    %c80_i32_135 = arith.constant 80 : i32
    %283 = tpu.dynamic_rotate %280 by %c80_i32_135 dim 1 : vector<8x128xf32>, i32 -> vector<8x128xf32>
    %284 = arith.mulf %281, %269 : vector<8x128xf32>
    %285 = arith.mulf %280, %282 : vector<8x128xf32>
    %286 = arith.addf %284, %285 : vector<8x128xf32>
    %287 = math.tanh %286 : vector<8x128xf32>
    %288 = arith.mulf %283, %287 : vector<8x128xf32>
    %c56_136 = arith.constant 56 : index
    %c0_137 = arith.constant 0 : index
    %289 = vector.load %arg13[%c56_136, %c0_137] : memref<64x128xf32, #tpu.memory_space<vmem>>, vector<8x128xf32>
    tpu.vector_store %arg13[%c56_136, %c0_137], %288 {strides = array<i32>} : memref<64x128xf32, #tpu.memory_space<vmem>>, vector<8x128xf32>,
    %c0_138 = arith.constant 0 : index
    %c0_139 = arith.constant 0 : index
    %290 = vector.load %arg13[%c0_138, %c0_139] : memref<64x128xf32, #tpu.memory_space<vmem>>, vector<64x128xf32>
    %c0_140 = arith.constant 0 : index
    %c0_141 = arith.constant 0 : index
    %291 = vector.load %arg7[%c0_140, %c0_141] : memref<128x128xf32, #tpu.memory_space<vmem>>, vector<128x128xf32>
    %cst_142 = arith.constant dense<0.000000e+00> : vector<64x128xf32>
    %292 = tpu.matmul %290, %291, %cst_142 {dimension_numbers = #tpu.dot_dimension_numbers<[1], [0], [0], [1], [0, 0, 1, 1], [], []>} : vector<64x128xf32>, vector<128x128xf32>, vector<64x128xf32> -> vector<64x128xf32>
    %c0_143 = arith.constant 0 : index
    %c0_144 = arith.constant 0 : index
    %293 = vector.load %arg9[%c0_143, %c0_144] : memref<1x128xf32, #tpu.memory_space<vmem>>, vector<1x128xf32>
    %294 = vector.broadcast %293 : vector<1x128xf32> to vector<64x128xf32>
    %295 = arith.addf %292, %294 : vector<64x128xf32>
    %c0_145 = arith.constant 0 : index
    %c0_146 = arith.constant 0 : index
    %296 = vector.load %arg8[%c0_145, %c0_146] : memref<128x128xf32, #tpu.memory_space<vmem>>, vector<128x128xf32>
    %cst_147 = arith.constant 1.000000e+00 : f32
    %297 = vector.broadcast %cst_147 : f32 to vector<8x128xf32>
    %cst_148 = arith.constant 1.000000e+00 : f32
    %298 = vector.broadcast %cst_148 : f32 to vector<8x128xf32>
    %299 = vector.extract_strided_slice %295 {offsets = [0, 0], sizes = [8, 128], strides = [1, 1]} : vector<64x128xf32> to vector<8x128xf32>
    %cst_149 = arith.constant dense<0.000000e+00> : vector<8x128xf32>
    %300 = tpu.matmul %297, %296, %cst_149 {dimension_numbers = #tpu.dot_dimension_numbers<[1], [0], [0], [1], [0, 0, 1, 1], [], []>} : vector<8x128xf32>, vector<128x128xf32>, vector<8x128xf32> -> vector<8x128xf32>
    %301 = arith.addf %299, %300 : vector<8x128xf32>
    %302 = math.tanh %301 : vector<8x128xf32>
    %cst_150 = arith.constant 5.000000e-01 : f32
    %303 = vector.broadcast %cst_150 : f32 to vector<8x128xf32>
    %304 = arith.mulf %303, %302 : vector<8x128xf32>
    %cst_151 = arith.constant 5.000000e-01 : f32
    %305 = vector.broadcast %cst_151 : f32 to vector<8x128xf32>
    %306 = arith.addf %304, %305 : vector<8x128xf32>
    %c112_i32_152 = arith.constant 112 : i32
    %307 = tpu.dynamic_rotate %306 by %c112_i32_152 dim 1 : vector<8x128xf32>, i32 -> vector<8x128xf32>
    %c96_i32_153 = arith.constant 96 : i32
    %308 = tpu.dynamic_rotate %302 by %c96_i32_153 dim 1 : vector<8x128xf32>, i32 -> vector<8x128xf32>
    %c80_i32_154 = arith.constant 80 : i32
    %309 = tpu.dynamic_rotate %306 by %c80_i32_154 dim 1 : vector<8x128xf32>, i32 -> vector<8x128xf32>
    %310 = arith.mulf %307, %298 : vector<8x128xf32>
    %311 = arith.mulf %306, %308 : vector<8x128xf32>
    %312 = arith.addf %310, %311 : vector<8x128xf32>
    %313 = math.tanh %312 : vector<8x128xf32>
    %314 = arith.mulf %309, %313 : vector<8x128xf32>
    %315 = vector.extract_strided_slice %295 {offsets = [8, 0], sizes = [8, 128], strides = [1, 1]} : vector<64x128xf32> to vector<8x128xf32>
    %cst_155 = arith.constant dense<0.000000e+00> : vector<8x128xf32>
    %316 = tpu.matmul %314, %296, %cst_155 {dimension_numbers = #tpu.dot_dimension_numbers<[1], [0], [0], [1], [0, 0, 1, 1], [], []>} : vector<8x128xf32>, vector<128x128xf32>, vector<8x128xf32> -> vector<8x128xf32>
    %317 = arith.addf %315, %316 : vector<8x128xf32>
    %318 = math.tanh %317 : vector<8x128xf32>
    %cst_156 = arith.constant 5.000000e-01 : f32
    %319 = vector.broadcast %cst_156 : f32 to vector<8x128xf32>
    %320 = arith.mulf %319, %318 : vector<8x128xf32>
    %cst_157 = arith.constant 5.000000e-01 : f32
    %321 = vector.broadcast %cst_157 : f32 to vector<8x128xf32>
    %322 = arith.addf %320, %321 : vector<8x128xf32>
    %c112_i32_158 = arith.constant 112 : i32
    %323 = tpu.dynamic_rotate %322 by %c112_i32_158 dim 1 : vector<8x128xf32>, i32 -> vector<8x128xf32>
    %c96_i32_159 = arith.constant 96 : i32
    %324 = tpu.dynamic_rotate %318 by %c96_i32_159 dim 1 : vector<8x128xf32>, i32 -> vector<8x128xf32>
    %c80_i32_160 = arith.constant 80 : i32
    %325 = tpu.dynamic_rotate %322 by %c80_i32_160 dim 1 : vector<8x128xf32>, i32 -> vector<8x128xf32>
    %326 = arith.mulf %323, %312 : vector<8x128xf32>
    %327 = arith.mulf %322, %324 : vector<8x128xf32>
    %328 = arith.addf %326, %327 : vector<8x128xf32>
    %329 = math.tanh %328 : vector<8x128xf32>
    %330 = arith.mulf %325, %329 : vector<8x128xf32>
    %331 = vector.extract_strided_slice %295 {offsets = [16, 0], sizes = [8, 128], strides = [1, 1]} : vector<64x128xf32> to vector<8x128xf32>
    %cst_161 = arith.constant dense<0.000000e+00> : vector<8x128xf32>
    %332 = tpu.matmul %330, %296, %cst_161 {dimension_numbers = #tpu.dot_dimension_numbers<[1], [0], [0], [1], [0, 0, 1, 1], [], []>} : vector<8x128xf32>, vector<128x128xf32>, vector<8x128xf32> -> vector<8x128xf32>
    %333 = arith.addf %331, %332 : vector<8x128xf32>
    %334 = math.tanh %333 : vector<8x128xf32>
    %cst_162 = arith.constant 5.000000e-01 : f32
    %335 = vector.broadcast %cst_162 : f32 to vector<8x128xf32>
    %336 = arith.mulf %335, %334 : vector<8x128xf32>
    %cst_163 = arith.constant 5.000000e-01 : f32
    %337 = vector.broadcast %cst_163 : f32 to vector<8x128xf32>
    %338 = arith.addf %336, %337 : vector<8x128xf32>
    %c112_i32_164 = arith.constant 112 : i32
    %339 = tpu.dynamic_rotate %338 by %c112_i32_164 dim 1 : vector<8x128xf32>, i32 -> vector<8x128xf32>
    %c96_i32_165 = arith.constant 96 : i32
    %340 = tpu.dynamic_rotate %334 by %c96_i32_165 dim 1 : vector<8x128xf32>, i32 -> vector<8x128xf32>
    %c80_i32_166 = arith.constant 80 : i32
    %341 = tpu.dynamic_rotate %338 by %c80_i32_166 dim 1 : vector<8x128xf32>, i32 -> vector<8x128xf32>
    %342 = arith.mulf %339, %328 : vector<8x128xf32>
    %343 = arith.mulf %338, %340 : vector<8x128xf32>
    %344 = arith.addf %342, %343 : vector<8x128xf32>
    %345 = math.tanh %344 : vector<8x128xf32>
    %346 = arith.mulf %341, %345 : vector<8x128xf32>
    %347 = vector.extract_strided_slice %295 {offsets = [24, 0], sizes = [8, 128], strides = [1, 1]} : vector<64x128xf32> to vector<8x128xf32>
    %cst_167 = arith.constant dense<0.000000e+00> : vector<8x128xf32>
    %348 = tpu.matmul %346, %296, %cst_167 {dimension_numbers = #tpu.dot_dimension_numbers<[1], [0], [0], [1], [0, 0, 1, 1], [], []>} : vector<8x128xf32>, vector<128x128xf32>, vector<8x128xf32> -> vector<8x128xf32>
    %349 = arith.addf %347, %348 : vector<8x128xf32>
    %350 = math.tanh %349 : vector<8x128xf32>
    %cst_168 = arith.constant 5.000000e-01 : f32
    %351 = vector.broadcast %cst_168 : f32 to vector<8x128xf32>
    %352 = arith.mulf %351, %350 : vector<8x128xf32>
    %cst_169 = arith.constant 5.000000e-01 : f32
    %353 = vector.broadcast %cst_169 : f32 to vector<8x128xf32>
    %354 = arith.addf %352, %353 : vector<8x128xf32>
    %c112_i32_170 = arith.constant 112 : i32
    %355 = tpu.dynamic_rotate %354 by %c112_i32_170 dim 1 : vector<8x128xf32>, i32 -> vector<8x128xf32>
    %c96_i32_171 = arith.constant 96 : i32
    %356 = tpu.dynamic_rotate %350 by %c96_i32_171 dim 1 : vector<8x128xf32>, i32 -> vector<8x128xf32>
    %c80_i32_172 = arith.constant 80 : i32
    %357 = tpu.dynamic_rotate %354 by %c80_i32_172 dim 1 : vector<8x128xf32>, i32 -> vector<8x128xf32>
    %358 = arith.mulf %355, %344 : vector<8x128xf32>
    %359 = arith.mulf %354, %356 : vector<8x128xf32>
    %360 = arith.addf %358, %359 : vector<8x128xf32>
    %361 = math.tanh %360 : vector<8x128xf32>
    %362 = arith.mulf %357, %361 : vector<8x128xf32>
    %363 = vector.extract_strided_slice %295 {offsets = [32, 0], sizes = [8, 128], strides = [1, 1]} : vector<64x128xf32> to vector<8x128xf32>
    %cst_173 = arith.constant dense<0.000000e+00> : vector<8x128xf32>
    %364 = tpu.matmul %362, %296, %cst_173 {dimension_numbers = #tpu.dot_dimension_numbers<[1], [0], [0], [1], [0, 0, 1, 1], [], []>} : vector<8x128xf32>, vector<128x128xf32>, vector<8x128xf32> -> vector<8x128xf32>
    %365 = arith.addf %363, %364 : vector<8x128xf32>
    %366 = math.tanh %365 : vector<8x128xf32>
    %cst_174 = arith.constant 5.000000e-01 : f32
    %367 = vector.broadcast %cst_174 : f32 to vector<8x128xf32>
    %368 = arith.mulf %367, %366 : vector<8x128xf32>
    %cst_175 = arith.constant 5.000000e-01 : f32
    %369 = vector.broadcast %cst_175 : f32 to vector<8x128xf32>
    %370 = arith.addf %368, %369 : vector<8x128xf32>
    %c112_i32_176 = arith.constant 112 : i32
    %371 = tpu.dynamic_rotate %370 by %c112_i32_176 dim 1 : vector<8x128xf32>, i32 -> vector<8x128xf32>
    %c96_i32_177 = arith.constant 96 : i32
    %372 = tpu.dynamic_rotate %366 by %c96_i32_177 dim 1 : vector<8x128xf32>, i32 -> vector<8x128xf32>
    %c80_i32_178 = arith.constant 80 : i32
    %373 = tpu.dynamic_rotate %370 by %c80_i32_178 dim 1 : vector<8x128xf32>, i32 -> vector<8x128xf32>
    %374 = arith.mulf %371, %360 : vector<8x128xf32>
    %375 = arith.mulf %370, %372 : vector<8x128xf32>
    %376 = arith.addf %374, %375 : vector<8x128xf32>
    %377 = math.tanh %376 : vector<8x128xf32>
    %378 = arith.mulf %373, %377 : vector<8x128xf32>
    %379 = vector.extract_strided_slice %295 {offsets = [40, 0], sizes = [8, 128], strides = [1, 1]} : vector<64x128xf32> to vector<8x128xf32>
    %cst_179 = arith.constant dense<0.000000e+00> : vector<8x128xf32>
    %380 = tpu.matmul %378, %296, %cst_179 {dimension_numbers = #tpu.dot_dimension_numbers<[1], [0], [0], [1], [0, 0, 1, 1], [], []>} : vector<8x128xf32>, vector<128x128xf32>, vector<8x128xf32> -> vector<8x128xf32>
    %381 = arith.addf %379, %380 : vector<8x128xf32>
    %382 = math.tanh %381 : vector<8x128xf32>
    %cst_180 = arith.constant 5.000000e-01 : f32
    %383 = vector.broadcast %cst_180 : f32 to vector<8x128xf32>
    %384 = arith.mulf %383, %382 : vector<8x128xf32>
    %cst_181 = arith.constant 5.000000e-01 : f32
    %385 = vector.broadcast %cst_181 : f32 to vector<8x128xf32>
    %386 = arith.addf %384, %385 : vector<8x128xf32>
    %c112_i32_182 = arith.constant 112 : i32
    %387 = tpu.dynamic_rotate %386 by %c112_i32_182 dim 1 : vector<8x128xf32>, i32 -> vector<8x128xf32>
    %c96_i32_183 = arith.constant 96 : i32
    %388 = tpu.dynamic_rotate %382 by %c96_i32_183 dim 1 : vector<8x128xf32>, i32 -> vector<8x128xf32>
    %c80_i32_184 = arith.constant 80 : i32
    %389 = tpu.dynamic_rotate %386 by %c80_i32_184 dim 1 : vector<8x128xf32>, i32 -> vector<8x128xf32>
    %390 = arith.mulf %387, %376 : vector<8x128xf32>
    %391 = arith.mulf %386, %388 : vector<8x128xf32>
    %392 = arith.addf %390, %391 : vector<8x128xf32>
    %393 = math.tanh %392 : vector<8x128xf32>
    %394 = arith.mulf %389, %393 : vector<8x128xf32>
    %395 = vector.extract_strided_slice %295 {offsets = [48, 0], sizes = [8, 128], strides = [1, 1]} : vector<64x128xf32> to vector<8x128xf32>
    %cst_185 = arith.constant dense<0.000000e+00> : vector<8x128xf32>
    %396 = tpu.matmul %394, %296, %cst_185 {dimension_numbers = #tpu.dot_dimension_numbers<[1], [0], [0], [1], [0, 0, 1, 1], [], []>} : vector<8x128xf32>, vector<128x128xf32>, vector<8x128xf32> -> vector<8x128xf32>
    %397 = arith.addf %395, %396 : vector<8x128xf32>
    %398 = math.tanh %397 : vector<8x128xf32>
    %cst_186 = arith.constant 5.000000e-01 : f32
    %399 = vector.broadcast %cst_186 : f32 to vector<8x128xf32>
    %400 = arith.mulf %399, %398 : vector<8x128xf32>
    %cst_187 = arith.constant 5.000000e-01 : f32
    %401 = vector.broadcast %cst_187 : f32 to vector<8x128xf32>
    %402 = arith.addf %400, %401 : vector<8x128xf32>
    %c112_i32_188 = arith.constant 112 : i32
    %403 = tpu.dynamic_rotate %402 by %c112_i32_188 dim 1 : vector<8x128xf32>, i32 -> vector<8x128xf32>
    %c96_i32_189 = arith.constant 96 : i32
    %404 = tpu.dynamic_rotate %398 by %c96_i32_189 dim 1 : vector<8x128xf32>, i32 -> vector<8x128xf32>
    %c80_i32_190 = arith.constant 80 : i32
    %405 = tpu.dynamic_rotate %402 by %c80_i32_190 dim 1 : vector<8x128xf32>, i32 -> vector<8x128xf32>
    %406 = arith.mulf %403, %392 : vector<8x128xf32>
    %407 = arith.mulf %402, %404 : vector<8x128xf32>
    %408 = arith.addf %406, %407 : vector<8x128xf32>
    %409 = math.tanh %408 : vector<8x128xf32>
    %410 = arith.mulf %405, %409 : vector<8x128xf32>
    %411 = vector.extract_strided_slice %295 {offsets = [56, 0], sizes = [8, 128], strides = [1, 1]} : vector<64x128xf32> to vector<8x128xf32>
    %cst_191 = arith.constant dense<0.000000e+00> : vector<8x128xf32>
    %412 = tpu.matmul %410, %296, %cst_191 {dimension_numbers = #tpu.dot_dimension_numbers<[1], [0], [0], [1], [0, 0, 1, 1], [], []>} : vector<8x128xf32>, vector<128x128xf32>, vector<8x128xf32> -> vector<8x128xf32>
    %413 = arith.addf %411, %412 : vector<8x128xf32>
    %414 = math.tanh %413 : vector<8x128xf32>
    %cst_192 = arith.constant 5.000000e-01 : f32
    %415 = vector.broadcast %cst_192 : f32 to vector<8x128xf32>
    %416 = arith.mulf %415, %414 : vector<8x128xf32>
    %cst_193 = arith.constant 5.000000e-01 : f32
    %417 = vector.broadcast %cst_193 : f32 to vector<8x128xf32>
    %418 = arith.addf %416, %417 : vector<8x128xf32>
    %c112_i32_194 = arith.constant 112 : i32
    %419 = tpu.dynamic_rotate %418 by %c112_i32_194 dim 1 : vector<8x128xf32>, i32 -> vector<8x128xf32>
    %c96_i32_195 = arith.constant 96 : i32
    %420 = tpu.dynamic_rotate %414 by %c96_i32_195 dim 1 : vector<8x128xf32>, i32 -> vector<8x128xf32>
    %c80_i32_196 = arith.constant 80 : i32
    %421 = tpu.dynamic_rotate %418 by %c80_i32_196 dim 1 : vector<8x128xf32>, i32 -> vector<8x128xf32>
    %422 = arith.mulf %419, %408 : vector<8x128xf32>
    %423 = arith.mulf %418, %420 : vector<8x128xf32>
    %424 = arith.addf %422, %423 : vector<8x128xf32>
    %425 = math.tanh %424 : vector<8x128xf32>
    %426 = arith.mulf %421, %425 : vector<8x128xf32>
    %c0_197 = arith.constant 0 : index
    %c0_198 = arith.constant 0 : index
    %427 = vector.load %arg10[%c0_197, %c0_198] : memref<128x128xf32, #tpu.memory_space<vmem>>, vector<128x128xf32>
    %cst_199 = arith.constant dense<0.000000e+00> : vector<8x128xf32>
    %428 = tpu.matmul %426, %427, %cst_199 {dimension_numbers = #tpu.dot_dimension_numbers<[1], [0], [0], [1], [0, 0, 1, 1], [], []>} : vector<8x128xf32>, vector<128x128xf32>, vector<8x128xf32> -> vector<8x128xf32>
    %c0_200 = arith.constant 0 : index
    %c0_201 = arith.constant 0 : index
    %429 = vector.load %arg11[%c0_200, %c0_201] : memref<1x128xf32, #tpu.memory_space<vmem>>, vector<1x128xf32>
    %430 = vector.broadcast %429 : vector<1x128xf32> to vector<8x128xf32>
    %431 = arith.addf %428, %430 : vector<8x128xf32>
    %c0_202 = arith.constant 0 : index
    %c0_203 = arith.constant 0 : index
    %432 = vector.load %arg12[%c0_202, %c0_203] : memref<8x128xf32, #tpu.memory_space<vmem>>, vector<8x128xf32>
    tpu.vector_store %arg12[%c0_202, %c0_203], %431 {strides = array<i32>} : memref<8x128xf32, #tpu.memory_space<vmem>>, vector<8x128xf32>,
    return
  }
}

</mosaic_0001>

<bundles_post_ra>
// kernel: mllstm_forward.1
= control target key start
LH: loop header
LB: loop body
LE: loop exit
PB: predicated region body
PF: predicated region fallthrough
CT: control target
= control target key end

     0   :  { %17 = vsyncpa [#allocation4], 0  ;;  %s6181_s0 = inlined_call_operand.vmem [shape: f32[64,128], index: 0, kind: input, shape index: {}]   ;;  %s6182_s1 = inlined_call_operand.vmem [shape: f32[128,128], index: 1, kind: input, shape index: {}]   ;;  %s6183_s2 = inlined_call_operand.hbm [shape: f32[128,128], index: 2, kind: input, shape index: {}]   ;;  %s6184_s3 = inlined_call_operand.vmem [shape: f32[1,128], index: 3, kind: input, shape index: {}]   ;;  %s6185_s4 = inlined_call_operand.hbm [shape: f32[128,128], index: 4, kind: input, shape index: {}]   ;;  %s6186_s5 = inlined_call_operand.hbm [shape: f32[128,128], index: 5, kind: input, shape index: {}]   ;;  %s6187_s6 = inlined_call_operand.vmem [shape: f32[1,128], index: 6, kind: input, shape index: {}]   ;;  %s6188_s7 = inlined_call_operand.hbm [shape: f32[128,128], index: 7, kind: input, shape index: {}]   ;;  %s6189_s8 = inlined_call_operand.hbm [shape: f32[128,128], index: 8, kind: input, shape index: {}]   ;;  %s6190_s9 = inlined_call_operand.vmem [shape: f32[1,128], index: 9, kind: input, shape index: {}]   ;;  %s6191_s10 = inlined_call_operand.hbm [shape: f32[128,128], index: 10, kind: input, shape index: {}]   ;;  %s6192_s11 = inlined_call_operand.vmem [shape: f32[1,128], index: 11, kind: input, shape index: {}]   ;;  %s6193_s12 = inlined_call_operand.vmem [shape: f32[8,128], index: 12, kind: output, shape index: {}]  }
   0x1   :  { %18 = vsyncpa [#allocation6], 0 }
   0x2   :  { %19 = vsyncpa [#allocation9], 0 }
   0x3   :  { %20 = vsyncpa [#allocation12], 0  ;;  %s5189_s21 = smov [#allocation5]   ;;  %s5190_s23 = smov [#allocation8]  }
   0x4   :  { %s44_s22 = sshll.u32 %s5189_s21, 4  ;;  %s70_s24 = sshll.u32 %s5190_s23, 4  ;;  %s45_s22 = int_to_ptr.vmem [resolvable:$true] %s44_s22  ;;  %s5269_s24 = int_to_ptr.vmem [resolvable:$true] %s70_s24 }
   0x5   :  { %s5049_s27 = scalar_lea.hbm %s6185_s4, 2048 }
   0x6   :  { %p5050_p0 = scmp.ne.s32.totalorder %s6185_s4, %s5049_s27  ;;  %p5053_p1 = scmp.lt.u32.totalorder %s5049_s27, %s6185_s4 }
   0x8   :  { %p5055_p2 = pnand %p5053_p1, %p5050_p0 }
   0xa   :  { %5058 = shalt.err (!%p5055_p2)
}
   0xb   :  { %s5059_s14 = scalar_lea.vmem %s45_s22, 2048  ;;  %p5064_p4 = scmp.lt.s32.totalorder %s45_s22, %s45_s22 }
   0xc   :  { %p5060_p3 = scmp.ne.s32.totalorder %s45_s22, %s5059_s14  ;;  %p5065_p5 = scmp.lt.s32.totalorder %s5059_s14, %s5059_s14 }
   0xe   :  { %p5066_p6 = por %p5065_p5, %p5064_p4 }
  0x10   :  { %p5067_p7 = pnand %p5066_p6, %p5060_p3 }
  0x12   :  { %5070 = shalt.err (!%p5067_p7)
}
  0x13   :  { %s5191_s15 = smov 128   ;;  %s5192_s16 = smov 8  }
  0x14   :  { %50 = dma.hbm_to_vmem [thread:$0]  %s6185_s4, 2048, %s45_s22, [#allocation6], %s5191_s15, %s5191_s15, %s5192_s16  }
  0x15   :  { %s5071_s21 = scalar_lea.hbm %s6188_s7, 2048 }
  0x16   :  { %p5072_p8 = scmp.ne.s32.totalorder %s6188_s7, %s5071_s21  ;;  %p5075_p9 = scmp.lt.u32.totalorder %s5071_s21, %s6188_s7 }
  0x18   :  { %p5077_p10 = pnand %p5075_p9, %p5072_p8 }
  0x1a   :  { %5080 = shalt.err (!%p5077_p10)
}
  0x1b   :  { %s5081_s28 = scalar_lea.vmem %s5269_s24, 2048  ;;  %p5086_p12 = scmp.lt.s32.totalorder %s5269_s24, %s5269_s24 }
  0x1c   :  { %p5082_p11 = scmp.ne.s32.totalorder %s5269_s24, %s5081_s28  ;;  %p5087_p13 = scmp.lt.s32.totalorder %s5081_s28, %s5081_s28 }
  0x1e   :  { %p5088_p0 = por %p5087_p13, %p5086_p12 }
  0x20   :  { %p5089_p1 = pnand %p5088_p0, %p5082_p11 }
  0x22   :  { %5092 = shalt.err (!%p5089_p1)
}
  0x23   :  { %76 = dma.hbm_to_vmem [thread:$0]  %s6188_s7, 2048, %s5269_s24, [#allocation9], %s5191_s15, %s5191_s15, %s5192_s16  }
  0x24   :  { %s5193_s29 = smov [#allocation3]   ;;  %s5194_s13 = smov [#allocation7]  }
  0x25   :  { %s30_s30 = sshll.u32 %s5193_s29, 4  ;;  %s56_s14 = sshll.u32 %s5194_s13, 4  ;;  %s31_s30 = int_to_ptr.vmem [resolvable:$true] %s30_s30  ;;  %s5306_s14 = int_to_ptr.vmem [resolvable:$true] %s56_s14 }
  0x26   :  { %s5093_s19 = scalar_lea.hbm %s6183_s2, 2048 }
  0x27   :  { %p5094_p2 = scmp.ne.s32.totalorder %s6183_s2, %s5093_s19  ;;  %p5097_p3 = scmp.lt.u32.totalorder %s5093_s19, %s6183_s2 }
  0x29   :  { %p5099_p4 = pnand %p5097_p3, %p5094_p2 }
  0x2b   :  { %5102 = shalt.err (!%p5099_p4)
}
  0x2c   :  { %s5103_s7 = scalar_lea.vmem %s31_s30, 2048  ;;  %p5108_p6 = scmp.lt.s32.totalorder %s31_s30, %s31_s30 }
  0x2d   :  { %p5104_p5 = scmp.ne.s32.totalorder %s31_s30, %s5103_s7  ;;  %p5109_p7 = scmp.lt.s32.totalorder %s5103_s7, %s5103_s7 }
  0x2f   :  { %p5110_p8 = por %p5109_p7, %p5108_p6 }
  0x31   :  { %p5111_p9 = pnand %p5110_p8, %p5104_p5 }
  0x33   :  { %5114 = shalt.err (!%p5111_p9)
}
  0x34   :  { %36 = dma.hbm_to_vmem [thread:$0]  %s6183_s2, 2048, %s31_s30, [#allocation4], %s5191_s15, %s5191_s15, %s5192_s16  }
  0x35   :  { %s5115_s4 = scalar_lea.hbm %s6186_s5, 2048 }
  0x36   :  { %p5116_p10 = scmp.ne.s32.totalorder %s6186_s5, %s5115_s4  ;;  %p5119_p11 = scmp.lt.u32.totalorder %s5115_s4, %s6186_s5 }
  0x38   :  { %p5121_p12 = pnand %p5119_p11, %p5116_p10 }
  0x3a   :  { %5124 = shalt.err (!%p5121_p12)
}
  0x3b   :  { %s5125_s18 = scalar_lea.vmem %s5306_s14, 2048  ;;  %p5130_p0 = scmp.lt.s32.totalorder %s5306_s14, %s5306_s14 }
  0x3c   :  { %p5126_p13 = scmp.ne.s32.totalorder %s5306_s14, %s5125_s18  ;;  %p5131_p1 = scmp.lt.s32.totalorder %s5125_s18, %s5125_s18 }
  0x3e   :  { %p5132_p2 = por %p5131_p1, %p5130_p0 }
  0x40   :  { %p5133_p3 = pnand %p5132_p2, %p5126_p13 }
  0x42   :  { %5136 = shalt.err (!%p5133_p3)
}
  0x43   :  { %62 = dma.hbm_to_vmem [thread:$0]  %s6186_s5, 2048, %s5306_s14, [#allocation6], %s5191_s15, %s5191_s15, %s5192_s16  }
  0x44   :  { %s5195_s19 = smov [#allocation10]   ;;  %s5196_s21 = smov [#allocation11]  }
  0x45   :  { %s82_s20 = sshll.u32 %s5195_s19, 4  ;;  %s96_s23 = sshll.u32 %s5196_s21, 4  ;;  %s83_s20 = int_to_ptr.vmem [resolvable:$true] %s82_s20  ;;  %s5343_s23 = int_to_ptr.vmem [resolvable:$true] %s96_s23 }
  0x46   :  { %s5137_s24 = scalar_lea.hbm %s6189_s8, 2048 }
  0x47   :  { %p5138_p4 = scmp.ne.s32.totalorder %s6189_s8, %s5137_s24  ;;  %p5141_p5 = scmp.lt.u32.totalorder %s5137_s24, %s6189_s8 }
  0x49   :  { %p5143_p6 = pnand %p5141_p5, %p5138_p4 }
  0x4b   :  { %5146 = shalt.err (!%p5143_p6)
}
  0x4c   :  { %s5147_s5 = scalar_lea.vmem %s83_s20, 2048  ;;  %p5152_p8 = scmp.lt.s32.totalorder %s83_s20, %s83_s20 }
  0x4d   :  { %p5148_p7 = scmp.ne.s32.totalorder %s83_s20, %s5147_s5  ;;  %p5153_p9 = scmp.lt.s32.totalorder %s5147_s5, %s5147_s5 }
  0x4f   :  { %p5154_p10 = por %p5153_p9, %p5152_p8 }
  0x51   :  { %p5155_p11 = pnand %p5154_p10, %p5148_p7 }
  0x53   :  { %5158 = shalt.err (!%p5155_p11)
}
  0x54   :  { %88 = dma.hbm_to_vmem [thread:$0]  %s6189_s8, 2048, %s83_s20, [#allocation9], %s5191_s15, %s5191_s15, %s5192_s16  }
  0x55   :  { %s5159_s17 = scalar_lea.hbm %s6191_s10, 2048 }
  0x56   :  { %p5160_p12 = scmp.ne.s32.totalorder %s6191_s10, %s5159_s17  ;;  %p5163_p13 = scmp.lt.u32.totalorder %s5159_s17, %s6191_s10 }
  0x58   :  { %p5165_p0 = pnand %p5163_p13, %p5160_p12 }
  0x5a   :  { %5168 = shalt.err (!%p5165_p0)
}
  0x5b   :  { %s5169_s21 = scalar_lea.vmem %s5343_s23, 2048  ;;  %p5174_p2 = scmp.lt.s32.totalorder %s5343_s23, %s5343_s23 }
  0x5c   :  { %p5170_p1 = scmp.ne.s32.totalorder %s5343_s23, %s5169_s21  ;;  %p5175_p3 = scmp.lt.s32.totalorder %s5169_s21, %s5169_s21 }
  0x5e   :  { %p5176_p4 = por %p5175_p3, %p5174_p2 }
  0x60   :  { %p5177_p5 = pnand %p5176_p4, %p5170_p1 }
  0x62   :  { %5180 = shalt.err (!%p5177_p5)
}
  0x63   :  { %102 = dma.hbm_to_vmem [thread:$0]  %s6191_s10, 2048, %s5343_s23, [#allocation12], %s5191_s15, %s5191_s15, %s5192_s16  }
  0x64   :  { %5181 = dma.done.wait [#allocation4], 2048  }
  0x65   :  { %5182 = vsyncadd [#allocation4], 4294965248 }
  0x66   :  { %5183 = dma.done.wait [#allocation6], 4096  }
  0x67   :  { %5184 = vsyncadd [#allocation6], 4294963200 }
  0x68   :  { %5185 = dma.done.wait [#allocation9], 4096  }
  0x69   :  { %5186 = vsyncadd [#allocation9], 4294963200 }
  0x6a   :  { %5187 = dma.done.wait [#allocation12], 2048  }
  0x6b   :  { %5188 = vsyncadd [#allocation12], 4294965248  ;;  %v5197_v0 = vmov 0.0|0.0   ;;  %vm5198_vm0 = vmmov 0   ;;  %v5199_v1 = vmov 0.0   ;;  %v131_v2 = vld [vmem:[%s6182_s1] sm:$0xff] }
  0x6c   :  { %4274 = vmatprep.subr.bf16.mxu1 %v5197_v0  ;;  %3311 = vmatprep.mubr.msk.f32.mxu1 %vm5198_vm0, %v5199_v1  ;;  %v132_v3 = vld [vmem:[%s6182_s1 + $0x8] sm:$0xff]  ;;  %v259_v4 = vld [vmem:[#allocation3] sm:$0xff]  ;;  %v133_v7 = vld [vmem:[%s6182_s1 + $0x10] sm:$0xff]  ;;  %v5200_v52 = vmov 1.0   ;;  %s5201_s25 = smov 96   ;;  %s5202_s7 = smov 80  }
  0x6d   :  { %v4242_v5 = vpack.c.bf16 %v132_v3, %v131_v2  ;;  %v260_v6 = vld [vmem:[#allocation3 + $0x8] sm:$0xff]  ;;  %v134_v8 = vld [vmem:[%s6182_s1 + $0x18] sm:$0xff]  ;;  %v261_v11 = vld [vmem:[#allocation3 + $0x10] sm:$0xff]  ;;  %s5203_s10 = smov 112  }
  0x6e   :  { %v5395_v9 = vpack.c.bf16 %v260_v6, %v259_v4  ;;  %v4246_v10 = vpack.c.bf16 %v134_v8, %v133_v7  ;;  %v262_v12 = vld [vmem:[#allocation3 + $0x18] sm:$0xff]  ;;  %v135_v13 = vld [vmem:[%s6182_s1 + $0x20] sm:$0xff]  ;;  %v136_v14 = vld [vmem:[%s6182_s1 + $0x28] sm:$0xff] }
  0x6f   :  { %4243 = vmatprep.subr.bf16.mxu0 %v4242_v5  ;;  %v5404_v15 = vpack.c.bf16 %v262_v12, %v261_v11  ;;  %v4250_v16 = vpack.c.bf16 %v136_v14, %v135_v13  ;;  %v263_v17 = vld [vmem:[#allocation3 + $0x20] sm:$0xff]  ;;  %v264_v18 = vld [vmem:[#allocation3 + $0x28] sm:$0xff]  ;;  %v137_v19 = vld [vmem:[%s6182_s1 + $0x30] sm:$0xff] }
  0x70   :  { %4245 = vmatpush3.bf16.msra.mxu0 %v4242_v5  ;;  %4276 = vmatpush3.bf16.msra.mxu1 %v5395_v9  ;;  %v138_v20 = vld [vmem:[%s6182_s1 + $0x38] sm:$0xff]  ;;  %v5414_v21 = vpack.c.bf16 %v264_v18, %v263_v17  ;;  %v265_v23 = vld [vmem:[#allocation3 + $0x30] sm:$0xff]  ;;  %v139_v25 = vld [vmem:[%s6182_s1 + $0x40] sm:$0xff] }
  0x71   :  { %4247 = vmatprep.subr.bf16.mxu0 %v4246_v10  ;;  %4277 = vmatprep.subr.bf16.mxu1 %v5197_v0  ;;  %v4254_v22 = vpack.c.bf16 %v138_v20, %v137_v19  ;;  %v266_v24 = vld [vmem:[#allocation3 + $0x38] sm:$0xff]  ;;  %v140_v26 = vld [vmem:[%s6182_s1 + $0x48] sm:$0xff]  ;;  %v123_v27 = vld [vmem:[%s6181_s0] sm:$0xff] }
  0x72   :  { %3267 = vmatprep.mubr.f32.mxu0 %v123_v27  ;;  %v5427_v28 = vpack.c.bf16 %v266_v24, %v265_v23  ;;  %v4258_v29 = vpack.c.bf16 %v140_v26, %v139_v25  ;;  %v267_v30 = vld [vmem:[#allocation3 + $0x40] sm:$0xff]  ;;  %v268_v31 = vld [vmem:[#allocation3 + $0x48] sm:$0xff]  ;;  %v141_v32 = vld [vmem:[%s6182_s1 + $0x50] sm:$0xff] }
  0x73   :  { %v142_v33 = vld [vmem:[%s6182_s1 + $0x58] sm:$0xff]  ;;  %v5437_v34 = vpack.c.bf16 %v268_v31, %v267_v30  ;;  %v269_v36 = vld [vmem:[#allocation3 + $0x50] sm:$0xff]  ;;  %v143_v38 = vld [vmem:[%s6182_s1 + $0x60] sm:$0xff] }
  0x74   :  { %4249 = vmatpush3.bf16.msra.mxu0 %v4246_v10  ;;  %4279 = vmatpush3.bf16.msra.mxu1 %v5404_v15  ;;  %v4262_v35 = vpack.c.bf16 %v142_v33, %v141_v32  ;;  %v270_v37 = vld [vmem:[#allocation3 + $0x58] sm:$0xff]  ;;  %v144_v39 = vld [vmem:[%s6182_s1 + $0x68] sm:$0xff]  ;;  %v271_v42 = vld [vmem:[#allocation3 + $0x60] sm:$0xff] }
  0x75   :  { %4251 = vmatprep.subr.bf16.mxu0 %v4250_v16  ;;  %4280 = vmatprep.subr.bf16.mxu1 %v5197_v0  ;;  %v5447_v40 = vpack.c.bf16 %v270_v37, %v269_v36  ;;  %v4266_v41 = vpack.c.bf16 %v144_v39, %v143_v38  ;;  %v272_v43 = vld [vmem:[#allocation3 + $0x68] sm:$0xff]  ;;  %v145_v44 = vld [vmem:[%s6182_s1 + $0x70] sm:$0xff]  ;;  %v146_v45 = vld [vmem:[%s6182_s1 + $0x78] sm:$0xff] }
  0x76   :  { %v5457_v46 = vpack.c.bf16 %v272_v43, %v271_v42  ;;  %v4270_v47 = vpack.c.bf16 %v146_v45, %v145_v44  ;;  %v273_v48 = vld [vmem:[#allocation3 + $0x70] sm:$0xff]  ;;  %v274_v49 = vld [vmem:[#allocation3 + $0x78] sm:$0xff]  ;;  %v124_v51 = vld [vmem:[%s6181_s0 + $0x8] sm:$0xff] }
  0x77   :  { %v5461_v50 = vpack.c.bf16 %v274_v49, %v273_v48  ;;  %v5508_v53 = vld [vmem:[%s6184_s3] ss:$0 sm:$0xff]  ;;  %v125_v60 = vld [vmem:[%s6181_s0 + $0x10] sm:$0xff]  ;;  %v126_v61 = vld [vmem:[%s6181_s0 + $0x18] sm:$0xff] }
  0x78   :  { %4253 = vmatpush3.bf16.msra.mxu0 %v4250_v16  ;;  %4282 = vmatpush3.bf16.msra.mxu1 %v5414_v21  ;;  %v127_v62 = vld [vmem:[%s6181_s0 + $0x20] sm:$0xff]  ;;  %v128_v63 = vld [vmem:[%s6181_s0 + $0x28] sm:$0xff]  ;;  %v129_v2 = vld [vmem:[%s6181_s0 + $0x30] sm:$0xff] }
  0x79   :  { %4255 = vmatprep.subr.bf16.mxu0 %v4254_v22  ;;  %4283 = vmatprep.subr.bf16.mxu1 %v5197_v0  ;;  %v130_v3 = vld [vmem:[%s6181_s0 + $0x38] sm:$0xff] }
  0x7c   :  { %4257 = vmatpush3.bf16.msra.mxu0 %v4254_v22  ;;  %4285 = vmatpush3.bf16.msra.mxu1 %v5427_v28 }
  0x7d   :  { %4259 = vmatprep.subr.bf16.mxu0 %v4258_v29  ;;  %4286 = vmatprep.subr.bf16.mxu1 %v5197_v0 }
  0x80   :  { %4261 = vmatpush3.bf16.msra.mxu0 %v4258_v29  ;;  %4288 = vmatpush3.bf16.msra.mxu1 %v5437_v34 }
  0x81   :  { %4263 = vmatprep.subr.bf16.mxu0 %v4262_v35  ;;  %4289 = vmatprep.subr.bf16.mxu1 %v5197_v0 }
  0x84   :  { %4265 = vmatpush3.bf16.msra.mxu0 %v4262_v35  ;;  %4291 = vmatpush3.bf16.msra.mxu1 %v5447_v40 }
  0x85   :  { %4267 = vmatprep.subr.bf16.mxu0 %v4266_v41  ;;  %4292 = vmatprep.subr.bf16.mxu1 %v5197_v0 }
  0x88   :  { %4269 = vmatpush3.bf16.msra.mxu0 %v4266_v41  ;;  %4294 = vmatpush3.bf16.msra.mxu1 %v5457_v46 }
  0x89   :  { %4271 = vmatprep.subr.bf16.mxu0 %v4270_v47  ;;  %4295 = vmatprep.subr.bf16.mxu1 %v5197_v0 }
  0x8c   :  { %4273 = vmatpush3.bf16.msra.mxu0 %v4270_v47  ;;  %4297 = vmatpush3.bf16.msra.mxu1 %v5461_v50 }
  0x8d   :  { %4298 = vmatprep.subr.bf16.mxu0 %v5197_v0  ;;  %4322 = vmatprep.subr.bf16.mxu1 %v5197_v0 }
  0x8f   :  { %3268 = vmatmul.mubr.f32.vlgmr.msra.gmra.mrb[0].mxu0 %v124_v51  ;;  %3312 = vmatmul.mubr.f32.vlgmr.msra.gmra.mrb[0].mxu1 %v5200_v52 }
  0x90   :  { %4300 = vmatpush3.bf16.msra.mxu0 %v5395_v9  ;;  %4324 = vmatpush3.bf16.msra.mxu1 %v5395_v9 }
  0x91   :  { %4301 = vmatprep.subr.bf16.mxu0 %v5197_v0  ;;  %4325 = vmatprep.subr.bf16.mxu1 %v5197_v0 }
  0x92   :  { %3381 = vmatprep.mubr.msk.f32.mxu1 %vm5198_vm0, %v5199_v1  ;;  %3270 = vmatprep.mubr.f32.mxu0 %v125_v60 }
  0x93   :  { %3271 = vmatmul.mubr.f32.gmra.mrb[2].mxu0 %v126_v61 }
  0x94   :  { %4303 = vmatpush3.bf16.msra.mxu0 %v5404_v15  ;;  %4327 = vmatpush3.bf16.msra.mxu1 %v5404_v15 }
  0x95   :  { %4304 = vmatprep.subr.bf16.mxu0 %v5197_v0  ;;  %4328 = vmatprep.subr.bf16.mxu1 %v5197_v0 }
  0x96   :  { %3273 = vmatprep.mubr.f32.mxu0 %v127_v62 }
  0x97   :  { %3274 = vmatmul.mubr.f32.gmra.mrb[4].mxu0 %v128_v63 }
  0x98   :  { %4306 = vmatpush3.bf16.msra.mxu0 %v5414_v21  ;;  %4330 = vmatpush3.bf16.msra.mxu1 %v5414_v21 }
  0x99   :  { %4307 = vmatprep.subr.bf16.mxu0 %v5197_v0  ;;  %4331 = vmatprep.subr.bf16.mxu1 %v5197_v0 }
  0x9a   :  { %3276 = vmatprep.mubr.f32.mxu0 %v129_v2 }
  0x9b   :  { %3277 = vmatmul.mubr.f32.gmra.mrb[6].mxu0 %v130_v3 }
  0x9c   :  { %4309 = vmatpush3.bf16.msra.mxu0 %v5427_v28  ;;  %4333 = vmatpush3.bf16.msra.mxu1 %v5427_v28 }
  0x9d   :  { %4310 = vmatprep.subr.bf16.mxu0 %v5197_v0  ;;  %4334 = vmatprep.subr.bf16.mxu1 %v5197_v0 }
  0x9e   :  { %3346 = vmatprep.mubr.msk.f32.mxu0 %vm5198_vm0, %v5199_v1 }
  0xa0   :  { %4312 = vmatpush3.bf16.msra.mxu0 %v5437_v34  ;;  %4336 = vmatpush3.bf16.msra.mxu1 %v5437_v34 }
  0xa1   :  { %4313 = vmatprep.subr.bf16.mxu0 %v5197_v0  ;;  %4337 = vmatprep.subr.bf16.mxu1 %v5197_v0 }
  0xa4   :  { %4315 = vmatpush3.bf16.msra.mxu0 %v5447_v40  ;;  %4339 = vmatpush3.bf16.msra.mxu1 %v5447_v40 }
  0xa5   :  { %4316 = vmatprep.subr.bf16.mxu0 %v5197_v0  ;;  %4340 = vmatprep.subr.bf16.mxu1 %v5197_v0 }
  0xa8   :  { %4318 = vmatpush3.bf16.msra.mxu0 %v5457_v46  ;;  %4342 = vmatpush3.bf16.msra.mxu1 %v5457_v46 }
  0xa9   :  { %4319 = vmatprep.subr.bf16.mxu0 %v5197_v0  ;;  %4343 = vmatprep.subr.bf16.mxu1 %v5197_v0 }
  0xac   :  { %4321 = vmatpush3.bf16.msra.mxu0 %v5461_v50  ;;  %4345 = vmatpush3.bf16.msra.mxu1 %v5461_v50 }
  0xad   :  { %4346 = vmatprep.subr.bf16.mxu0 %v5197_v0  ;;  %4370 = vmatprep.subr.bf16.mxu1 %v5197_v0 }
 0x162   :  { %v3269_v54 = vpop.f32.mrb[0].mxu0  ;;  %v341_v55 = vpop.f32.mrb[0].mxu1 }
 0x163   :  { %v220_v56 = vpop.f32.mrb[1].mxu0  ;;  %v3313_v57 = vpop.f32.mrb[1].mxu1  ;;  %v226_v23 = vadd.f32 %v3269_v54, %v5508_v53 }
 0x164   :  { %v221_v58 = vadd.f32 %v5508_v53, %v220_v56 }
 0x166   :  { %v345_v59 = vadd.f32 %v341_v55, %v221_v58  ;;  %v5555_v16 = vpop.f32.mrb[2].mxu0 }
 0x167   :  { %v230_v17 = vpop.f32.mrb[3].mxu0  ;;  %v236_v60 = vadd.f32 %v5555_v16, %v5508_v53 }
 0x168   :  { %4953 = vtanh.f32 %v345_v59  ;;  %v231_v41 = vadd.f32 %v5508_v53, %v230_v17 }
 0x16a   :  { %v5557_v18 = vpop.f32.mrb[4].mxu0 }
 0x16b   :  { %v5559_v19 = vpop.f32.mrb[5].mxu0 }
 0x16c   :  { %v241_v16 = vadd.f32 %v5508_v53, %v5559_v19 }
 0x16e   :  { %v5561_v20 = vpop.f32.mrb[6].mxu0 }
 0x16f   :  { %v5563_v22 = vpop.f32.mrb[7].mxu0 }
 0x172   :  { %v4954_v4 = vpop.eup %4953 }
 0x173   :  { %351 = vrot.lane.b32.xlu0 %v4954_v4, %s5201_s25  ;;  %v347_v5 = vmul.f32 0.5, %v4954_v4 }
 0x175   :  { %v348_v6 = vadd.f32 0.5, %v347_v5 }
 0x177   :  { %353 = vrot.lane.b32.xlu1 %v348_v6, %s5202_s7  ;;  %349 = vrot.lane.b32.xlu0 %v348_v6, %s5203_s10 }
 0x1e5   :  { %v352_v7 = vpop.permute.xlu0 %351 }
 0x1e6   :  { %v355_v8 = vmul.f32 %v352_v7, %v348_v6 }
 0x1e9   :  { %v350_v10 = vpop.permute.xlu0 %349  ;;  %v354_v13 = vpop.permute.xlu1 %353 }
 0x1ea   :  { %v356_v11 = vadd.f32 %v355_v8, %v350_v10 }
 0x1ec   :  { %4955 = vtanh.f32 %v356_v11 }
 0x1f6   :  { %v4956_v12 = vpop.eup %4955 }
 0x1f7   :  { %v5534_v14 = vmul.f32 %v4956_v12, %v354_v13 }
 0x1f9   :  { %3347 = vmatmul.mubr.f32.vlgmr.msra.gmra.mrb[8].mxu0 %v5534_v14 }
 0x1fa   :  { %4348 = vmatpush3.bf16.msra.mxu0 %v5395_v9  ;;  %3416 = vmatprep.mubr.msk.f32.mxu0 %vm5198_vm0, %v5199_v1 }
 0x1fb   :  { %4349 = vmatprep.subr.bf16.mxu0 %v5197_v0 }
 0x1fe   :  { %4351 = vmatpush3.bf16.msra.mxu0 %v5404_v15 }
 0x1ff   :  { %4352 = vmatprep.subr.bf16.mxu0 %v5197_v0 }
 0x202   :  { %4354 = vmatpush3.bf16.msra.mxu0 %v5414_v21 }
 0x203   :  { %4355 = vmatprep.subr.bf16.mxu0 %v5197_v0 }
 0x206   :  { %4357 = vmatpush3.bf16.msra.mxu0 %v5427_v28 }
 0x207   :  { %4358 = vmatprep.subr.bf16.mxu0 %v5197_v0 }
 0x20a   :  { %4360 = vmatpush3.bf16.msra.mxu0 %v5437_v34 }
 0x20b   :  { %4361 = vmatprep.subr.bf16.mxu0 %v5197_v0 }
 0x20e   :  { %4363 = vmatpush3.bf16.msra.mxu0 %v5447_v40 }
 0x20f   :  { %4364 = vmatprep.subr.bf16.mxu0 %v5197_v0 }
 0x212   :  { %4366 = vmatpush3.bf16.msra.mxu0 %v5457_v46 }
 0x213   :  { %4367 = vmatprep.subr.bf16.mxu0 %v5197_v0 }
 0x216   :  { %4369 = vmatpush3.bf16.msra.mxu0 %v5461_v50 }
 0x217   :  { %4394 = vmatprep.subr.bf16.mxu0 %v5197_v0 }
 0x2cc   :  { %v426_v24 = vpop.f32.mrb[8].mxu0 }
 0x2cd   :  { %v430_v25 = vadd.f32 %v426_v24, %v226_v23  ;;  %v3348_v26 = vpop.f32.mrb[9].mxu0 }
 0x2cf   :  { %4957 = vtanh.f32 %v430_v25 }
 0x2d9   :  { %v4958_v27 = vpop.eup %4957 }
 0x2da   :  { %436 = vrot.lane.b32.xlu0 %v4958_v27, %s5201_s25  ;;  %v432_v29 = vmul.f32 0.5, %v4958_v27 }
 0x2dc   :  { %v433_v30 = vadd.f32 0.5, %v432_v29 }
 0x2de   :  { %434 = vrot.lane.b32.xlu1 %v433_v30, %s5203_s10 }
 0x2e2   :  { %438 = vrot.lane.b32.xlu1 %v433_v30, %s5202_s7 }
 0x34c   :  { %v437_v31 = vpop.permute.xlu0 %436 }
 0x34d   :  { %v441_v33 = vmul.f32 %v437_v31, %v433_v30 }
 0x350   :  { %v435_v32 = vpop.permute.xlu1 %434 }
 0x351   :  { %v440_v35 = vmul.f32 %v435_v32, %v356_v11 }
 0x353   :  { %v442_v36 = vadd.f32 %v441_v33, %v440_v35 }
 0x354   :  { %v439_v38 = vpop.permute.xlu1 %438 }
 0x355   :  { %4959 = vtanh.f32 %v442_v36 }
 0x35f   :  { %v4960_v37 = vpop.eup %4959 }
 0x360   :  { %v5569_v39 = vmul.f32 %v4960_v37, %v439_v38  ;;  %v971_v38 = vld [vmem:[#allocation5 + $0x8] sm:$0xff] }
 0x362   :  { %3382 = vmatmul.mubr.f32.vlgmr.msra.gmra.mrb[2].mxu1 %v5569_v39 }
 0x363   :  { %4372 = vmatpush3.bf16.msra.mxu1 %v5395_v9  ;;  %3451 = vmatprep.mubr.msk.f32.mxu1 %vm5198_vm0, %v5199_v1 }
 0x364   :  { %4373 = vmatprep.subr.bf16.mxu1 %v5197_v0 }
 0x367   :  { %4375 = vmatpush3.bf16.msra.mxu1 %v5404_v15 }
 0x368   :  { %4376 = vmatprep.subr.bf16.mxu1 %v5197_v0 }
 0x36b   :  { %4378 = vmatpush3.bf16.msra.mxu1 %v5414_v21 }
 0x36c   :  { %4379 = vmatprep.subr.bf16.mxu1 %v5197_v0 }
 0x36f   :  { %4381 = vmatpush3.bf16.msra.mxu1 %v5427_v28 }
 0x370   :  { %4382 = vmatprep.subr.bf16.mxu1 %v5197_v0 }
 0x373   :  { %4384 = vmatpush3.bf16.msra.mxu1 %v5437_v34 }
 0x374   :  { %4385 = vmatprep.subr.bf16.mxu1 %v5197_v0 }
 0x377   :  { %4387 = vmatpush3.bf16.msra.mxu1 %v5447_v40 }
 0x378   :  { %4388 = vmatprep.subr.bf16.mxu1 %v5197_v0 }
 0x37b   :  { %4390 = vmatpush3.bf16.msra.mxu1 %v5457_v46 }
 0x37c   :  { %4391 = vmatprep.subr.bf16.mxu1 %v5197_v0 }
 0x37f   :  { %4393 = vmatpush3.bf16.msra.mxu1 %v5461_v50 }
 0x380   :  { %4418 = vmatprep.subr.bf16.mxu1 %v5197_v0 }
 0x435   :  { %v512_v42 = vpop.f32.mrb[2].mxu1 }
 0x436   :  { %v516_v43 = vadd.f32 %v512_v42, %v231_v41  ;;  %v3383_v44 = vpop.f32.mrb[3].mxu1 }
 0x438   :  { %4961 = vtanh.f32 %v516_v43 }
 0x442   :  { %v4962_v45 = vpop.eup %4961 }
 0x443   :  { %522 = vrot.lane.b32.xlu1 %v4962_v45, %s5201_s25  ;;  %v518_v47 = vmul.f32 0.5, %v4962_v45  ;;  %v972_v45 = vld [vmem:[#allocation5 + $0x10] sm:$0xff] }
 0x445   :  { %v519_v48 = vadd.f32 0.5, %v518_v47  ;;  %v973_v47 = vld [vmem:[#allocation5 + $0x18] sm:$0xff] }
 0x447   :  { %520 = vrot.lane.b32.xlu0 %v519_v48, %s5203_s10 }
 0x44b   :  { %524 = vrot.lane.b32.xlu0 %v519_v48, %s5202_s7 }
 0x4b5   :  { %v523_v49 = vpop.permute.xlu1 %522 }
 0x4b6   :  { %v527_v54 = vmul.f32 %v523_v49, %v519_v48 }
 0x4b9   :  { %v521_v51 = vpop.permute.xlu0 %520 }
 0x4ba   :  { %v526_v55 = vmul.f32 %v521_v51, %v442_v36 }
 0x4bc   :  { %v528_v56 = vadd.f32 %v527_v54, %v526_v55  ;;  %v4470_v54 = vpack.c.bf16 %v973_v47, %v972_v45  ;;  %v974_v55 = vld [vmem:[#allocation5 + $0x20] sm:$0xff]  ;;  %v1112_v45 = vld [vmem:[#allocation7 + $0x70] sm:$0xff]  ;;  %v1113_v47 = vld [vmem:[#allocation7 + $0x78] sm:$0xff] }
 0x4bd   :  { %v525_v58 = vpop.permute.xlu0 %524 }
 0x4be   :  { %4963 = vtanh.f32 %v528_v56 }
 0x4c8   :  { %v4964_v57 = vpop.eup %4963 }
 0x4c9   :  { %v5594_v59 = vmul.f32 %v4964_v57, %v525_v58  ;;  %v976_v58 = vld [vmem:[#allocation5 + $0x30] sm:$0xff] }
 0x4cb   :  { %3417 = vmatmul.mubr.f32.vlgmr.msra.gmra.mrb[10].mxu0 %v5594_v59 }
 0x4cc   :  { %4396 = vmatpush3.bf16.msra.mxu0 %v5395_v9  ;;  %3486 = vmatprep.mubr.msk.f32.mxu0 %vm5198_vm0, %v5199_v1 }
 0x4cd   :  { %4397 = vmatprep.subr.bf16.mxu0 %v5197_v0 }
 0x4d0   :  { %4399 = vmatpush3.bf16.msra.mxu0 %v5404_v15 }
 0x4d1   :  { %4400 = vmatprep.subr.bf16.mxu0 %v5197_v0 }
 0x4d4   :  { %4402 = vmatpush3.bf16.msra.mxu0 %v5414_v21 }
 0x4d5   :  { %4403 = vmatprep.subr.bf16.mxu0 %v5197_v0 }
 0x4d8   :  { %4405 = vmatpush3.bf16.msra.mxu0 %v5427_v28 }
 0x4d9   :  { %4406 = vmatprep.subr.bf16.mxu0 %v5197_v0 }
 0x4dc   :  { %4408 = vmatpush3.bf16.msra.mxu0 %v5437_v34 }
 0x4dd   :  { %4409 = vmatprep.subr.bf16.mxu0 %v5197_v0 }
 0x4e0   :  { %4411 = vmatpush3.bf16.msra.mxu0 %v5447_v40 }
 0x4e1   :  { %4412 = vmatprep.subr.bf16.mxu0 %v5197_v0 }
 0x4e4   :  { %4414 = vmatpush3.bf16.msra.mxu0 %v5457_v46 }
 0x4e5   :  { %4415 = vmatprep.subr.bf16.mxu0 %v5197_v0 }
 0x4e8   :  { %4417 = vmatpush3.bf16.msra.mxu0 %v5461_v50 }
 0x4e9   :  { %4442 = vmatprep.subr.bf16.mxu0 %v5197_v0 }
 0x59e   :  { %v598_v61 = vpop.f32.mrb[10].mxu0 }
 0x59f   :  { %v602_v62 = vadd.f32 %v598_v61, %v236_v60  ;;  %v3418_v63 = vpop.f32.mrb[11].mxu0  ;;  %v977_v60 = vld [vmem:[#allocation5 + $0x38] sm:$0xff] }
 0x5a0   :  { %v4478_v61 = vpack.c.bf16 %v977_v60, %v976_v58  ;;  %v979_v63 = vld [vmem:[#allocation5 + $0x48] sm:$0xff] }
 0x5a1   :  { %4965 = vtanh.f32 %v602_v62  ;;  %v978_v62 = vld [vmem:[#allocation5 + $0x40] sm:$0xff] }
 0x5ab   :  { %v4966_v2 = vpop.eup %4965 }
 0x5ac   :  { %608 = vrot.lane.b32.xlu0 %v4966_v2, %s5201_s25  ;;  %v604_v3 = vmul.f32 0.5, %v4966_v2  ;;  %v4482_v2 = vpack.c.bf16 %v979_v63, %v978_v62 }
 0x5ae   :  { %v605_v4 = vadd.f32 0.5, %v604_v3  ;;  %v980_v3 = vld [vmem:[#allocation5 + $0x50] sm:$0xff] }
 0x5b0   :  { %606 = vrot.lane.b32.xlu1 %v605_v4, %s5203_s10 }
 0x5b4   :  { %610 = vrot.lane.b32.xlu1 %v605_v4, %s5202_s7 }
 0x61e   :  { %v609_v5 = vpop.permute.xlu0 %608 }
 0x61f   :  { %v613_v7 = vmul.f32 %v609_v5, %v605_v4  ;;  %v981_v4 = vld [vmem:[#allocation5 + $0x58] sm:$0xff] }
 0x620   :  { %v4486_v5 = vpack.c.bf16 %v981_v4, %v980_v3 }
 0x622   :  { %v607_v6 = vpop.permute.xlu1 %606 }
 0x623   :  { %v612_v8 = vmul.f32 %v607_v6, %v528_v56  ;;  %v975_v56 = vld [vmem:[#allocation5 + $0x28] sm:$0xff]  ;;  %v982_v6 = vld [vmem:[#allocation5 + $0x60] sm:$0xff] }
 0x624   :  { %v4474_v57 = vpack.c.bf16 %v975_v56, %v974_v55 }
 0x625   :  { %v614_v10 = vadd.f32 %v613_v7, %v612_v8  ;;  %v983_v7 = vld [vmem:[#allocation5 + $0x68] sm:$0xff]  ;;  %v984_v8 = vld [vmem:[#allocation5 + $0x70] sm:$0xff] }
 0x626   :  { %v611_v12 = vpop.permute.xlu1 %610 }
 0x627   :  { %4967 = vtanh.f32 %v614_v10 }
 0x631   :  { %v4968_v11 = vpop.eup %4967 }
 0x632   :  { %v5620_v13 = vmul.f32 %v4968_v11, %v611_v12  ;;  %v251_v12 = vadd.f32 %v5508_v53, %v5563_v22  ;;  %v1100_v22 = vld [vmem:[#allocation7 + $0x10] sm:$0xff] }
 0x634   :  { %3452 = vmatmul.mubr.f32.vlgmr.msra.gmra.mrb[4].mxu1 %v5620_v13 }
 0x635   :  { %4420 = vmatpush3.bf16.msra.mxu1 %v5395_v9  ;;  %3521 = vmatprep.mubr.msk.f32.mxu1 %vm5198_vm0, %v5199_v1 }
 0x636   :  { %4421 = vmatprep.subr.bf16.mxu1 %v5197_v0 }
 0x639   :  { %4423 = vmatpush3.bf16.msra.mxu1 %v5404_v15 }
 0x63a   :  { %4424 = vmatprep.subr.bf16.mxu1 %v5197_v0 }
 0x63d   :  { %4426 = vmatpush3.bf16.msra.mxu1 %v5414_v21 }
 0x63e   :  { %4427 = vmatprep.subr.bf16.mxu1 %v5197_v0 }
 0x641   :  { %4429 = vmatpush3.bf16.msra.mxu1 %v5427_v28 }
 0x642   :  { %4430 = vmatprep.subr.bf16.mxu1 %v5197_v0 }
 0x645   :  { %4432 = vmatpush3.bf16.msra.mxu1 %v5437_v34 }
 0x646   :  { %4433 = vmatprep.subr.bf16.mxu1 %v5197_v0 }
 0x649   :  { %4435 = vmatpush3.bf16.msra.mxu1 %v5447_v40 }
 0x64a   :  { %4436 = vmatprep.subr.bf16.mxu1 %v5197_v0 }
 0x64d   :  { %4438 = vmatpush3.bf16.msra.mxu1 %v5457_v46 }
 0x64e   :  { %4439 = vmatprep.subr.bf16.mxu1 %v5197_v0 }
 0x651   :  { %4441 = vmatpush3.bf16.msra.mxu1 %v5461_v50 }
 0x707   :  { %v684_v17 = vpop.f32.mrb[4].mxu1 }
 0x708   :  { %v688_v23 = vadd.f32 %v684_v17, %v241_v16  ;;  %v3453_v24 = vpop.f32.mrb[5].mxu1 }
 0x70a   :  { %4969 = vtanh.f32 %v688_v23 }
 0x714   :  { %v4970_v25 = vpop.eup %4969 }
 0x715   :  { %694 = vrot.lane.b32.xlu1 %v4970_v25, %s5201_s25  ;;  %v690_v26 = vmul.f32 0.5, %v4970_v25 }
 0x717   :  { %v691_v27 = vadd.f32 0.5, %v690_v26 }
 0x719   :  { %692 = vrot.lane.b32.xlu0 %v691_v27, %s5203_s10 }
 0x71d   :  { %696 = vrot.lane.b32.xlu0 %v691_v27, %s5202_s7 }
 0x787   :  { %v695_v29 = vpop.permute.xlu1 %694 }
 0x788   :  { %v699_v31 = vmul.f32 %v695_v29, %v691_v27  ;;  %v1101_v27 = vld [vmem:[#allocation7 + $0x18] sm:$0xff] }
 0x789   :  { %v5689_v29 = vpack.c.bf16 %v1101_v27, %v1100_v22 }
 0x78b   :  { %v693_v30 = vpop.permute.xlu0 %692 }
 0x78c   :  { %v698_v32 = vmul.f32 %v693_v30, %v614_v10  ;;  %v985_v10 = vld [vmem:[#allocation5 + $0x78] sm:$0xff]  ;;  %v1102_v30 = vld [vmem:[#allocation7 + $0x20] sm:$0xff] }
 0x78d   :  { %v4494_v11 = vpack.c.bf16 %v985_v10, %v984_v8 }
 0x78e   :  { %v700_v33 = vadd.f32 %v699_v31, %v698_v32  ;;  %v1103_v31 = vld [vmem:[#allocation7 + $0x28] sm:$0xff] }
 0x78f   :  { %v697_v35 = vpop.permute.xlu0 %696  ;;  %v5693_v32 = vpack.c.bf16 %v1103_v31, %v1102_v30 }
 0x790   :  { %4971 = vtanh.f32 %v700_v33 }
 0x79a   :  { %v4972_v19 = vpop.eup %4971 }
 0x79b   :  { %v5645_v36 = vmul.f32 %v4972_v19, %v697_v35  ;;  %v1104_v19 = vld [vmem:[#allocation7 + $0x30] sm:$0xff]  ;;  %v1105_v35 = vld [vmem:[#allocation7 + $0x38] sm:$0xff] }
 0x79d   :  { %3487 = vmatmul.mubr.f32.vlgmr.msra.gmra.mrb[12].mxu0 %v5645_v36 }
 0x79e   :  { %4444 = vmatpush3.bf16.msra.mxu0 %v5395_v9  ;;  %3556 = vmatprep.mubr.msk.f32.mxu0 %vm5198_vm0, %v5199_v1  ;;  %v246_v9 = vadd.f32 %v5557_v18, %v5508_v53 }
 0x79f   :  { %4445 = vmatprep.subr.bf16.mxu0 %v5197_v0 }
 0x7a2   :  { %4447 = vmatpush3.bf16.msra.mxu0 %v5404_v15 }
 0x7a3   :  { %4448 = vmatprep.subr.bf16.mxu0 %v5197_v0 }
 0x7a6   :  { %4450 = vmatpush3.bf16.msra.mxu0 %v5414_v21 }
 0x7a7   :  { %4451 = vmatprep.subr.bf16.mxu0 %v5197_v0 }
 0x7aa   :  { %4453 = vmatpush3.bf16.msra.mxu0 %v5427_v28 }
 0x7ab   :  { %4454 = vmatprep.subr.bf16.mxu0 %v5197_v0 }
 0x7ae   :  { %4456 = vmatpush3.bf16.msra.mxu0 %v5437_v34 }
 0x7af   :  { %4457 = vmatprep.subr.bf16.mxu0 %v5197_v0 }
 0x7b2   :  { %4459 = vmatpush3.bf16.msra.mxu0 %v5447_v40 }
 0x7b3   :  { %4460 = vmatprep.subr.bf16.mxu0 %v5197_v0 }
 0x7b6   :  { %4462 = vmatpush3.bf16.msra.mxu0 %v5457_v46  ;;  %v970_v46 = vld [vmem:[#allocation5] sm:$0xff] }
 0x7b7   :  { %4463 = vmatprep.subr.bf16.mxu0 %v5197_v0  ;;  %v4466_v41 = vpack.c.bf16 %v971_v38, %v970_v46  ;;  %v1108_v46 = vld [vmem:[#allocation7 + $0x50] sm:$0xff]  ;;  %v1109_v38 = vld [vmem:[#allocation7 + $0x58] sm:$0xff] }
 0x7b9   :  { %4467 = vmatprep.subr.bf16.mxu1 %v4466_v41 }
 0x7ba   :  { %4465 = vmatpush3.bf16.msra.mxu0 %v5461_v50 }
 0x7bb   :  { %4498 = vmatprep.subr.bf16.mxu0 %v5197_v0 }
 0x870   :  { %v770_v15 = vpop.f32.mrb[12].mxu0 }
 0x871   :  { %v774_v21 = vadd.f32 %v770_v15, %v246_v9  ;;  %v3488_v28 = vpop.f32.mrb[13].mxu0  ;;  %v5701_v9 = vpack.c.bf16 %v1105_v35, %v1104_v19 }
 0x872   :  { %v1107_v28 = vld [vmem:[#allocation7 + $0x48] sm:$0xff] }
 0x873   :  { %4973 = vtanh.f32 %v774_v21  ;;  %v1106_v21 = vld [vmem:[#allocation7 + $0x40] sm:$0xff] }
 0x87d   :  { %v4974_v34 = vpop.eup %4973 }
 0x87e   :  { %780 = vrot.lane.b32.xlu0 %v4974_v34, %s5201_s25  ;;  %v776_v40 = vmul.f32 0.5, %v4974_v34 }
 0x880   :  { %v777_v37 = vadd.f32 0.5, %v776_v40  ;;  %v5709_v40 = vpack.c.bf16 %v1107_v28, %v1106_v21 }
 0x882   :  { %778 = vrot.lane.b32.xlu1 %v777_v37, %s5203_s10 }
 0x886   :  { %782 = vrot.lane.b32.xlu1 %v777_v37, %s5202_s7 }
 0x8f0   :  { %v781_v50 = vpop.permute.xlu0 %780 }
 0x8f1   :  { %v785_v18 = vmul.f32 %v781_v50, %v777_v37  ;;  %v5717_v50 = vpack.c.bf16 %v1109_v38, %v1108_v46 }
 0x8f4   :  { %v779_v42 = vpop.permute.xlu1 %778 }
 0x8f5   :  { %v784_v43 = vmul.f32 %v779_v42, %v700_v33  ;;  %v1110_v42 = vld [vmem:[#allocation7 + $0x60] sm:$0xff] }
 0x8f7   :  { %v5671_v44 = vadd.f32 %v785_v18, %v784_v43  ;;  %v1111_v18 = vld [vmem:[#allocation7 + $0x68] sm:$0xff] }
 0x8f8   :  { %v783_v49 = vpop.permute.xlu1 %782  ;;  %v5721_v43 = vpack.c.bf16 %v1111_v18, %v1110_v42 }
 0x8f9   :  { %4975 = vtanh.f32 %v5671_v44 }
 0x903   :  { %v4976_v48 = vpop.eup %4975 }
 0x904   :  { %v788_v51 = vmul.f32 %v4976_v48, %v783_v49  ;;  %v5725_v48 = vpack.c.bf16 %v1113_v47, %v1112_v45 }
 0x906   :  { %3522 = vmatmul.mubr.f32.vlgmr.msra.gmra.mrb[6].mxu1 %v788_v51 }
 0x907   :  { %4469 = vmatpush3.bf16.msra.mxu1 %v4466_v41  ;;  %3591 = vmatprep.mubr.f32.mxu1 %v5534_v14  ;;  %v4490_v14 = vpack.c.bf16 %v983_v7, %v982_v6 }
 0x908   :  { %4471 = vmatprep.subr.bf16.mxu1 %v4470_v54 }
 0x90b   :  { %4473 = vmatpush3.bf16.msra.mxu1 %v4470_v54 }
 0x90c   :  { %4475 = vmatprep.subr.bf16.mxu1 %v4474_v57 }
 0x90f   :  { %4477 = vmatpush3.bf16.msra.mxu1 %v4474_v57 }
 0x910   :  { %4479 = vmatprep.subr.bf16.mxu1 %v4478_v61 }
 0x913   :  { %4481 = vmatpush3.bf16.msra.mxu1 %v4478_v61 }
 0x914   :  { %4483 = vmatprep.subr.bf16.mxu1 %v4482_v2 }
 0x917   :  { %4485 = vmatpush3.bf16.msra.mxu1 %v4482_v2 }
 0x918   :  { %4487 = vmatprep.subr.bf16.mxu1 %v4486_v5 }
 0x91b   :  { %4489 = vmatpush3.bf16.msra.mxu1 %v4486_v5  ;;  %v5777_v5 = vld [vmem:[%s6187_s6] ss:$0 sm:$0xff] }
 0x91c   :  { %4491 = vmatprep.subr.bf16.mxu1 %v4490_v14 }
 0x91f   :  { %4493 = vmatpush3.bf16.msra.mxu1 %v4490_v14 }
 0x920   :  { %4495 = vmatprep.subr.bf16.mxu1 %v4494_v11 }
 0x923   :  { %4497 = vmatpush3.bf16.msra.mxu1 %v4494_v11 }
 0x924   :  { %4522 = vmatprep.subr.bf16.mxu1 %v5197_v0 }
 0x926   :  { %3592 = vmatmul.mubr.f32.vlgmr.msra.gmra.mrb[8].mxu1 %v5569_v39  ;;  %v1098_v39 = vld [vmem:[#allocation7] sm:$0xff] }
 0x927   :  { %3594 = vmatprep.mubr.f32.mxu1 %v5594_v59  ;;  %v1099_v59 = vld [vmem:[#allocation7 + $0x8] sm:$0xff] }
 0x92a   :  { %3595 = vmatmul.mubr.f32.gmra.mrb[10].mxu1 %v5620_v13  ;;  %v5684_v13 = vpack.c.bf16 %v1099_v59, %v1098_v39 }
 0x92b   :  { %3597 = vmatprep.mubr.f32.mxu1 %v5645_v36 }
 0x92c   :  { %4524 = vmatpush3.bf16.msra.mxu1 %v5684_v13 }
 0x92d   :  { %4525 = vmatprep.subr.bf16.mxu1 %v5197_v0 }
 0x92e   :  { %3598 = vmatmul.mubr.f32.gmra.mrb[12].mxu1 %v788_v51 }
 0x930   :  { %4527 = vmatpush3.bf16.msra.mxu1 %v5689_v29 }
 0x931   :  { %4528 = vmatprep.subr.bf16.mxu1 %v5197_v0 }
 0x934   :  { %4530 = vmatpush3.bf16.msra.mxu1 %v5693_v32 }
 0x935   :  { %4531 = vmatprep.subr.bf16.mxu1 %v5197_v0 }
 0x938   :  { %4533 = vmatpush3.bf16.msra.mxu1 %v5701_v9 }
 0x939   :  { %4534 = vmatprep.subr.bf16.mxu1 %v5197_v0 }
 0x93c   :  { %4536 = vmatpush3.bf16.msra.mxu1 %v5709_v40 }
 0x93d   :  { %4537 = vmatprep.subr.bf16.mxu1 %v5197_v0 }
 0x940   :  { %4539 = vmatpush3.bf16.msra.mxu1 %v5717_v50 }
 0x941   :  { %4540 = vmatprep.subr.bf16.mxu1 %v5197_v0 }
 0x944   :  { %4542 = vmatpush3.bf16.msra.mxu1 %v5721_v43 }
 0x945   :  { %4543 = vmatprep.subr.bf16.mxu1 %v5197_v0 }
 0x948   :  { %4545 = vmatpush3.bf16.msra.mxu1 %v5725_v48 }
 0x949   :  { %4570 = vmatprep.subr.bf16.mxu1 %v5197_v0 }
 0x9d9   :  { %v856_v16 = vpop.f32.mrb[6].mxu1 }
 0x9da   :  { %v860_v17 = vadd.f32 %v856_v16, %v251_v12  ;;  %v3523_v23 = vpop.f32.mrb[7].mxu1 }
 0x9dc   :  { %4977 = vtanh.f32 %v860_v17 }
 0x9e6   :  { %v4978_v24 = vpop.eup %4977 }
 0x9e7   :  { %866 = vrot.lane.b32.xlu1 %v4978_v24, %s5201_s25  ;;  %v862_v25 = vmul.f32 0.5, %v4978_v24 }
 0x9e9   :  { %v863_v26 = vadd.f32 0.5, %v862_v25 }
 0x9eb   :  { %864 = vrot.lane.b32.xlu0 %v863_v26, %s5203_s10 }
 0x9ef   :  { %868 = vrot.lane.b32.xlu0 %v863_v26, %s5202_s7 }
 0x9f9   :  { %v5696_v33 = vpop.f32.mrb[8].mxu1 }
 0x9fa   :  { %v5699_v36 = vpop.f32.mrb[9].mxu1  ;;  %v1065_v21 = vadd.f32 %v5696_v33, %v5777_v5 }
 0x9fb   :  { %v1060_v6 = vadd.f32 %v5777_v5, %v5699_v36 }
 0x9fd   :  { %v5704_v15 = vpop.f32.mrb[10].mxu1 }
 0x9fe   :  { %v5707_v34 = vpop.f32.mrb[11].mxu1 }
 0xa01   :  { %v5712_v37 = vpop.f32.mrb[12].mxu1 }
 0xa02   :  { %v5715_v41 = vpop.f32.mrb[13].mxu1 }
 0xa59   :  { %v867_v49 = vpop.permute.xlu1 %866 }
 0xa5a   :  { %v871_v54 = vmul.f32 %v867_v49, %v863_v26 }
 0xa5d   :  { %v865_v51 = vpop.permute.xlu0 %864 }
 0xa5e   :  { %v870_v55 = vmul.f32 %v865_v51, %v5671_v44  ;;  %v256_v44 = vadd.f32 %v5561_v20, %v5508_v53 }
 0xa60   :  { %v5730_v56 = vadd.f32 %v871_v54, %v870_v55 }
 0xa61   :  { %v869_v58 = vpop.permute.xlu0 %868 }
 0xa62   :  { %4979 = vtanh.f32 %v5730_v56 }
 0xa6c   :  { %v4980_v57 = vpop.eup %4979 }
 0xa6d   :  { %v874_v60 = vmul.f32 %v4980_v57, %v869_v58  ;;  %v1070_v58 = vadd.f32 %v5777_v5, %v5707_v34 }
 0xa6f   :  { %3557 = vmatmul.mubr.f32.vlgmr.msra.gmra.mrb[14].mxu0 %v874_v60  ;;  %3600 = vmatprep.mubr.f32.mxu1 %v874_v60 }
 0xa70   :  { %4500 = vmatpush3.bf16.msra.mxu0 %v5684_v13  ;;  %3635 = vmatprep.mubr.msk.f32.mxu0 %vm5198_vm0, %v5199_v1 }
 0xa71   :  { %4501 = vmatprep.subr.bf16.mxu0 %v5197_v0 }
 0xa74   :  { %4503 = vmatpush3.bf16.msra.mxu0 %v5689_v29 }
 0xa75   :  { %4504 = vmatprep.subr.bf16.mxu0 %v5197_v0 }
 0xa78   :  { %4506 = vmatpush3.bf16.msra.mxu0 %v5693_v32 }
 0xa79   :  { %4507 = vmatprep.subr.bf16.mxu0 %v5197_v0 }
 0xa7c   :  { %4509 = vmatpush3.bf16.msra.mxu0 %v5701_v9 }
 0xa7d   :  { %4510 = vmatprep.subr.bf16.mxu0 %v5197_v0 }
 0xa80   :  { %4512 = vmatpush3.bf16.msra.mxu0 %v5709_v40 }
 0xa81   :  { %4513 = vmatprep.subr.bf16.mxu0 %v5197_v0 }
 0xa84   :  { %4515 = vmatpush3.bf16.msra.mxu0 %v5717_v50 }
 0xa85   :  { %4516 = vmatprep.subr.bf16.mxu0 %v5197_v0 }
 0xa88   :  { %4518 = vmatpush3.bf16.msra.mxu0 %v5721_v43 }
 0xa89   :  { %4519 = vmatprep.subr.bf16.mxu0 %v5197_v0 }
 0xa8c   :  { %4521 = vmatpush3.bf16.msra.mxu0 %v5725_v48 }
 0xa8d   :  { %4546 = vmatprep.subr.bf16.mxu0 %v5197_v0 }
 0xa8f   :  { %3636 = vmatmul.mubr.f32.vlgmr.msra.gmra.mrb[16].mxu0 %v5200_v52 }
 0xa90   :  { %4548 = vmatpush3.bf16.msra.mxu0 %v5684_v13  ;;  %3705 = vmatprep.mubr.msk.f32.mxu0 %vm5198_vm0, %v5199_v1 }
 0xa91   :  { %4549 = vmatprep.subr.bf16.mxu0 %v5197_v0 }
 0xa94   :  { %4551 = vmatpush3.bf16.msra.mxu0 %v5689_v29 }
 0xa95   :  { %4552 = vmatprep.subr.bf16.mxu0 %v5197_v0 }
 0xa98   :  { %4554 = vmatpush3.bf16.msra.mxu0 %v5693_v32 }
 0xa99   :  { %4555 = vmatprep.subr.bf16.mxu0 %v5197_v0 }
 0xa9c   :  { %4557 = vmatpush3.bf16.msra.mxu0 %v5701_v9 }
 0xa9d   :  { %4558 = vmatprep.subr.bf16.mxu0 %v5197_v0 }
 0xaa0   :  { %4560 = vmatpush3.bf16.msra.mxu0 %v5709_v40 }
 0xaa1   :  { %4561 = vmatprep.subr.bf16.mxu0 %v5197_v0 }
 0xaa4   :  { %4563 = vmatpush3.bf16.msra.mxu0 %v5717_v50 }
 0xaa5   :  { %4564 = vmatprep.subr.bf16.mxu0 %v5197_v0 }
 0xaa8   :  { %4566 = vmatpush3.bf16.msra.mxu0 %v5721_v43 }
 0xaa9   :  { %4567 = vmatprep.subr.bf16.mxu0 %v5197_v0 }
 0xaac   :  { %4569 = vmatpush3.bf16.msra.mxu0 %v5725_v48 }
 0xaad   :  { %4594 = vmatprep.subr.bf16.mxu0 %v5197_v0 }
 0xb42   :  { %v942_v61 = vpop.f32.mrb[14].mxu0 }
 0xb43   :  { %v946_v62 = vadd.f32 %v942_v61, %v256_v44  ;;  %v3558_v63 = vpop.f32.mrb[15].mxu0 }
 0xb45   :  { %4981 = vtanh.f32 %v946_v62 }
 0xb4f   :  { %v4982_v2 = vpop.eup %4981 }
 0xb50   :  { %952 = vrot.lane.b32.xlu0 %v4982_v2, %s5201_s25  ;;  %v948_v3 = vmul.f32 0.5, %v4982_v2 }
 0xb52   :  { %v949_v4 = vadd.f32 0.5, %v948_v3 }
 0xb54   :  { %950 = vrot.lane.b32.xlu1 %v949_v4, %s5203_s10 }
 0xb62   :  { %v1180_v53 = vpop.f32.mrb[16].mxu0 }
 0xb63   :  { %v1184_v20 = vadd.f32 %v1180_v53, %v1060_v6  ;;  %v3637_v7 = vpop.f32.mrb[17].mxu0 }
 0xb65   :  { %4983 = vtanh.f32 %v1184_v20 }
 0xb6f   :  { %v4984_v14 = vpop.eup %4983 }
 0xb70   :  { %1190 = vrot.lane.b32.xlu1 %v4984_v14, %s5201_s25  ;;  %v1186_v8 = vmul.f32 0.5, %v4984_v14 }
 0xb72   :  { %v1187_v10 = vadd.f32 0.5, %v1186_v8  ;;  %v1075_v8 = vadd.f32 %v5704_v15, %v5777_v5 }
 0xb74   :  { %954 = vrot.lane.b32.xlu1 %v949_v4, %s5202_s7  ;;  %1188 = vrot.lane.b32.xlu0 %v1187_v10, %s5203_s10 }
 0xb78   :  { %1192 = vrot.lane.b32.xlu0 %v1187_v10, %s5202_s7 }
 0xbc2   :  { %v953_v12 = vpop.permute.xlu0 %952 }
 0xbc3   :  { %v957_v17 = vmul.f32 %v953_v12, %v949_v4 }
 0xbc6   :  { %v951_v11 = vpop.permute.xlu1 %950 }
 0xbc7   :  { %v956_v16 = vmul.f32 %v951_v11, %v5730_v56 }
 0xbc9   :  { %v958_v23 = vadd.f32 %v957_v17, %v956_v16 }
 0xbcb   :  { %4985 = vtanh.f32 %v958_v23 }
 0xbd5   :  { %v4986_v26 = vpop.eup %4985 }
 0xbe2   :  { %v1191_v24 = vpop.permute.xlu1 %1190 }
 0xbe3   :  { %v1194_v25 = vmul.f32 %v1191_v24, %v1187_v10 }
 0xbe6   :  { %v955_v39 = vpop.permute.xlu1 %954  ;;  %v1189_v59 = vpop.permute.xlu0 %1188 }
 0xbe7   :  { %v960_v22 = vmul.f32 %v4986_v26, %v955_v39  ;;  %v1195_v27 = vadd.f32 %v1194_v25, %v1189_v59 }
 0xbe9   :  { %4987 = vtanh.f32 %v1195_v27  ;;  %3601 = vmatmul.mubr.f32.gmra.mrb[14].mxu1 %v960_v22 }
 0xbea   :  { %3670 = vmatprep.mubr.msk.f32.mxu1 %vm5198_vm0, %v5199_v1  ;;  %v1193_v31 = vpop.permute.xlu0 %1192 }
 0xbf3   :  { %v4988_v30 = vpop.eup %4987 }
 0xbf4   :  { %v5788_v19 = vmul.f32 %v4988_v30, %v1193_v31  ;;  %v1080_v30 = vadd.f32 %v5777_v5, %v5715_v41 }
 0xbf6   :  { %3671 = vmatmul.mubr.f32.vlgmr.msra.gmra.mrb[16].mxu1 %v5788_v19 }
 0xbf7   :  { %4572 = vmatpush3.bf16.msra.mxu1 %v5684_v13  ;;  %3740 = vmatprep.mubr.msk.f32.mxu1 %vm5198_vm0, %v5199_v1 }
 0xbf8   :  { %4573 = vmatprep.subr.bf16.mxu1 %v5197_v0 }
 0xbfb   :  { %4575 = vmatpush3.bf16.msra.mxu1 %v5689_v29 }
 0xbfc   :  { %4576 = vmatprep.subr.bf16.mxu1 %v5197_v0 }
 0xbff   :  { %4578 = vmatpush3.bf16.msra.mxu1 %v5693_v32 }
 0xc00   :  { %4579 = vmatprep.subr.bf16.mxu1 %v5197_v0 }
 0xc03   :  { %4581 = vmatpush3.bf16.msra.mxu1 %v5701_v9 }
 0xc04   :  { %4582 = vmatprep.subr.bf16.mxu1 %v5197_v0 }
 0xc07   :  { %4584 = vmatpush3.bf16.msra.mxu1 %v5709_v40 }
 0xc08   :  { %4585 = vmatprep.subr.bf16.mxu1 %v5197_v0 }
 0xc0b   :  { %4587 = vmatpush3.bf16.msra.mxu1 %v5717_v50 }
 0xc0c   :  { %4588 = vmatprep.subr.bf16.mxu1 %v5197_v0 }
 0xc0f   :  { %4590 = vmatpush3.bf16.msra.mxu1 %v5721_v43 }
 0xc10   :  { %4591 = vmatprep.subr.bf16.mxu1 %v5197_v0 }
 0xc13   :  { %4593 = vmatpush3.bf16.msra.mxu1 %v5725_v48 }
 0xc14   :  { %4618 = vmatprep.subr.bf16.mxu1 %v5197_v0 }
 0xcbc   :  { %v5809_v35 = vpop.f32.mrb[14].mxu1 }
 0xcbd   :  { %v5811_v36 = vpop.f32.mrb[15].mxu1 }
 0xcc9   :  { %v1265_v28 = vpop.f32.mrb[16].mxu1 }
 0xcca   :  { %v1269_v46 = vadd.f32 %v1265_v28, %v1065_v21  ;;  %v3672_v38 = vpop.f32.mrb[17].mxu1 }
 0xccc   :  { %4989 = vtanh.f32 %v1269_v46 }
 0xcd6   :  { %v4990_v42 = vpop.eup %4989 }
 0xcd7   :  { %1275 = vrot.lane.b32.xlu0 %v4990_v42, %s5201_s25  ;;  %v1271_v18 = vmul.f32 0.5, %v4990_v42 }
 0xcd9   :  { %v1272_v45 = vadd.f32 0.5, %v1271_v18 }
 0xcdb   :  { %1273 = vrot.lane.b32.xlu1 %v1272_v45, %s5203_s10 }
 0xcdf   :  { %1277 = vrot.lane.b32.xlu1 %v1272_v45, %s5202_s7 }
 0xd49   :  { %v1276_v47 = vpop.permute.xlu0 %1275 }
 0xd4a   :  { %v1280_v51 = vmul.f32 %v1276_v47, %v1272_v45 }
 0xd4d   :  { %v1274_v49 = vpop.permute.xlu1 %1273 }
 0xd4e   :  { %v1279_v54 = vmul.f32 %v1274_v49, %v1195_v27 }
 0xd50   :  { %v1281_v55 = vadd.f32 %v1280_v51, %v1279_v54 }
 0xd51   :  { %v1278_v56 = vpop.permute.xlu1 %1277 }
 0xd52   :  { %4991 = vtanh.f32 %v1281_v55 }
 0xd5c   :  { %v4992_v33 = vpop.eup %4991 }
 0xd5d   :  { %v5818_v57 = vmul.f32 %v4992_v33, %v1278_v56  ;;  %v1810_v56 = vld [vmem:[#allocation8 + $0x8] sm:$0xff] }
 0xd5f   :  { %3706 = vmatmul.mubr.f32.vlgmr.msra.gmra.mrb[18].mxu0 %v5818_v57 }
 0xd60   :  { %4596 = vmatpush3.bf16.msra.mxu0 %v5684_v13  ;;  %3775 = vmatprep.mubr.msk.f32.mxu0 %vm5198_vm0, %v5199_v1 }
 0xd61   :  { %4597 = vmatprep.subr.bf16.mxu0 %v5197_v0 }
 0xd64   :  { %4599 = vmatpush3.bf16.msra.mxu0 %v5689_v29 }
 0xd65   :  { %4600 = vmatprep.subr.bf16.mxu0 %v5197_v0 }
 0xd68   :  { %4602 = vmatpush3.bf16.msra.mxu0 %v5693_v32 }
 0xd69   :  { %4603 = vmatprep.subr.bf16.mxu0 %v5197_v0 }
 0xd6c   :  { %4605 = vmatpush3.bf16.msra.mxu0 %v5701_v9 }
 0xd6d   :  { %4606 = vmatprep.subr.bf16.mxu0 %v5197_v0 }
 0xd70   :  { %4608 = vmatpush3.bf16.msra.mxu0 %v5709_v40 }
 0xd71   :  { %4609 = vmatprep.subr.bf16.mxu0 %v5197_v0 }
 0xd74   :  { %4611 = vmatpush3.bf16.msra.mxu0 %v5717_v50 }
 0xd75   :  { %4612 = vmatprep.subr.bf16.mxu0 %v5197_v0 }
 0xd78   :  { %4614 = vmatpush3.bf16.msra.mxu0 %v5721_v43 }
 0xd79   :  { %4615 = vmatprep.subr.bf16.mxu0 %v5197_v0 }
 0xd7c   :  { %4617 = vmatpush3.bf16.msra.mxu0 %v5725_v48 }
 0xd7d   :  { %4642 = vmatprep.subr.bf16.mxu0 %v5197_v0 }
 0xe32   :  { %v1351_v60 = vpop.f32.mrb[18].mxu0 }
 0xe33   :  { %v1355_v44 = vadd.f32 %v1351_v60, %v1070_v58  ;;  %v3707_v61 = vpop.f32.mrb[19].mxu0 }
 0xe35   :  { %4993 = vtanh.f32 %v1355_v44 }
 0xe3f   :  { %v4994_v62 = vpop.eup %4993 }
 0xe40   :  { %1361 = vrot.lane.b32.xlu1 %v4994_v62, %s5201_s25  ;;  %v1357_v63 = vmul.f32 0.5, %v4994_v62  ;;  %v1811_v62 = vld [vmem:[#allocation8 + $0x10] sm:$0xff] }
 0xe42   :  { %v1358_v2 = vadd.f32 0.5, %v1357_v63  ;;  %v1812_v63 = vld [vmem:[#allocation8 + $0x18] sm:$0xff] }
 0xe44   :  { %1359 = vrot.lane.b32.xlu0 %v1358_v2, %s5203_s10 }
 0xe48   :  { %1363 = vrot.lane.b32.xlu0 %v1358_v2, %s5202_s7 }
 0xeb2   :  { %v1362_v3 = vpop.permute.xlu1 %1361 }
 0xeb3   :  { %v1366_v6 = vmul.f32 %v1362_v3, %v1358_v2 }
 0xeb6   :  { %v1360_v4 = vpop.permute.xlu0 %1359 }
 0xeb7   :  { %v1365_v53 = vmul.f32 %v1360_v4, %v1281_v55 }
 0xeb9   :  { %v1367_v20 = vadd.f32 %v1366_v6, %v1365_v53  ;;  %v4694_v6 = vpack.c.bf16 %v1812_v63, %v1811_v62  ;;  %v1813_v53 = vld [vmem:[#allocation8 + $0x20] sm:$0xff]  ;;  %v1951_v62 = vld [vmem:[#allocation10 + $0x70] sm:$0xff]  ;;  %v1952_v63 = vld [vmem:[#allocation10 + $0x78] sm:$0xff] }
 0xeba   :  { %v1364_v7 = vpop.permute.xlu0 %1363 }
 0xebb   :  { %4995 = vtanh.f32 %v1367_v20 }
 0xec5   :  { %v4996_v34 = vpop.eup %4995 }
 0xec6   :  { %v5844_v14 = vmul.f32 %v4996_v34, %v1364_v7  ;;  %v1815_v7 = vld [vmem:[#allocation8 + $0x30] sm:$0xff] }
 0xec8   :  { %3741 = vmatmul.mubr.f32.vlgmr.msra.gmra.mrb[18].mxu1 %v5844_v14 }
 0xec9   :  { %4620 = vmatpush3.bf16.msra.mxu1 %v5684_v13  ;;  %3810 = vmatprep.mubr.msk.f32.mxu1 %vm5198_vm0, %v5199_v1 }
 0xeca   :  { %4621 = vmatprep.subr.bf16.mxu1 %v5197_v0 }
 0xecd   :  { %4623 = vmatpush3.bf16.msra.mxu1 %v5689_v29 }
 0xece   :  { %4624 = vmatprep.subr.bf16.mxu1 %v5197_v0 }
 0xed1   :  { %4626 = vmatpush3.bf16.msra.mxu1 %v5693_v32 }
 0xed2   :  { %4627 = vmatprep.subr.bf16.mxu1 %v5197_v0 }
 0xed5   :  { %4629 = vmatpush3.bf16.msra.mxu1 %v5701_v9 }
 0xed6   :  { %4630 = vmatprep.subr.bf16.mxu1 %v5197_v0 }
 0xed9   :  { %4632 = vmatpush3.bf16.msra.mxu1 %v5709_v40 }
 0xeda   :  { %4633 = vmatprep.subr.bf16.mxu1 %v5197_v0 }
 0xedd   :  { %4635 = vmatpush3.bf16.msra.mxu1 %v5717_v50 }
 0xede   :  { %4636 = vmatprep.subr.bf16.mxu1 %v5197_v0 }
 0xee1   :  { %4638 = vmatpush3.bf16.msra.mxu1 %v5721_v43 }
 0xee2   :  { %4639 = vmatprep.subr.bf16.mxu1 %v5197_v0 }
 0xee5   :  { %4641 = vmatpush3.bf16.msra.mxu1 %v5725_v48 }
 0xee6   :  { %4666 = vmatprep.subr.bf16.mxu1 %v5197_v0 }
 0xf9b   :  { %v1437_v10 = vpop.f32.mrb[18].mxu1 }
 0xf9c   :  { %v1441_v11 = vadd.f32 %v1437_v10, %v1075_v8  ;;  %v3742_v12 = vpop.f32.mrb[19].mxu1  ;;  %v1816_v8 = vld [vmem:[#allocation8 + $0x38] sm:$0xff] }
 0xf9d   :  { %v4702_v10 = vpack.c.bf16 %v1816_v8, %v1815_v7  ;;  %v1818_v12 = vld [vmem:[#allocation8 + $0x48] sm:$0xff] }
 0xf9e   :  { %4997 = vtanh.f32 %v1441_v11  ;;  %v1817_v11 = vld [vmem:[#allocation8 + $0x40] sm:$0xff] }
 0xfa8   :  { %v4998_v16 = vpop.eup %4997 }
 0xfa9   :  { %1447 = vrot.lane.b32.xlu0 %v4998_v16, %s5201_s25  ;;  %v1443_v17 = vmul.f32 0.5, %v4998_v16  ;;  %v4706_v16 = vpack.c.bf16 %v1818_v12, %v1817_v11 }
 0xfab   :  { %v1444_v23 = vadd.f32 0.5, %v1443_v17  ;;  %v1819_v17 = vld [vmem:[#allocation8 + $0x50] sm:$0xff] }
 0xfad   :  { %1445 = vrot.lane.b32.xlu1 %v1444_v23, %s5203_s10 }
 0xfb1   :  { %1449 = vrot.lane.b32.xlu1 %v1444_v23, %s5202_s7 }
0x101b   :  { %v1448_v24 = vpop.permute.xlu0 %1447 }
0x101c   :  { %v1452_v26 = vmul.f32 %v1448_v24, %v1444_v23  ;;  %v1820_v23 = vld [vmem:[#allocation8 + $0x58] sm:$0xff] }
0x101d   :  { %v4710_v24 = vpack.c.bf16 %v1820_v23, %v1819_v17  ;;  %v6027_v23 = vld [vmem:[%s6190_s9] ss:$0 sm:$0xff] }
0x101f   :  { %v1446_v25 = vpop.permute.xlu1 %1445 }
0x1020   :  { %v1451_v39 = vmul.f32 %v1446_v25, %v1367_v20  ;;  %v1814_v20 = vld [vmem:[#allocation8 + $0x28] sm:$0xff]  ;;  %v1821_v25 = vld [vmem:[#allocation8 + $0x60] sm:$0xff] }
0x1021   :  { %v4698_v34 = vpack.c.bf16 %v1814_v20, %v1813_v53 }
0x1022   :  { %v1453_v59 = vadd.f32 %v1452_v26, %v1451_v39  ;;  %v1822_v26 = vld [vmem:[#allocation8 + $0x68] sm:$0xff]  ;;  %v1823_v39 = vld [vmem:[#allocation8 + $0x70] sm:$0xff] }
0x1023   :  { %v1450_v22 = vpop.permute.xlu1 %1449 }
0x1024   :  { %4999 = vtanh.f32 %v1453_v59 }
0x102e   :  { %v5000_v15 = vpop.eup %4999 }
0x102f   :  { %v5870_v27 = vmul.f32 %v5000_v15, %v1450_v22  ;;  %v1090_v22 = vadd.f32 %v5777_v5, %v5811_v36  ;;  %v1939_v36 = vld [vmem:[#allocation10 + $0x10] sm:$0xff] }
0x1031   :  { %3776 = vmatmul.mubr.f32.vlgmr.msra.gmra.mrb[20].mxu0 %v5870_v27 }
0x1032   :  { %4644 = vmatpush3.bf16.msra.mxu0 %v5684_v13  ;;  %3845 = vmatprep.mubr.msk.f32.mxu0 %vm5198_vm0, %v5199_v1 }
0x1033   :  { %4645 = vmatprep.subr.bf16.mxu0 %v5197_v0 }
0x1036   :  { %4647 = vmatpush3.bf16.msra.mxu0 %v5689_v29 }
0x1037   :  { %4648 = vmatprep.subr.bf16.mxu0 %v5197_v0 }
0x103a   :  { %4650 = vmatpush3.bf16.msra.mxu0 %v5693_v32 }
0x103b   :  { %4651 = vmatprep.subr.bf16.mxu0 %v5197_v0 }
0x103e   :  { %4653 = vmatpush3.bf16.msra.mxu0 %v5701_v9 }
0x103f   :  { %4654 = vmatprep.subr.bf16.mxu0 %v5197_v0 }
0x1042   :  { %4656 = vmatpush3.bf16.msra.mxu0 %v5709_v40 }
0x1043   :  { %4657 = vmatprep.subr.bf16.mxu0 %v5197_v0 }
0x1046   :  { %4659 = vmatpush3.bf16.msra.mxu0 %v5717_v50 }
0x1047   :  { %4660 = vmatprep.subr.bf16.mxu0 %v5197_v0 }
0x104a   :  { %4662 = vmatpush3.bf16.msra.mxu0 %v5721_v43 }
0x104b   :  { %4663 = vmatprep.subr.bf16.mxu0 %v5197_v0 }
0x104e   :  { %4665 = vmatpush3.bf16.msra.mxu0 %v5725_v48 }
0x1104   :  { %v1523_v31 = vpop.f32.mrb[20].mxu0 }
0x1105   :  { %v1527_v21 = vadd.f32 %v1523_v31, %v1080_v30  ;;  %v3777_v28 = vpop.f32.mrb[21].mxu0 }
0x1107   :  { %5001 = vtanh.f32 %v1527_v21 }
0x1111   :  { %v5002_v46 = vpop.eup %5001 }
0x1112   :  { %1533 = vrot.lane.b32.xlu1 %v5002_v46, %s5201_s25  ;;  %v1529_v38 = vmul.f32 0.5, %v5002_v46 }
0x1114   :  { %v1530_v42 = vadd.f32 0.5, %v1529_v38 }
0x1116   :  { %1531 = vrot.lane.b32.xlu0 %v1530_v42, %s5203_s10 }
0x111a   :  { %1535 = vrot.lane.b32.xlu0 %v1530_v42, %s5202_s7 }
0x1184   :  { %v1534_v18 = vpop.permute.xlu1 %1533 }
0x1185   :  { %v1538_v47 = vmul.f32 %v1534_v18, %v1530_v42  ;;  %v1940_v42 = vld [vmem:[#allocation10 + $0x18] sm:$0xff] }
0x1186   :  { %v5939_v18 = vpack.c.bf16 %v1940_v42, %v1939_v36 }
0x1188   :  { %v1532_v45 = vpop.permute.xlu0 %1531 }
0x1189   :  { %v1537_v49 = vmul.f32 %v1532_v45, %v1453_v59  ;;  %v1824_v59 = vld [vmem:[#allocation8 + $0x78] sm:$0xff]  ;;  %v1941_v45 = vld [vmem:[#allocation10 + $0x20] sm:$0xff] }
0x118a   :  { %v4718_v15 = vpack.c.bf16 %v1824_v59, %v1823_v39 }
0x118b   :  { %v1539_v51 = vadd.f32 %v1538_v47, %v1537_v49  ;;  %v1942_v47 = vld [vmem:[#allocation10 + $0x28] sm:$0xff] }
0x118c   :  { %v1536_v54 = vpop.permute.xlu0 %1535  ;;  %v5943_v49 = vpack.c.bf16 %v1942_v47, %v1941_v45 }
0x118d   :  { %5003 = vtanh.f32 %v1539_v51 }
0x1197   :  { %v5004_v41 = vpop.eup %5003 }
0x1198   :  { %v5895_v55 = vmul.f32 %v5004_v41, %v1536_v54  ;;  %v1943_v41 = vld [vmem:[#allocation10 + $0x30] sm:$0xff]  ;;  %v1944_v54 = vld [vmem:[#allocation10 + $0x38] sm:$0xff] }
0x119a   :  { %3811 = vmatmul.mubr.f32.vlgmr.msra.gmra.mrb[20].mxu1 %v5895_v55 }
0x119b   :  { %4668 = vmatpush3.bf16.msra.mxu1 %v5684_v13  ;;  %3880 = vmatprep.mubr.msk.f32.mxu1 %vm5198_vm0, %v5199_v1  ;;  %v1085_v13 = vadd.f32 %v5712_v37, %v5777_v5 }
0x119c   :  { %4669 = vmatprep.subr.bf16.mxu1 %v5197_v0 }
0x119f   :  { %4671 = vmatpush3.bf16.msra.mxu1 %v5689_v29 }
0x11a0   :  { %4672 = vmatprep.subr.bf16.mxu1 %v5197_v0 }
0x11a3   :  { %4674 = vmatpush3.bf16.msra.mxu1 %v5693_v32 }
0x11a4   :  { %4675 = vmatprep.subr.bf16.mxu1 %v5197_v0 }
0x11a7   :  { %4677 = vmatpush3.bf16.msra.mxu1 %v5701_v9 }
0x11a8   :  { %4678 = vmatprep.subr.bf16.mxu1 %v5197_v0 }
0x11ab   :  { %4680 = vmatpush3.bf16.msra.mxu1 %v5709_v40 }
0x11ac   :  { %4681 = vmatprep.subr.bf16.mxu1 %v5197_v0 }
0x11af   :  { %4683 = vmatpush3.bf16.msra.mxu1 %v5717_v50 }
0x11b0   :  { %4684 = vmatprep.subr.bf16.mxu1 %v5197_v0 }
0x11b3   :  { %4686 = vmatpush3.bf16.msra.mxu1 %v5721_v43  ;;  %v1809_v43 = vld [vmem:[#allocation8] sm:$0xff] }
0x11b4   :  { %4687 = vmatprep.subr.bf16.mxu1 %v5197_v0  ;;  %v4690_v58 = vpack.c.bf16 %v1810_v56, %v1809_v43  ;;  %v1947_v43 = vld [vmem:[#allocation10 + $0x50] sm:$0xff]  ;;  %v1948_v56 = vld [vmem:[#allocation10 + $0x58] sm:$0xff] }
0x11b6   :  { %4691 = vmatprep.subr.bf16.mxu0 %v4690_v58 }
0x11b7   :  { %4689 = vmatpush3.bf16.msra.mxu1 %v5725_v48 }
0x11b8   :  { %4722 = vmatprep.subr.bf16.mxu1 %v5197_v0 }
0x126d   :  { %v1609_v29 = vpop.f32.mrb[20].mxu1 }
0x126e   :  { %v1613_v32 = vadd.f32 %v1609_v29, %v1085_v13  ;;  %v3812_v9 = vpop.f32.mrb[21].mxu1  ;;  %v5951_v13 = vpack.c.bf16 %v1944_v54, %v1943_v41 }
0x126f   :  { %v1946_v9 = vld [vmem:[#allocation10 + $0x48] sm:$0xff] }
0x1270   :  { %5005 = vtanh.f32 %v1613_v32  ;;  %v1945_v32 = vld [vmem:[#allocation10 + $0x40] sm:$0xff] }
0x127a   :  { %v5006_v40 = vpop.eup %5005 }
0x127b   :  { %1619 = vrot.lane.b32.xlu0 %v5006_v40, %s5201_s25  ;;  %v1615_v50 = vmul.f32 0.5, %v5006_v40 }
0x127d   :  { %v1616_v33 = vadd.f32 0.5, %v1615_v50  ;;  %v5959_v50 = vpack.c.bf16 %v1946_v9, %v1945_v32 }
0x127f   :  { %1617 = vrot.lane.b32.xlu1 %v1616_v33, %s5203_s10 }
0x1283   :  { %1621 = vrot.lane.b32.xlu1 %v1616_v33, %s5202_s7 }
0x12ed   :  { %v1620_v48 = vpop.permute.xlu0 %1619 }
0x12ee   :  { %v1624_v37 = vmul.f32 %v1620_v48, %v1616_v33  ;;  %v5967_v48 = vpack.c.bf16 %v1948_v56, %v1947_v43 }
0x12f1   :  { %v1618_v60 = vpop.permute.xlu1 %1617 }
0x12f2   :  { %v1623_v44 = vmul.f32 %v1618_v60, %v1539_v51  ;;  %v1949_v60 = vld [vmem:[#allocation10 + $0x60] sm:$0xff] }
0x12f4   :  { %v5921_v61 = vadd.f32 %v1624_v37, %v1623_v44  ;;  %v1950_v37 = vld [vmem:[#allocation10 + $0x68] sm:$0xff] }
0x12f5   :  { %v1622_v3 = vpop.permute.xlu1 %1621  ;;  %v5971_v44 = vpack.c.bf16 %v1950_v37, %v1949_v60 }
0x12f6   :  { %5007 = vtanh.f32 %v5921_v61 }
0x1300   :  { %v5008_v2 = vpop.eup %5007 }
0x1301   :  { %v1627_v4 = vmul.f32 %v5008_v2, %v1622_v3  ;;  %v5975_v2 = vpack.c.bf16 %v1952_v63, %v1951_v62 }
0x1303   :  { %3846 = vmatmul.mubr.f32.vlgmr.msra.gmra.mrb[22].mxu0 %v1627_v4 }
0x1304   :  { %4693 = vmatpush3.bf16.msra.mxu0 %v4690_v58  ;;  %3915 = vmatprep.mubr.f32.mxu0 %v5788_v19  ;;  %v4714_v19 = vpack.c.bf16 %v1822_v26, %v1821_v25 }
0x1305   :  { %4695 = vmatprep.subr.bf16.mxu0 %v4694_v6 }
0x1308   :  { %4697 = vmatpush3.bf16.msra.mxu0 %v4694_v6 }
0x1309   :  { %4699 = vmatprep.subr.bf16.mxu0 %v4698_v34 }
0x130c   :  { %4701 = vmatpush3.bf16.msra.mxu0 %v4698_v34 }
0x130d   :  { %4703 = vmatprep.subr.bf16.mxu0 %v4702_v10 }
0x1310   :  { %4705 = vmatpush3.bf16.msra.mxu0 %v4702_v10 }
0x1311   :  { %4707 = vmatprep.subr.bf16.mxu0 %v4706_v16 }
0x1314   :  { %4709 = vmatpush3.bf16.msra.mxu0 %v4706_v16 }
0x1315   :  { %4711 = vmatprep.subr.bf16.mxu0 %v4710_v24 }
0x1318   :  { %4713 = vmatpush3.bf16.msra.mxu0 %v4710_v24 }
0x1319   :  { %4715 = vmatprep.subr.bf16.mxu0 %v4714_v19 }
0x131c   :  { %4717 = vmatpush3.bf16.msra.mxu0 %v4714_v19 }
0x131d   :  { %4719 = vmatprep.subr.bf16.mxu0 %v4718_v15 }
0x1320   :  { %4721 = vmatpush3.bf16.msra.mxu0 %v4718_v15 }
0x1321   :  { %4746 = vmatprep.subr.bf16.mxu0 %v5197_v0 }
0x1323   :  { %3916 = vmatmul.mubr.f32.vlgmr.msra.gmra.mrb[24].mxu0 %v5818_v57  ;;  %v1937_v57 = vld [vmem:[#allocation10] sm:$0xff] }
0x1324   :  { %3918 = vmatprep.mubr.f32.mxu0 %v5844_v14  ;;  %v1938_v14 = vld [vmem:[#allocation10 + $0x8] sm:$0xff] }
0x1327   :  { %3919 = vmatmul.mubr.f32.gmra.mrb[26].mxu0 %v5870_v27  ;;  %v5934_v27 = vpack.c.bf16 %v1938_v14, %v1937_v57 }
0x1328   :  { %3921 = vmatprep.mubr.f32.mxu0 %v5895_v55 }
0x1329   :  { %4748 = vmatpush3.bf16.msra.mxu0 %v5934_v27 }
0x132a   :  { %4749 = vmatprep.subr.bf16.mxu0 %v5197_v0 }
0x132b   :  { %3922 = vmatmul.mubr.f32.gmra.mrb[28].mxu0 %v1627_v4 }
0x132d   :  { %4751 = vmatpush3.bf16.msra.mxu0 %v5939_v18 }
0x132e   :  { %4752 = vmatprep.subr.bf16.mxu0 %v5197_v0 }
0x1331   :  { %4754 = vmatpush3.bf16.msra.mxu0 %v5943_v49 }
0x1332   :  { %4755 = vmatprep.subr.bf16.mxu0 %v5197_v0 }
0x1335   :  { %4757 = vmatpush3.bf16.msra.mxu0 %v5951_v13 }
0x1336   :  { %4758 = vmatprep.subr.bf16.mxu0 %v5197_v0 }
0x1339   :  { %4760 = vmatpush3.bf16.msra.mxu0 %v5959_v50 }
0x133a   :  { %4761 = vmatprep.subr.bf16.mxu0 %v5197_v0 }
0x133d   :  { %4763 = vmatpush3.bf16.msra.mxu0 %v5967_v48 }
0x133e   :  { %4764 = vmatprep.subr.bf16.mxu0 %v5197_v0 }
0x1341   :  { %4766 = vmatpush3.bf16.msra.mxu0 %v5971_v44 }
0x1342   :  { %4767 = vmatprep.subr.bf16.mxu0 %v5197_v0 }
0x1345   :  { %4769 = vmatpush3.bf16.msra.mxu0 %v5975_v2 }
0x1346   :  { %4794 = vmatprep.subr.bf16.mxu0 %v5197_v0 }
0x13d6   :  { %v1695_v30 = vpop.f32.mrb[22].mxu0 }
0x13d7   :  { %v1699_v31 = vadd.f32 %v1695_v30, %v1090_v22  ;;  %v3847_v21 = vpop.f32.mrb[23].mxu0 }
0x13d9   :  { %5009 = vtanh.f32 %v1699_v31 }
0x13e3   :  { %v5010_v28 = vpop.eup %5009 }
0x13e4   :  { %1705 = vrot.lane.b32.xlu1 %v5010_v28, %s5201_s25  ;;  %v1701_v46 = vmul.f32 0.5, %v5010_v28 }
0x13e6   :  { %v1702_v38 = vadd.f32 0.5, %v1701_v46 }
0x13e8   :  { %1703 = vrot.lane.b32.xlu0 %v1702_v38, %s5203_s10 }
0x13ec   :  { %1707 = vrot.lane.b32.xlu0 %v1702_v38, %s5202_s7 }
0x13f6   :  { %v5946_v51 = vpop.f32.mrb[24].mxu0 }
0x13f7   :  { %v5949_v55 = vpop.f32.mrb[25].mxu0 }
0x13f8   :  { %v1899_v24 = vadd.f32 %v6027_v23, %v5949_v55  ;;  %v1904_v55 = vadd.f32 %v5946_v51, %v6027_v23 }
0x13fa   :  { %v5954_v29 = vpop.f32.mrb[26].mxu0 }
0x13fb   :  { %v5957_v40 = vpop.f32.mrb[27].mxu0 }
0x13fe   :  { %v5962_v33 = vpop.f32.mrb[28].mxu0 }
0x13ff   :  { %v5965_v58 = vpop.f32.mrb[29].mxu0 }
0x1456   :  { %v1706_v3 = vpop.permute.xlu1 %1705 }
0x1457   :  { %v1710_v6 = vmul.f32 %v1706_v3, %v1702_v38 }
0x145a   :  { %v1704_v4 = vpop.permute.xlu0 %1703 }
0x145b   :  { %v1709_v53 = vmul.f32 %v1704_v4, %v5921_v61 }
0x145d   :  { %v5980_v20 = vadd.f32 %v1710_v6, %v1709_v53 }
0x145e   :  { %v1708_v7 = vpop.permute.xlu0 %1707 }
0x145f   :  { %5011 = vtanh.f32 %v5980_v20 }
0x1469   :  { %v5012_v34 = vpop.eup %5011 }
0x146a   :  { %v1713_v8 = vmul.f32 %v5012_v34, %v1708_v7  ;;  %v1909_v34 = vadd.f32 %v6027_v23, %v5957_v40 }
0x146c   :  { %3881 = vmatmul.mubr.f32.vlgmr.msra.gmra.mrb[22].mxu1 %v1713_v8  ;;  %3924 = vmatprep.mubr.f32.mxu0 %v1713_v8 }
0x146d   :  { %4724 = vmatpush3.bf16.msra.mxu1 %v5934_v27  ;;  %3959 = vmatprep.mubr.msk.f32.mxu1 %vm5198_vm0, %v5199_v1 }
0x146e   :  { %4725 = vmatprep.subr.bf16.mxu1 %v5197_v0 }
0x1471   :  { %4727 = vmatpush3.bf16.msra.mxu1 %v5939_v18 }
0x1472   :  { %4728 = vmatprep.subr.bf16.mxu1 %v5197_v0 }
0x1475   :  { %4730 = vmatpush3.bf16.msra.mxu1 %v5943_v49 }
0x1476   :  { %4731 = vmatprep.subr.bf16.mxu1 %v5197_v0 }
0x1479   :  { %4733 = vmatpush3.bf16.msra.mxu1 %v5951_v13 }
0x147a   :  { %4734 = vmatprep.subr.bf16.mxu1 %v5197_v0 }
0x147d   :  { %4736 = vmatpush3.bf16.msra.mxu1 %v5959_v50 }
0x147e   :  { %4737 = vmatprep.subr.bf16.mxu1 %v5197_v0 }
0x1481   :  { %4739 = vmatpush3.bf16.msra.mxu1 %v5967_v48 }
0x1482   :  { %4740 = vmatprep.subr.bf16.mxu1 %v5197_v0 }
0x1485   :  { %4742 = vmatpush3.bf16.msra.mxu1 %v5971_v44 }
0x1486   :  { %4743 = vmatprep.subr.bf16.mxu1 %v5197_v0 }
0x1489   :  { %4745 = vmatpush3.bf16.msra.mxu1 %v5975_v2 }
0x148a   :  { %4770 = vmatprep.subr.bf16.mxu1 %v5197_v0 }
0x148c   :  { %3960 = vmatmul.mubr.f32.vlgmr.msra.gmra.mrb[24].mxu1 %v5200_v52  ;;  %v1095_v52 = vadd.f32 %v5809_v35, %v5777_v5 }
0x148d   :  { %4772 = vmatpush3.bf16.msra.mxu1 %v5934_v27  ;;  %4029 = vmatprep.mubr.msk.f32.mxu1 %vm5198_vm0, %v5199_v1 }
0x148e   :  { %4773 = vmatprep.subr.bf16.mxu1 %v5197_v0 }
0x1491   :  { %4775 = vmatpush3.bf16.msra.mxu1 %v5939_v18 }
0x1492   :  { %4776 = vmatprep.subr.bf16.mxu1 %v5197_v0 }
0x1495   :  { %4778 = vmatpush3.bf16.msra.mxu1 %v5943_v49 }
0x1496   :  { %4779 = vmatprep.subr.bf16.mxu1 %v5197_v0 }
0x1499   :  { %4781 = vmatpush3.bf16.msra.mxu1 %v5951_v13 }
0x149a   :  { %4782 = vmatprep.subr.bf16.mxu1 %v5197_v0 }
0x149d   :  { %4784 = vmatpush3.bf16.msra.mxu1 %v5959_v50 }
0x149e   :  { %4785 = vmatprep.subr.bf16.mxu1 %v5197_v0 }
0x14a1   :  { %4787 = vmatpush3.bf16.msra.mxu1 %v5967_v48 }
0x14a2   :  { %4788 = vmatprep.subr.bf16.mxu1 %v5197_v0 }
0x14a5   :  { %4790 = vmatpush3.bf16.msra.mxu1 %v5971_v44 }
0x14a6   :  { %4791 = vmatprep.subr.bf16.mxu1 %v5197_v0 }
0x14a9   :  { %4793 = vmatpush3.bf16.msra.mxu1 %v5975_v2 }
0x14aa   :  { %4818 = vmatprep.subr.bf16.mxu1 %v5197_v0 }
0x153f   :  { %v1781_v61 = vpop.f32.mrb[22].mxu1 }
0x1540   :  { %v1785_v10 = vadd.f32 %v1781_v61, %v1095_v52  ;;  %v3882_v11 = vpop.f32.mrb[23].mxu1 }
0x1542   :  { %5013 = vtanh.f32 %v1785_v10 }
0x154c   :  { %v5014_v12 = vpop.eup %5013 }
0x154d   :  { %1791 = vrot.lane.b32.xlu0 %v5014_v12, %s5201_s25  ;;  %v1787_v16 = vmul.f32 0.5, %v5014_v12 }
0x154f   :  { %v1788_v17 = vadd.f32 0.5, %v1787_v16 }
0x1551   :  { %1789 = vrot.lane.b32.xlu1 %v1788_v17, %s5203_s10 }
0x155f   :  { %v2019_v5 = vpop.f32.mrb[24].mxu1 }
0x1560   :  { %v2023_v35 = vadd.f32 %v2019_v5, %v1899_v24  ;;  %v3961_v25 = vpop.f32.mrb[25].mxu1 }
0x1562   :  { %5015 = vtanh.f32 %v2023_v35 }
0x156c   :  { %v5016_v26 = vpop.eup %5015 }
0x156d   :  { %2029 = vrot.lane.b32.xlu1 %v5016_v26, %s5201_s25  ;;  %v2025_v19 = vmul.f32 0.5, %v5016_v26  ;;  %v1914_v26 = vadd.f32 %v5954_v29, %v6027_v23 }
0x156f   :  { %v2026_v39 = vadd.f32 0.5, %v2025_v19 }
0x1571   :  { %1793 = vrot.lane.b32.xlu1 %v1788_v17, %s5202_s7  ;;  %2027 = vrot.lane.b32.xlu0 %v2026_v39, %s5203_s10 }
0x1575   :  { %2031 = vrot.lane.b32.xlu0 %v2026_v39, %s5202_s7 }
0x15bf   :  { %v1792_v15 = vpop.permute.xlu0 %1791 }
0x15c0   :  { %v1796_v30 = vmul.f32 %v1792_v15, %v1788_v17 }
0x15c3   :  { %v1790_v59 = vpop.permute.xlu1 %1789 }
0x15c4   :  { %v1795_v22 = vmul.f32 %v1790_v59, %v5980_v20 }
0x15c6   :  { %v1797_v31 = vadd.f32 %v1796_v30, %v1795_v22 }
0x15c8   :  { %5017 = vtanh.f32 %v1797_v31 }
0x15d2   :  { %v5018_v46 = vpop.eup %5017 }
0x15df   :  { %v2030_v21 = vpop.permute.xlu1 %2029 }
0x15e0   :  { %v2033_v28 = vmul.f32 %v2030_v21, %v2026_v39 }
0x15e3   :  { %v1794_v38 = vpop.permute.xlu1 %1793  ;;  %v2028_v57 = vpop.permute.xlu0 %2027 }
0x15e4   :  { %v1799_v14 = vmul.f32 %v5018_v46, %v1794_v38  ;;  %v2034_v36 = vadd.f32 %v2033_v28, %v2028_v57 }
0x15e6   :  { %5019 = vtanh.f32 %v2034_v36  ;;  %3925 = vmatmul.mubr.f32.gmra.mrb[30].mxu0 %v1799_v14 }
0x15e7   :  { %3994 = vmatprep.mubr.msk.f32.mxu0 %vm5198_vm0, %v5199_v1  ;;  %v2032_v45 = vpop.permute.xlu0 %2031 }
0x15f0   :  { %v5020_v42 = vpop.eup %5019 }
0x15f1   :  { %v2036_v47 = vmul.f32 %v5020_v42, %v2032_v45 }
0x15f3   :  { %3995 = vmatmul.mubr.f32.vlgmr.msra.gmra.mrb[32].mxu0 %v2036_v47 }
0x15f4   :  { %4796 = vmatpush3.bf16.msra.mxu0 %v5934_v27  ;;  %4064 = vmatprep.mubr.msk.f32.mxu0 %vm5198_vm0, %v5199_v1 }
0x15f5   :  { %4797 = vmatprep.subr.bf16.mxu0 %v5197_v0 }
0x15f8   :  { %4799 = vmatpush3.bf16.msra.mxu0 %v5939_v18 }
0x15f9   :  { %4800 = vmatprep.subr.bf16.mxu0 %v5197_v0 }
0x15fc   :  { %4802 = vmatpush3.bf16.msra.mxu0 %v5943_v49 }
0x15fd   :  { %4803 = vmatprep.subr.bf16.mxu0 %v5197_v0 }
0x1600   :  { %4805 = vmatpush3.bf16.msra.mxu0 %v5951_v13 }
0x1601   :  { %4806 = vmatprep.subr.bf16.mxu0 %v5197_v0 }
0x1604   :  { %4808 = vmatpush3.bf16.msra.mxu0 %v5959_v50 }
0x1605   :  { %4809 = vmatprep.subr.bf16.mxu0 %v5197_v0 }
0x1608   :  { %4811 = vmatpush3.bf16.msra.mxu0 %v5967_v48 }
0x1609   :  { %4812 = vmatprep.subr.bf16.mxu0 %v5197_v0 }
0x160c   :  { %4814 = vmatpush3.bf16.msra.mxu0 %v5971_v44 }
0x160d   :  { %4815 = vmatprep.subr.bf16.mxu0 %v5197_v0 }
0x1610   :  { %4817 = vmatpush3.bf16.msra.mxu0 %v5975_v2 }
0x1611   :  { %4842 = vmatprep.subr.bf16.mxu0 %v5197_v0 }
0x16b9   :  { %v6056_v41 = vpop.f32.mrb[30].mxu0 }
0x16ba   :  { %v6058_v54 = vpop.f32.mrb[31].mxu0 }
0x16c6   :  { %v2103_v32 = vpop.f32.mrb[32].mxu0 }
0x16c7   :  { %v2107_v9 = vadd.f32 %v2103_v32, %v1904_v55  ;;  %v3996_v43 = vpop.f32.mrb[33].mxu0 }
0x16c9   :  { %5021 = vtanh.f32 %v2107_v9 }
0x16d3   :  { %v5022_v56 = vpop.eup %5021 }
0x16d4   :  { %2113 = vrot.lane.b32.xlu0 %v5022_v56, %s5201_s25  ;;  %v2109_v60 = vmul.f32 0.5, %v5022_v56 }
0x16d6   :  { %v2110_v37 = vadd.f32 0.5, %v2109_v60 }
0x16d8   :  { %2111 = vrot.lane.b32.xlu1 %v2110_v37, %s5203_s10 }
0x16dc   :  { %2115 = vrot.lane.b32.xlu1 %v2110_v37, %s5202_s7 }
0x1746   :  { %v2114_v62 = vpop.permute.xlu0 %2113 }
0x1747   :  { %v2118_v3 = vmul.f32 %v2114_v62, %v2110_v37 }
0x174a   :  { %v2112_v63 = vpop.permute.xlu1 %2111 }
0x174b   :  { %v2117_v4 = vmul.f32 %v2112_v63, %v2034_v36  ;;  %v1919_v36 = vadd.f32 %v6027_v23, %v5965_v58 }
0x174d   :  { %v2119_v6 = vadd.f32 %v2118_v3, %v2117_v4 }
0x174e   :  { %v2116_v53 = vpop.permute.xlu1 %2115 }
0x174f   :  { %5023 = vtanh.f32 %v2119_v6 }
0x1759   :  { %v5024_v51 = vpop.eup %5023 }
0x175a   :  { %v2121_v20 = vmul.f32 %v5024_v51, %v2116_v53 }
0x175c   :  { %4030 = vmatmul.mubr.f32.vlgmr.msra.gmra.mrb[26].mxu1 %v2121_v20 }
0x175d   :  { %4820 = vmatpush3.bf16.msra.mxu1 %v5934_v27  ;;  %4099 = vmatprep.mubr.msk.f32.mxu1 %vm5198_vm0, %v5199_v1 }
0x175e   :  { %4821 = vmatprep.subr.bf16.mxu1 %v5197_v0 }
0x1761   :  { %4823 = vmatpush3.bf16.msra.mxu1 %v5939_v18 }
0x1762   :  { %4824 = vmatprep.subr.bf16.mxu1 %v5197_v0 }
0x1765   :  { %4826 = vmatpush3.bf16.msra.mxu1 %v5943_v49 }
0x1766   :  { %4827 = vmatprep.subr.bf16.mxu1 %v5197_v0 }
0x1769   :  { %4829 = vmatpush3.bf16.msra.mxu1 %v5951_v13 }
0x176a   :  { %4830 = vmatprep.subr.bf16.mxu1 %v5197_v0 }
0x176d   :  { %4832 = vmatpush3.bf16.msra.mxu1 %v5959_v50 }
0x176e   :  { %4833 = vmatprep.subr.bf16.mxu1 %v5197_v0 }
0x1771   :  { %4835 = vmatpush3.bf16.msra.mxu1 %v5967_v48 }
0x1772   :  { %4836 = vmatprep.subr.bf16.mxu1 %v5197_v0 }
0x1775   :  { %4838 = vmatpush3.bf16.msra.mxu1 %v5971_v44 }
0x1776   :  { %4839 = vmatprep.subr.bf16.mxu1 %v5197_v0 }
0x1779   :  { %4841 = vmatpush3.bf16.msra.mxu1 %v5975_v2 }
0x177a   :  { %4866 = vmatprep.subr.bf16.mxu1 %v5197_v0 }
0x182f   :  { %v2188_v7 = vpop.f32.mrb[26].mxu1 }
0x1830   :  { %v2192_v8 = vadd.f32 %v2188_v7, %v1909_v34  ;;  %v4031_v52 = vpop.f32.mrb[27].mxu1  ;;  %v1929_v7 = vadd.f32 %v6027_v23, %v6058_v54 }
0x1832   :  { %5025 = vtanh.f32 %v2192_v8 }
0x183c   :  { %v5026_v61 = vpop.eup %5025 }
0x183d   :  { %2198 = vrot.lane.b32.xlu1 %v5026_v61, %s5201_s25  ;;  %v2194_v10 = vmul.f32 0.5, %v5026_v61 }
0x183f   :  { %v2195_v11 = vadd.f32 0.5, %v2194_v10 }
0x1841   :  { %2196 = vrot.lane.b32.xlu0 %v2195_v11, %s5203_s10 }
0x1845   :  { %2200 = vrot.lane.b32.xlu0 %v2195_v11, %s5202_s7 }
0x18af   :  { %v2199_v12 = vpop.permute.xlu1 %2198 }
0x18b0   :  { %v2203_v17 = vmul.f32 %v2199_v12, %v2195_v11 }
0x18b3   :  { %v2197_v16 = vpop.permute.xlu0 %2196 }
0x18b4   :  { %v2202_v24 = vmul.f32 %v2197_v16, %v2119_v6 }
0x18b6   :  { %v2204_v5 = vadd.f32 %v2203_v17, %v2202_v24 }
0x18b7   :  { %v2201_v35 = vpop.permute.xlu0 %2200 }
0x18b8   :  { %5027 = vtanh.f32 %v2204_v5 }
0x18c2   :  { %v5028_v40 = vpop.eup %5027 }
0x18c3   :  { %v2206_v25 = vmul.f32 %v5028_v40, %v2201_v35 }
0x18c5   :  { %4065 = vmatmul.mubr.f32.vlgmr.msra.gmra.mrb[34].mxu0 %v2206_v25  ;;  %v2632_v25 = vld [vmem:[#allocation11] sm:$0xff] }
0x18c6   :  { %4844 = vmatpush3.bf16.msra.mxu0 %v5934_v27  ;;  %4134 = vmatprep.mubr.msk.f32.mxu0 %vm5198_vm0, %v5199_v1 }
0x18c7   :  { %4845 = vmatprep.subr.bf16.mxu0 %v5197_v0 }
0x18ca   :  { %4847 = vmatpush3.bf16.msra.mxu0 %v5939_v18 }
0x18cb   :  { %4848 = vmatprep.subr.bf16.mxu0 %v5197_v0 }
0x18ce   :  { %4850 = vmatpush3.bf16.msra.mxu0 %v5943_v49 }
0x18cf   :  { %4851 = vmatprep.subr.bf16.mxu0 %v5197_v0 }
0x18d2   :  { %4853 = vmatpush3.bf16.msra.mxu0 %v5951_v13 }
0x18d3   :  { %4854 = vmatprep.subr.bf16.mxu0 %v5197_v0 }
0x18d6   :  { %4856 = vmatpush3.bf16.msra.mxu0 %v5959_v50 }
0x18d7   :  { %4857 = vmatprep.subr.bf16.mxu0 %v5197_v0 }
0x18da   :  { %4859 = vmatpush3.bf16.msra.mxu0 %v5967_v48 }
0x18db   :  { %4860 = vmatprep.subr.bf16.mxu0 %v5197_v0 }
0x18de   :  { %4862 = vmatpush3.bf16.msra.mxu0 %v5971_v44 }
0x18df   :  { %4863 = vmatprep.subr.bf16.mxu0 %v5197_v0 }
0x18e2   :  { %4865 = vmatpush3.bf16.msra.mxu0 %v5975_v2 }
0x18e3   :  { %4890 = vmatprep.subr.bf16.mxu0 %v5197_v0 }
0x1998   :  { %v2273_v19 = vpop.f32.mrb[34].mxu0 }
0x1999   :  { %v2277_v39 = vadd.f32 %v2273_v19, %v1914_v26  ;;  %v4066_v59 = vpop.f32.mrb[35].mxu0  ;;  %v2633_v26 = vld [vmem:[#allocation11 + $0x8] sm:$0xff]  ;;  %v2634_v19 = vld [vmem:[#allocation11 + $0x10] sm:$0xff] }
0x199a   :  { %v2635_v59 = vld [vmem:[#allocation11 + $0x18] sm:$0xff] }
0x199b   :  { %5029 = vtanh.f32 %v2277_v39  ;;  %v4915_v39 = vpack.c.bf16 %v2633_v26, %v2632_v25 }
0x19a5   :  { %v5030_v15 = vpop.eup %5029 }
0x19a6   :  { %2283 = vrot.lane.b32.xlu0 %v5030_v15, %s5201_s25  ;;  %v2279_v22 = vmul.f32 0.5, %v5030_v15  ;;  %v4918_v15 = vpack.c.bf16 %v2635_v59, %v2634_v19 }
0x19a8   :  { %v2280_v30 = vadd.f32 0.5, %v2279_v22  ;;  %v2636_v22 = vld [vmem:[#allocation11 + $0x20] sm:$0xff] }
0x19aa   :  { %2281 = vrot.lane.b32.xlu1 %v2280_v30, %s5203_s10 }
0x19ae   :  { %2285 = vrot.lane.b32.xlu1 %v2280_v30, %s5202_s7 }
0x1a18   :  { %v2284_v31 = vpop.permute.xlu0 %2283 }
0x1a19   :  { %v2288_v28 = vmul.f32 %v2284_v31, %v2280_v30  ;;  %v2637_v30 = vld [vmem:[#allocation11 + $0x28] sm:$0xff] }
0x1a1a   :  { %v4921_v31 = vpack.c.bf16 %v2637_v30, %v2636_v22 }
0x1a1c   :  { %v2282_v21 = vpop.permute.xlu1 %2281 }
0x1a1d   :  { %v2287_v46 = vmul.f32 %v2282_v21, %v2204_v5  ;;  %v1934_v21 = vadd.f32 %v6056_v41, %v6027_v23  ;;  %v2645_v41 = vld [vmem:[#allocation11 + $0x68] sm:$0xff] }
0x1a1f   :  { %v2289_v38 = vadd.f32 %v2288_v28, %v2287_v46  ;;  %v2638_v46 = vld [vmem:[#allocation11 + $0x30] sm:$0xff] }
0x1a20   :  { %v2286_v57 = vpop.permute.xlu1 %2285 }
0x1a21   :  { %5031 = vtanh.f32 %v2289_v38 }
0x1a2b   :  { %v5032_v29 = vpop.eup %5031 }
0x1a2c   :  { %v2291_v14 = vmul.f32 %v5032_v29, %v2286_v57 }
0x1a2e   :  { %4100 = vmatmul.mubr.f32.vlgmr.msra.gmra.mrb[28].mxu1 %v2291_v14 }
0x1a2f   :  { %4868 = vmatpush3.bf16.msra.mxu1 %v5934_v27  ;;  %4169 = vmatprep.mubr.msk.f32.mxu1 %vm5198_vm0, %v5199_v1 }
0x1a30   :  { %4869 = vmatprep.subr.bf16.mxu1 %v5197_v0 }
0x1a33   :  { %4871 = vmatpush3.bf16.msra.mxu1 %v5939_v18 }
0x1a34   :  { %4872 = vmatprep.subr.bf16.mxu1 %v5197_v0 }
0x1a37   :  { %4874 = vmatpush3.bf16.msra.mxu1 %v5943_v49 }
0x1a38   :  { %4875 = vmatprep.subr.bf16.mxu1 %v5197_v0 }
0x1a3b   :  { %4877 = vmatpush3.bf16.msra.mxu1 %v5951_v13 }
0x1a3c   :  { %4878 = vmatprep.subr.bf16.mxu1 %v5197_v0 }
0x1a3f   :  { %4880 = vmatpush3.bf16.msra.mxu1 %v5959_v50 }
0x1a40   :  { %4881 = vmatprep.subr.bf16.mxu1 %v5197_v0 }
0x1a43   :  { %4883 = vmatpush3.bf16.msra.mxu1 %v5967_v48 }
0x1a44   :  { %4884 = vmatprep.subr.bf16.mxu1 %v5197_v0 }
0x1a47   :  { %4886 = vmatpush3.bf16.msra.mxu1 %v5971_v44 }
0x1a48   :  { %4887 = vmatprep.subr.bf16.mxu1 %v5197_v0 }
0x1a4b   :  { %4889 = vmatpush3.bf16.msra.mxu1 %v5975_v2 }
0x1a4c   :  { %4914 = vmatprep.subr.bf16.mxu1 %v5197_v0 }
0x1b01   :  { %v2358_v42 = vpop.f32.mrb[28].mxu1 }
0x1b02   :  { %v2362_v45 = vadd.f32 %v2358_v42, %v1919_v36  ;;  %v4101_v47 = vpop.f32.mrb[29].mxu1  ;;  %v2640_v36 = vld [vmem:[#allocation11 + $0x40] sm:$0xff]  ;;  %v2641_v42 = vld [vmem:[#allocation11 + $0x48] sm:$0xff] }
0x1b03   :  { %v2642_v47 = vld [vmem:[#allocation11 + $0x50] sm:$0xff] }
0x1b04   :  { %5033 = vtanh.f32 %v2362_v45  ;;  %v4927_v45 = vpack.c.bf16 %v2641_v42, %v2640_v36 }
0x1b0e   :  { %v5034_v55 = vpop.eup %5033 }
0x1b0f   :  { %2368 = vrot.lane.b32.xlu1 %v5034_v55, %s5201_s25  ;;  %v2364_v32 = vmul.f32 0.5, %v5034_v55  ;;  %v2643_v55 = vld [vmem:[#allocation11 + $0x58] sm:$0xff] }
0x1b11   :  { %v2365_v9 = vadd.f32 0.5, %v2364_v32  ;;  %v4930_v32 = vpack.c.bf16 %v2643_v55, %v2642_v47 }
0x1b13   :  { %2366 = vrot.lane.b32.xlu0 %v2365_v9, %s5203_s10 }
0x1b17   :  { %2370 = vrot.lane.b32.xlu0 %v2365_v9, %s5202_s7 }
0x1b81   :  { %v2369_v43 = vpop.permute.xlu1 %2368 }
0x1b82   :  { %v2373_v60 = vmul.f32 %v2369_v43, %v2365_v9 }
0x1b85   :  { %v2367_v56 = vpop.permute.xlu0 %2366 }
0x1b86   :  { %v2372_v37 = vmul.f32 %v2367_v56, %v2289_v38  ;;  %v2639_v38 = vld [vmem:[#allocation11 + $0x38] sm:$0xff] }
0x1b87   :  { %v4924_v14 = vpack.c.bf16 %v2639_v38, %v2638_v46 }
0x1b88   :  { %v2374_v62 = vadd.f32 %v2373_v60, %v2372_v37  ;;  %v2646_v37 = vld [vmem:[#allocation11 + $0x70] sm:$0xff] }
0x1b89   :  { %v2371_v63 = vpop.permute.xlu0 %2370 }
0x1b8a   :  { %5035 = vtanh.f32 %v2374_v62 }
0x1b94   :  { %v5036_v58 = vpop.eup %5035 }
0x1b95   :  { %v2376_v3 = vmul.f32 %v5036_v58, %v2371_v63 }
0x1b97   :  { %4135 = vmatmul.mubr.f32.vlgmr.msra.gmra.mrb[36].mxu0 %v2376_v3 }
0x1b98   :  { %4892 = vmatpush3.bf16.msra.mxu0 %v5934_v27  ;;  %4204 = vmatprep.mubr.msk.f32.mxu0 %vm5198_vm0, %v5199_v1  ;;  %v1924_v27 = vadd.f32 %v5962_v33, %v6027_v23  ;;  %v2644_v23 = vld [vmem:[#allocation11 + $0x60] sm:$0xff] }
0x1b99   :  { %4893 = vmatprep.subr.bf16.mxu0 %v5197_v0  ;;  %v4933_v43 = vpack.c.bf16 %v2645_v41, %v2644_v23 }
0x1b9c   :  { %4895 = vmatpush3.bf16.msra.mxu0 %v5939_v18 }
0x1b9d   :  { %4896 = vmatprep.subr.bf16.mxu0 %v5197_v0 }
0x1ba0   :  { %4898 = vmatpush3.bf16.msra.mxu0 %v5943_v49 }
0x1ba1   :  { %4899 = vmatprep.subr.bf16.mxu0 %v5197_v0 }
0x1ba4   :  { %4901 = vmatpush3.bf16.msra.mxu0 %v5951_v13 }
0x1ba5   :  { %4902 = vmatprep.subr.bf16.mxu0 %v5197_v0 }
0x1ba8   :  { %4904 = vmatpush3.bf16.msra.mxu0 %v5959_v50 }
0x1ba9   :  { %4905 = vmatprep.subr.bf16.mxu0 %v5197_v0 }
0x1bac   :  { %4907 = vmatpush3.bf16.msra.mxu0 %v5967_v48 }
0x1bad   :  { %4908 = vmatprep.subr.bf16.mxu0 %v5197_v0 }
0x1bb0   :  { %4910 = vmatpush3.bf16.msra.mxu0 %v5971_v44 }
0x1bb1   :  { %4911 = vmatprep.subr.bf16.mxu0 %v5197_v0 }
0x1bb4   :  { %4913 = vmatpush3.bf16.msra.mxu0 %v5975_v2 }
0x1c6a   :  { %v2443_v18 = vpop.f32.mrb[36].mxu0 }
0x1c6b   :  { %v2447_v49 = vadd.f32 %v2443_v18, %v1924_v27  ;;  %v4136_v13 = vpop.f32.mrb[37].mxu0 }
0x1c6d   :  { %5037 = vtanh.f32 %v2447_v49 }
0x1c77   :  { %v5038_v50 = vpop.eup %5037 }
0x1c78   :  { %2453 = vrot.lane.b32.xlu0 %v5038_v50, %s5201_s25  ;;  %v2449_v4 = vmul.f32 0.5, %v5038_v50 }
0x1c7a   :  { %v2450_v48 = vadd.f32 0.5, %v2449_v4 }
0x1c7c   :  { %2451 = vrot.lane.b32.xlu1 %v2450_v48, %s5203_s10 }
0x1c80   :  { %2455 = vrot.lane.b32.xlu1 %v2450_v48, %s5202_s7 }
0x1cea   :  { %v2454_v44 = vpop.permute.xlu0 %2453 }
0x1ceb   :  { %v2458_v51 = vmul.f32 %v2454_v44, %v2450_v48 }
0x1cee   :  { %v2452_v6 = vpop.permute.xlu1 %2451 }
0x1cef   :  { %v2457_v2 = vmul.f32 %v2452_v6, %v2374_v62  ;;  %v2647_v62 = vld [vmem:[#allocation11 + $0x78] sm:$0xff] }
0x1cf0   :  { %v4936_v58 = vpack.c.bf16 %v2647_v62, %v2646_v37 }
0x1cf1   :  { %v2459_v53 = vadd.f32 %v2458_v51, %v2457_v2 }
0x1cf2   :  { %v2456_v20 = vpop.permute.xlu1 %2455 }
0x1cf3   :  { %5039 = vtanh.f32 %v2459_v53 }
0x1cfd   :  { %v5040_v33 = vpop.eup %5039 }
0x1cfe   :  { %v2461_v34 = vmul.f32 %v5040_v33, %v2456_v20 }
0x1d00   :  { %4170 = vmatmul.mubr.f32.vlgmr.msra.gmra.mrb[30].mxu1 %v2461_v34 }
0x1d01   :  { %4239 = vmatprep.mubr.msk.f32.mxu1 %vm5198_vm0, %v5199_v1  ;;  %4916 = vmatpush3.bf16.msra.mxu1 %v4915_v39 }
0x1d02   :  { %4917 = vmatprep.subr.bf16.mxu1 %v5197_v0 }
0x1d05   :  { %4919 = vmatpush3.bf16.msra.mxu1 %v4918_v15 }
0x1d06   :  { %4920 = vmatprep.subr.bf16.mxu1 %v5197_v0 }
0x1d09   :  { %4922 = vmatpush3.bf16.msra.mxu1 %v4921_v31 }
0x1d0a   :  { %4923 = vmatprep.subr.bf16.mxu1 %v5197_v0 }
0x1d0d   :  { %4925 = vmatpush3.bf16.msra.mxu1 %v4924_v14 }
0x1d0e   :  { %4926 = vmatprep.subr.bf16.mxu1 %v5197_v0 }
0x1d11   :  { %4928 = vmatpush3.bf16.msra.mxu1 %v4927_v45 }
0x1d12   :  { %4929 = vmatprep.subr.bf16.mxu1 %v5197_v0 }
0x1d15   :  { %4931 = vmatpush3.bf16.msra.mxu1 %v4930_v32 }
0x1d16   :  { %4932 = vmatprep.subr.bf16.mxu1 %v5197_v0 }
0x1d19   :  { %4934 = vmatpush3.bf16.msra.mxu1 %v4933_v43 }
0x1d1a   :  { %4935 = vmatprep.subr.bf16.mxu1 %v5197_v0  ;;  %v2737_v0 = vld [vmem:[%s6192_s11] ss:$0 sm:$0xff] }
0x1d1d   :  { %4937 = vmatpush3.bf16.msra.mxu1 %v4936_v58 }
0x1dd3   :  { %v2528_v8 = vpop.f32.mrb[30].mxu1 }
0x1dd4   :  { %v2532_v52 = vadd.f32 %v2528_v8, %v1929_v7  ;;  %v4171_v61 = vpop.f32.mrb[31].mxu1 }
0x1dd6   :  { %5041 = vtanh.f32 %v2532_v52 }
0x1de0   :  { %v5042_v10 = vpop.eup %5041 }
0x1de1   :  { %2538 = vrot.lane.b32.xlu1 %v5042_v10, %s5201_s25  ;;  %v2534_v11 = vmul.f32 0.5, %v5042_v10 }
0x1de3   :  { %v2535_v12 = vadd.f32 0.5, %v2534_v11 }
0x1de5   :  { %2536 = vrot.lane.b32.xlu0 %v2535_v12, %s5203_s10 }
0x1de9   :  { %2540 = vrot.lane.b32.xlu0 %v2535_v12, %s5202_s7 }
0x1e53   :  { %v2539_v16 = vpop.permute.xlu1 %2538 }
0x1e54   :  { %v2543_v24 = vmul.f32 %v2539_v16, %v2535_v12 }
0x1e57   :  { %v2537_v17 = vpop.permute.xlu0 %2536 }
0x1e58   :  { %v2542_v1 = vmul.f32 %v2537_v17, %v2459_v53 }
0x1e5a   :  { %v2544_v5 = vadd.f32 %v2543_v24, %v2542_v1 }
0x1e5b   :  { %v2541_v40 = vpop.permute.xlu0 %2540 }
0x1e5c   :  { %5043 = vtanh.f32 %v2544_v5 }
0x1e66   :  { %v5044_v54 = vpop.eup %5043 }
0x1e67   :  { %v2546_v35 = vmul.f32 %v5044_v54, %v2541_v40 }
0x1e69   :  { %4205 = vmatmul.mubr.f32.vlgmr.msra.gmra.mrb[38].mxu0 %v2546_v35 }
0x1f3c   :  { %v2613_v28 = vpop.f32.mrb[38].mxu0 }
0x1f3d   :  { %v2617_v29 = vadd.f32 %v2613_v28, %v1934_v21  ;;  %v4206_v57 = vpop.f32.mrb[39].mxu0 }
0x1f3f   :  { %5045 = vtanh.f32 %v2617_v29 }
0x1f49   :  { %v5046_v9 = vpop.eup %5045 }
0x1f4a   :  { %2623 = vrot.lane.b32.xlu0 %v5046_v9, %s5201_s25  ;;  %v2619_v56 = vmul.f32 0.5, %v5046_v9 }
0x1f4c   :  { %v2620_v60 = vadd.f32 0.5, %v2619_v56 }
0x1f4e   :  { %2621 = vrot.lane.b32.xlu1 %v2620_v60, %s5203_s10 }
0x1f52   :  { %2625 = vrot.lane.b32.xlu1 %v2620_v60, %s5202_s7 }
0x1fbc   :  { %v2624_v63 = vpop.permute.xlu0 %2623 }
0x1fbd   :  { %v2628_v27 = vmul.f32 %v2624_v63, %v2620_v60 }
0x1fc0   :  { %v2622_v3 = vpop.permute.xlu1 %2621 }
0x1fc1   :  { %v2627_v18 = vmul.f32 %v2622_v3, %v2544_v5 }
0x1fc3   :  { %v2629_v49 = vadd.f32 %v2628_v27, %v2627_v18 }
0x1fc4   :  { %v2626_v50 = vpop.permute.xlu1 %2625 }
0x1fc5   :  { %5047 = vtanh.f32 %v2629_v49 }
0x1fcf   :  { %v5048_v13 = vpop.eup %5047 }
0x1fd0   :  { %v2631_v4 = vmul.f32 %v5048_v13, %v2626_v50 }
0x1fd2   :  { %4240 = vmatmul.mubr.f32.vlgmr.msra.gmra.mrb[32].mxu1 %v2631_v4 }
0x20a5   :  { %v2721_v48 = vpop.f32.mrb[32].mxu1 }
0x20a6   :  { %v2722_v44 = vadd.f32 %v2737_v0, %v2721_v48  ;;  %v4241_v6 = vpop.f32.mrb[33].mxu1 }
0x20a8   :  { %2725 = vst [vmem:[%s6193_s12] sm:$0xff] %v2722_v44 }
0x20a9   :  { %2730 = vsyncpa [#allocation4], 1 }
0x20aa   :  { %2731 = vsyncpa [#allocation6], 1 }
0x20ab   :  { %2732 = vsyncpa [#allocation9], 1 }
0x20ac   :  { %2733 = vsyncpa [#allocation12], 1 }

</bundles_post_ra>
